<compile_context>
chip_gen: v7x
topology: tpu7x:2x2x1
jax: 0.10.0
libtpu: 0.0.40
codegen_flags: <defaults>
</compile_context>

<pallas_src>
import math

import jax
import jax.numpy as jnp
from jax import lax
from jax.experimental import pallas as pl
from jax.experimental.pallas import tpu as pltpu


# ---------------------------------------------------------------------------
# helpers
# ---------------------------------------------------------------------------
def _layernorm(x, gamma, beta, eps=1e-5):
    mu = jnp.mean(x, axis=-1, keepdims=True)
    var = jnp.mean((x - mu) ** 2, axis=-1, keepdims=True)
    return (x - mu) * lax.rsqrt(var + eps) * gamma + beta


# ---------------------------------------------------------------------------
# Fused kernel: one grid step = (time block t, encoder layer l)
# ---------------------------------------------------------------------------
def _make_fused_kernel(TBLK, B, C, H, L, F, FCAT):
    Dh = C // H
    inv_sqrt_dh = 1.0 / math.sqrt(Dh)
    bf16, f32 = jnp.bfloat16, jnp.float32
    R = TBLK * B                     # rows of the 2-D activation view

    def kernel(xcat_ref, add_ref, wcat_ref, wqkv_ref, wo_ref, w1_ref, w2_ref,
               bqkv_ref, vecs_ref, b1_ref, out_ref, x_scr):
        l = pl.program_id(1)

        # -- only at layer 0: fused input projections + masked biases + PE ----
        @pl.when(l == 0)
        def _():
            xc = xcat_ref[...].reshape(R, FCAT)                    # bf16
            comb = jnp.dot(xc, wcat_ref[...], preferred_element_type=f32)
            x_scr[...] = comb + add_ref[...].reshape(R, C)         # f32 residual

        x = x_scr[...]                                             # (R, C) f32
        vecs = vecs_ref[0]                                         # (6, C) f32
        bo, g1, be1, b2, g2, be2 = (vecs[i:i + 1] for i in range(6))

        # ----------------- self-attention (mixes over S = B) -----------------
        qkv = jnp.dot(x.astype(bf16), wqkv_ref[0],
                      preferred_element_type=f32) + bqkv_ref[0]    # (R, 3C)

        ctx_heads = []
        for h in range(H):                                         # static unroll
            # lane-contiguous static slices; leading-dim-only reshapes
            qh = (qkv[:, h * Dh:(h + 1) * Dh] * inv_sqrt_dh).reshape(TBLK, B, Dh)
            kh = qkv[:, C + h * Dh:C + (h + 1) * Dh].reshape(TBLK, B, Dh)
            vh = qkv[:, 2 * C + h * Dh:2 * C + (h + 1) * Dh].reshape(TBLK, B, Dh)

            sc = jnp.einsum('tqd,tkd->tqk', qh.astype(bf16), kh.astype(bf16),
                            preferred_element_type=f32)            # (TBLK, B, B)
            sc = sc - jnp.max(sc, axis=-1, keepdims=True)
            p = jnp.exp(sc)
            # approx reciprocal (EUP): ~1e-3 rel. error vs exact divide; fine for inference
            p = p * pl.reciprocal(jnp.sum(p, axis=-1, keepdims=True), approx=True)
            ch = jnp.einsum('tqk,tkd->tqd', p.astype(bf16), vh.astype(bf16),
                            preferred_element_type=f32)            # (TBLK, B, Dh)
            ctx_heads.append(ch.reshape(R, Dh))
        ctx = jnp.concatenate(ctx_heads, axis=-1)                  # (R, C)

        attn = jnp.dot(ctx.astype(bf16), wo_ref[0],
                       preferred_element_type=f32) + bo
        x = _layernorm(x + attn, g1, be1)

        # ----------------- position-wise feed-forward ------------------------
        h1 = jnp.dot(x.astype(bf16), w1_ref[0], preferred_element_type=f32)
        h1 = jnp.maximum(h1 + b1_ref[0], 0.0)                      # ReLU
        ff = jnp.dot(h1.astype(bf16), w2_ref[0], preferred_element_type=f32) + b2
        x = _layernorm(x + ff, g2, be2)

        x_scr[...] = x                                             # carry to layer l+1

        @pl.when(l == L - 1)
        def _():
            out_ref[...] = x.reshape(TBLK, B, C)

    return kernel


# ---------------------------------------------------------------------------
# Wrapper: layout/packing plumbing (plain JAX) + single pipelined pallas_call
# ---------------------------------------------------------------------------
def speech_feature_transformer(hubert, pitch, ppg, params, pe, nhead):
    f32, bf16 = jnp.float32, jnp.bfloat16
    B, t_h, f_h = hubert.shape
    t_p = pitch.shape[1]
    t_g, f_g = ppg.shape[1], ppg.shape[2]
    T = max(t_h, t_p, t_g)
    C = params['wh'].shape[0]
    layers = params['layers']
    L = len(layers)
    F = layers[0]['w1'].shape[0]
    H = nhead
    assert C % H == 0, "d_model must be divisible by nhead"
    FCAT = f_h + 1 + f_g

    # time blocking: multiple of 8 sublanes, capped, padded time sliced off at the end
    TBLK = min(128, ((T + 7) // 8) * 8)
    T_pad = ((T + TBLK - 1) // TBLK) * TBLK
    gT = T_pad // TBLK

    # pad raw streams to T_pad, concatenate on features, flip to (T, B, .) wrapper-side
    hub_p = jnp.pad(hubert, ((0, 0), (0, T_pad - t_h), (0, 0)))
    pit_p = jnp.pad(pitch[..., None], ((0, 0), (0, T_pad - t_p), (0, 0)))
    ppg_p = jnp.pad(ppg, ((0, 0), (0, T_pad - t_g), (0, 0)))
    x_cat = jnp.concatenate([hub_p, pit_p, ppg_p], axis=-1)         # (B,T_pad,FCAT)
    x_cat = jnp.transpose(x_cat, (1, 0, 2)).astype(bf16)            # (T_pad,B,FCAT)
    w_cat = jnp.concatenate([params['wh'], params['wp'], params['wg']],
                            axis=1).T.astype(bf16)                  # (FCAT, C)

    # F.pad happens AFTER the projections in PyTorch, so padded rows must be
    # exactly zero (not the bias).  Padded raw rows contribute zero to the matmul,
    # so fold per-stream time masks into the bias field, and fold pe[:B]
    # (broadcast over T) into the same additive term, already in (T, B, C) layout.
    t_idx = jnp.arange(T_pad, dtype=jnp.int32)[:, None]
    bias_field = ((t_idx < t_h).astype(f32) * params['bh'][None, :]
                  + (t_idx < t_p).astype(f32) * params['bp'][None, :]
                  + (t_idx < t_g).astype(f32) * params['bg'][None, :])   # (T_pad,C)
    add_tbc = (bias_field[:, None, :] + pe[:B, 0, :][None, :, :]).astype(f32)

    # per-layer weights stacked on a leading layer axis (streamed per grid step);
    # pre-transposed so every in-kernel GEMM is activation(.,e) @ weight(e,f)
    wqkv_s = jnp.stack([lp['wqkv'].T for lp in layers]).astype(bf16)   # (L, C, 3C)
    wo_s = jnp.stack([lp['wo'].T for lp in layers]).astype(bf16)       # (L, C, C)
    w1_s = jnp.stack([lp['w1'].T for lp in layers]).astype(bf16)       # (L, C, F)
    w2_s = jnp.stack([lp['w2'].T for lp in layers]).astype(bf16)       # (L, F, C)
    bqkv_s = jnp.stack([lp['bqkv'] for lp in layers]).astype(f32).reshape(L, 1, 3 * C)
    b1_s = jnp.stack([lp['b1'] for lp in layers]).astype(f32).reshape(L, 1, F)
    vecs_s = jnp.stack([jnp.stack([lp['bo'], lp['g1'], lp['be1'],
                                   lp['b2'], lp['g2'], lp['be2']])
                        for lp in layers]).astype(f32)                 # (L, 6, C)

    kernel = _make_fused_kernel(TBLK, B, C, H, L, F, FCAT)

    # explicit scoped-VMEM budget: per-step block bytes (double-buffered) + slack
    blk_bytes = (TBLK * B * FCAT * 2 + TBLK * B * C * 4 + FCAT * C * 2
                 + C * 3 * C * 2 + C * C * 2 + C * F * 2 + F * C * 2
                 + 3 * C * 4 + 6 * C * 4 + F * 4 + TBLK * B * C * 4)
    vmem_limit = int(min(48 * 1024 * 1024,
                         max(16 * 1024 * 1024, 4 * blk_bytes + (1 << 20))))

    out = pl.pallas_call(
        kernel,
        out_shape=jax.ShapeDtypeStruct((T_pad, B, C), f32),
        grid=(gT, L),
        in_specs=[
            pl.BlockSpec((TBLK, B, FCAT), lambda t, l: (t, 0, 0)),     # x_cat
            pl.BlockSpec((TBLK, B, C), lambda t, l: (t, 0, 0)),        # add term
            pl.BlockSpec((FCAT, C), lambda t, l: (0, 0)),              # fused in-proj W
            pl.BlockSpec((1, C, 3 * C), lambda t, l: (l, 0, 0)),       # Wqkv[l]
            pl.BlockSpec((1, C, C), lambda t, l: (l, 0, 0)),           # Wo[l]
            pl.BlockSpec((1, C, F), lambda t, l: (l, 0, 0)),           # W1[l]
            pl.BlockSpec((1, F, C), lambda t, l: (l, 0, 0)),           # W2[l]
            pl.BlockSpec((1, 1, 3 * C), lambda t, l: (l, 0, 0)),       # bqkv[l]
            pl.BlockSpec((1, 6, C), lambda t, l: (l, 0, 0)),           # per-layer vectors
            pl.BlockSpec((1, 1, F), lambda t, l: (l, 0, 0)),           # b1[l]
        ],
        out_specs=pl.BlockSpec((TBLK, B, C), lambda t, l: (t, 0, 0)),
        scratch_shapes=[pltpu.VMEM((TBLK * B, C), jnp.float32)],        # x carry
        compiler_params=pltpu.CompilerParams(
            dimension_semantics=("parallel", "arbitrary"),
            vmem_limit_bytes=vmem_limit),
    )(x_cat, add_tbc, w_cat, wqkv_s, wo_s, w1_s, w2_s, bqkv_s, vecs_s, b1_s)

    # (T_pad, B, C) -> (B, T, C): wrapper-side transpose + slice of padded time
    return jnp.transpose(out, (1, 0, 2))[:, :T, :]


# ---------------------------------------------------------------------------
# Parameter init / positional encoding (plain-JAX glue)
# ---------------------------------------------------------------------------
def make_positional_encoding(d_model, max_len=5000):
    position = jnp.arange(max_len, dtype=jnp.float32)[:, None]
    div_term = jnp.exp(jnp.arange(0, d_model, 2, dtype=jnp.float32)
                       * (-math.log(10000.0) / d_model))
    pe = jnp.zeros((max_len, 1, d_model), jnp.float32)
    pe = pe.at[:, 0, 0::2].set(jnp.sin(position * div_term))
    pe = pe.at[:, 0, 1::2].set(jnp.cos(position * div_term))
    return pe


def init_params(key, feature_sizes, num_layers, dim_ff):
    C = feature_sizes['combined']
    keys = iter(jax.random.split(key, 64))

    def w(shape, scale=0.02):
        return scale * jax.random.normal(next(keys), shape, jnp.float32)

    params = {
        'wh': w((C, feature_sizes['hubert'])), 'bh': w((C,)),
        'wg': w((C, feature_sizes['ppg'])),    'bg': w((C,)),
        'wp': w((C, 1)),                       'bp': w((C,)),
        # speaker_proj exists in __init__ but is unused in forward (kept for fidelity)
        'ws': w((C, feature_sizes['speaker'])), 'bs': w((C,)),
        'layers': [],
    }
    for _ in range(num_layers):
        params['layers'].append({
            'wqkv': w((3 * C, C)), 'bqkv': w((3 * C,)),
            'wo': w((C, C)),       'bo': w((C,)),
            'g1': jnp.ones((C,), jnp.float32), 'be1': jnp.zeros((C,), jnp.float32),
            'w1': w((dim_ff, C)),  'b1': w((dim_ff,)),
            'w2': w((C, dim_ff)),  'b2': w((C,)),
            'g2': jnp.ones((C,), jnp.float32), 'be2': jnp.zeros((C,), jnp.float32),
        })
    return params


# ---------------------------------------------------------------------------
if __name__ == "__main__":
    feature_sizes = {'hubert': 48, 'ppg': 24, 'speaker': 16, 'combined': 32}
    nhead, num_encoder_layers, dim_feedforward = 4, 2, 64
    B, Th, Tp, Tg = 2, 8, 6, 7

    key = jax.random.PRNGKey(0)
    kh, kp, kg, kparams = jax.random.split(key, 4)
    hubert = jax.random.normal(kh, (B, Th, feature_sizes['hubert']), jnp.float32)
    pitch = jax.random.normal(kp, (B, Tp), jnp.float32)
    ppg = jax.random.normal(kg, (B, Tg, feature_sizes['ppg']), jnp.float32)

    params = init_params(kparams, feature_sizes, num_encoder_layers, dim_feedforward)
    pe = make_positional_encoding(feature_sizes['combined'])

    out = speech_feature_transformer(hubert, pitch, ppg, params, pe, nhead)
    out = jax.block_until_ready(out)

    assert out.shape == (B, max(Th, Tp, Tg), feature_sizes['combined'])
    assert bool(jnp.all(jnp.isfinite(out)))
    print("KERNEL_OK")
</pallas_src>

<mosaic_0001>
module attributes {stable_mosaic.version = 11 : i64} {
  func.func @kernel(%arg0: i32, %arg1: i32, %arg2: memref<8x2x73xbf16, #tpu.memory_space<vmem>>, %arg3: memref<8x2x32xf32, #tpu.memory_space<vmem>>, %arg4: memref<73x32xbf16, #tpu.memory_space<vmem>>, %arg5: memref<1x32x96xbf16, #tpu.memory_space<vmem>>, %arg6: memref<1x32x32xbf16, #tpu.memory_space<vmem>>, %arg7: memref<1x32x64xbf16, #tpu.memory_space<vmem>>, %arg8: memref<1x64x32xbf16, #tpu.memory_space<vmem>>, %arg9: memref<1x1x96xf32, #tpu.memory_space<vmem>>, %arg10: memref<1x6x32xf32, #tpu.memory_space<vmem>>, %arg11: memref<1x1x64xf32, #tpu.memory_space<vmem>>, %arg12: memref<8x2x32xf32, #tpu.memory_space<vmem>>, %arg13: memref<16x32xf32, #tpu.memory_space<vmem>>) attributes {dimension_semantics = [#tpu.dimension_semantics<parallel>, #tpu.dimension_semantics<arbitrary>], iteration_bounds = array<i64: 1, 2>, scalar_prefetch = 0 : i64, scratch_operands = 1 : i64, tpu.core_type = #tpu.core_type<tc>, window_params = [{transform_indices = @transform_0, window_bounds = array<i64: 8, 2, 73>}, {transform_indices = @transform_1, window_bounds = array<i64: 8, 2, 32>}, {pipeline_mode = #tpu.pipeline_mode<synchronous>, transform_indices = @transform_2, window_bounds = array<i64: 73, 32>}, {transform_indices = @transform_3, window_bounds = array<i64: 1, 32, 96>}, {transform_indices = @transform_4, window_bounds = array<i64: 1, 32, 32>}, {transform_indices = @transform_5, window_bounds = array<i64: 1, 32, 64>}, {transform_indices = @transform_6, window_bounds = array<i64: 1, 64, 32>}, {transform_indices = @transform_7, window_bounds = array<i64: 1, 1, 96>}, {transform_indices = @transform_8, window_bounds = array<i64: 1, 6, 32>}, {transform_indices = @transform_9, window_bounds = array<i64: 1, 1, 64>}, {transform_indices = @transform_10, window_bounds = array<i64: 8, 2, 32>}]} {
    %c0_i32 = arith.constant 0 : i32
    %0 = arith.cmpi eq, %arg1, %c0_i32 : i32
    %1 = arith.extui %0 : i1 to i32
    %c0_i32_0 = arith.constant 0 : i32
    %2 = arith.cmpi ne, %1, %c0_i32_0 : i32
    scf.if %2 {
      %c0_60 = arith.constant 0 : index
      %c0_61 = arith.constant 0 : index
      %c0_62 = arith.constant 0 : index
      %193 = vector.load %arg2[%c0_60, %c0_61, %c0_62] : memref<8x2x73xbf16, #tpu.memory_space<vmem>>, vector<8x2x73xbf16>
      %194 = vector.shape_cast %193 : vector<8x2x73xbf16> to vector<16x73xbf16>
      %c0_63 = arith.constant 0 : index
      %c0_64 = arith.constant 0 : index
      %195 = vector.load %arg4[%c0_63, %c0_64] : memref<73x32xbf16, #tpu.memory_space<vmem>>, vector<73x32xbf16>
      %cst_65 = arith.constant dense<0.000000e+00> : vector<16x32xf32>
      %196 = tpu.matmul %194, %195, %cst_65 {dimension_numbers = #tpu.dot_dimension_numbers<[1], [0], [0], [1], [0, 0, 1, 1], [], []>} : vector<16x73xbf16>, vector<73x32xbf16>, vector<16x32xf32> -> vector<16x32xf32>
      %c0_66 = arith.constant 0 : index
      %c0_67 = arith.constant 0 : index
      %c0_68 = arith.constant 0 : index
      %197 = vector.load %arg3[%c0_66, %c0_67, %c0_68] : memref<8x2x32xf32, #tpu.memory_space<vmem>>, vector<8x2x32xf32>
      %198 = vector.shape_cast %197 : vector<8x2x32xf32> to vector<16x32xf32>
      %199 = arith.addf %196, %198 : vector<16x32xf32>
      %c0_69 = arith.constant 0 : index
      %c0_70 = arith.constant 0 : index
      %200 = vector.load %arg13[%c0_69, %c0_70] : memref<16x32xf32, #tpu.memory_space<vmem>>, vector<16x32xf32>
      tpu.vector_store %arg13[%c0_69, %c0_70], %199 {strides = array<i32>} : memref<16x32xf32, #tpu.memory_space<vmem>>, vector<16x32xf32>,
    } else {
    }
    %c0 = arith.constant 0 : index
    %c0_1 = arith.constant 0 : index
    %3 = vector.load %arg13[%c0, %c0_1] : memref<16x32xf32, #tpu.memory_space<vmem>>, vector<16x32xf32>
    %c0_2 = arith.constant 0 : index
    %c0_3 = arith.constant 0 : index
    %c0_4 = arith.constant 0 : index
    %4 = vector.load %arg10[%c0_2, %c0_3, %c0_4] : memref<1x6x32xf32, #tpu.memory_space<vmem>>, vector<1x6x32xf32>
    %5 = vector.shape_cast %4 : vector<1x6x32xf32> to vector<6x32xf32>
    %6 = vector.extract_strided_slice %5 {offsets = [0, 0], sizes = [1, 32], strides = [1, 1]} : vector<6x32xf32> to vector<1x32xf32>
    %7 = vector.extract_strided_slice %5 {offsets = [1, 0], sizes = [1, 32], strides = [1, 1]} : vector<6x32xf32> to vector<1x32xf32>
    %8 = vector.extract_strided_slice %5 {offsets = [2, 0], sizes = [1, 32], strides = [1, 1]} : vector<6x32xf32> to vector<1x32xf32>
    %9 = vector.extract_strided_slice %5 {offsets = [3, 0], sizes = [1, 32], strides = [1, 1]} : vector<6x32xf32> to vector<1x32xf32>
    %10 = vector.extract_strided_slice %5 {offsets = [4, 0], sizes = [1, 32], strides = [1, 1]} : vector<6x32xf32> to vector<1x32xf32>
    %11 = vector.extract_strided_slice %5 {offsets = [5, 0], sizes = [1, 32], strides = [1, 1]} : vector<6x32xf32> to vector<1x32xf32>
    %12 = arith.truncf %3 : vector<16x32xf32> to vector<16x32xbf16>
    %c0_5 = arith.constant 0 : index
    %c0_6 = arith.constant 0 : index
    %c0_7 = arith.constant 0 : index
    %13 = vector.load %arg5[%c0_5, %c0_6, %c0_7] : memref<1x32x96xbf16, #tpu.memory_space<vmem>>, vector<1x32x96xbf16>
    %14 = vector.shape_cast %13 : vector<1x32x96xbf16> to vector<32x96xbf16>
    %cst = arith.constant dense<0.000000e+00> : vector<16x96xf32>
    %15 = tpu.matmul %12, %14, %cst {dimension_numbers = #tpu.dot_dimension_numbers<[1], [0], [0], [1], [0, 0, 1, 1], [], []>} : vector<16x32xbf16>, vector<32x96xbf16>, vector<16x96xf32> -> vector<16x96xf32>
    %c0_8 = arith.constant 0 : index
    %c0_9 = arith.constant 0 : index
    %c0_10 = arith.constant 0 : index
    %16 = vector.load %arg9[%c0_8, %c0_9, %c0_10] : memref<1x1x96xf32, #tpu.memory_space<vmem>>, vector<1x1x96xf32>
    %17 = vector.shape_cast %16 : vector<1x1x96xf32> to vector<1x96xf32>
    %18 = vector.broadcast %17 : vector<1x96xf32> to vector<16x96xf32>
    %19 = arith.addf %15, %18 : vector<16x96xf32>
    %20 = vector.extract_strided_slice %19 {offsets = [0, 0], sizes = [16, 8], strides = [1, 1]} : vector<16x96xf32> to vector<16x8xf32>
    %cst_11 = arith.constant 0.353553385 : f32
    %21 = vector.broadcast %cst_11 : f32 to vector<16x8xf32>
    %22 = arith.mulf %20, %21 : vector<16x8xf32>
    %23 = vector.shape_cast %22 : vector<16x8xf32> to vector<8x2x8xf32>
    %24 = vector.extract_strided_slice %19 {offsets = [0, 32], sizes = [16, 8], strides = [1, 1]} : vector<16x96xf32> to vector<16x8xf32>
    %25 = vector.shape_cast %24 : vector<16x8xf32> to vector<8x2x8xf32>
    %26 = vector.extract_strided_slice %19 {offsets = [0, 64], sizes = [16, 8], strides = [1, 1]} : vector<16x96xf32> to vector<16x8xf32>
    %27 = vector.shape_cast %26 : vector<16x8xf32> to vector<8x2x8xf32>
    %28 = arith.truncf %23 : vector<8x2x8xf32> to vector<8x2x8xbf16>
    %29 = arith.truncf %25 : vector<8x2x8xf32> to vector<8x2x8xbf16>
    "tpu.trace_start"() <{level = 10 : i32, message = "tqd,tkd->tqk"}> : () -> ()
    %cst_12 = arith.constant dense<0.000000e+00> : vector<8x2x2xf32>
    %30 = tpu.matmul %28, %29, %cst_12 {dimension_numbers = #tpu.dot_dimension_numbers<[2], [2], [1], [1], [0, 0, 0, 1, 1, 1], [0], [0]>} : vector<8x2x8xbf16>, vector<8x2x8xbf16>, vector<8x2x2xf32> -> vector<8x2x2xf32>
    "tpu.trace_stop"() : () -> ()
    %cst_13 = arith.constant dense<0xFF800000> : vector<8x2xf32>
    %31 = vector.multi_reduction <maximumf>, %30, %cst_13 [2] : vector<8x2x2xf32> to vector<8x2xf32>
    %32 = vector.shape_cast %31 : vector<8x2xf32> to vector<8x2x1xf32>
    %33 = vector.broadcast %32 : vector<8x2x1xf32> to vector<8x2x2xf32>
    %34 = arith.subf %30, %33 : vector<8x2x2xf32>
    %35 = math.exp %34 : vector<8x2x2xf32>
    %cst_14 = arith.constant dense<0.000000e+00> : vector<8x2xf32>
    %36 = vector.multi_reduction <add>, %35, %cst_14 [2] : vector<8x2x2xf32> to vector<8x2xf32>
    %37 = vector.shape_cast %36 : vector<8x2xf32> to vector<8x2x1xf32>
    %38 = tpu.reciprocal %37 {approx = true} : vector<8x2x1xf32> -> vector<8x2x1xf32>
    %39 = vector.broadcast %38 : vector<8x2x1xf32> to vector<8x2x2xf32>
    %40 = arith.mulf %35, %39 : vector<8x2x2xf32>
    %41 = arith.truncf %40 : vector<8x2x2xf32> to vector<8x2x2xbf16>
    %42 = arith.truncf %27 : vector<8x2x8xf32> to vector<8x2x8xbf16>
    "tpu.trace_start"() <{level = 10 : i32, message = "tqk,tkd->tqd"}> : () -> ()
    %cst_15 = arith.constant dense<0.000000e+00> : vector<8x2x8xf32>
    %43 = tpu.matmul %41, %42, %cst_15 {dimension_numbers = #tpu.dot_dimension_numbers<[2], [1], [1], [2], [0, 0, 0, 1, 1, 2], [0], [0]>} : vector<8x2x2xbf16>, vector<8x2x8xbf16>, vector<8x2x8xf32> -> vector<8x2x8xf32>
    "tpu.trace_stop"() : () -> ()
    %44 = vector.shape_cast %43 : vector<8x2x8xf32> to vector<16x8xf32>
    %45 = vector.extract_strided_slice %19 {offsets = [0, 8], sizes = [16, 8], strides = [1, 1]} : vector<16x96xf32> to vector<16x8xf32>
    %cst_16 = arith.constant 0.353553385 : f32
    %46 = vector.broadcast %cst_16 : f32 to vector<16x8xf32>
    %47 = arith.mulf %45, %46 : vector<16x8xf32>
    %48 = vector.shape_cast %47 : vector<16x8xf32> to vector<8x2x8xf32>
    %49 = vector.extract_strided_slice %19 {offsets = [0, 40], sizes = [16, 8], strides = [1, 1]} : vector<16x96xf32> to vector<16x8xf32>
    %50 = vector.shape_cast %49 : vector<16x8xf32> to vector<8x2x8xf32>
    %51 = vector.extract_strided_slice %19 {offsets = [0, 72], sizes = [16, 8], strides = [1, 1]} : vector<16x96xf32> to vector<16x8xf32>
    %52 = vector.shape_cast %51 : vector<16x8xf32> to vector<8x2x8xf32>
    %53 = arith.truncf %48 : vector<8x2x8xf32> to vector<8x2x8xbf16>
    %54 = arith.truncf %50 : vector<8x2x8xf32> to vector<8x2x8xbf16>
    "tpu.trace_start"() <{level = 10 : i32, message = "tqd,tkd->tqk"}> : () -> ()
    %cst_17 = arith.constant dense<0.000000e+00> : vector<8x2x2xf32>
    %55 = tpu.matmul %53, %54, %cst_17 {dimension_numbers = #tpu.dot_dimension_numbers<[2], [2], [1], [1], [0, 0, 0, 1, 1, 1], [0], [0]>} : vector<8x2x8xbf16>, vector<8x2x8xbf16>, vector<8x2x2xf32> -> vector<8x2x2xf32>
    "tpu.trace_stop"() : () -> ()
    %cst_18 = arith.constant dense<0xFF800000> : vector<8x2xf32>
    %56 = vector.multi_reduction <maximumf>, %55, %cst_18 [2] : vector<8x2x2xf32> to vector<8x2xf32>
    %57 = vector.shape_cast %56 : vector<8x2xf32> to vector<8x2x1xf32>
    %58 = vector.broadcast %57 : vector<8x2x1xf32> to vector<8x2x2xf32>
    %59 = arith.subf %55, %58 : vector<8x2x2xf32>
    %60 = math.exp %59 : vector<8x2x2xf32>
    %cst_19 = arith.constant dense<0.000000e+00> : vector<8x2xf32>
    %61 = vector.multi_reduction <add>, %60, %cst_19 [2] : vector<8x2x2xf32> to vector<8x2xf32>
    %62 = vector.shape_cast %61 : vector<8x2xf32> to vector<8x2x1xf32>
    %63 = tpu.reciprocal %62 {approx = true} : vector<8x2x1xf32> -> vector<8x2x1xf32>
    %64 = vector.broadcast %63 : vector<8x2x1xf32> to vector<8x2x2xf32>
    %65 = arith.mulf %60, %64 : vector<8x2x2xf32>
    %66 = arith.truncf %65 : vector<8x2x2xf32> to vector<8x2x2xbf16>
    %67 = arith.truncf %52 : vector<8x2x8xf32> to vector<8x2x8xbf16>
    "tpu.trace_start"() <{level = 10 : i32, message = "tqk,tkd->tqd"}> : () -> ()
    %cst_20 = arith.constant dense<0.000000e+00> : vector<8x2x8xf32>
    %68 = tpu.matmul %66, %67, %cst_20 {dimension_numbers = #tpu.dot_dimension_numbers<[2], [1], [1], [2], [0, 0, 0, 1, 1, 2], [0], [0]>} : vector<8x2x2xbf16>, vector<8x2x8xbf16>, vector<8x2x8xf32> -> vector<8x2x8xf32>
    "tpu.trace_stop"() : () -> ()
    %69 = vector.shape_cast %68 : vector<8x2x8xf32> to vector<16x8xf32>
    %70 = vector.extract_strided_slice %19 {offsets = [0, 16], sizes = [16, 8], strides = [1, 1]} : vector<16x96xf32> to vector<16x8xf32>
    %cst_21 = arith.constant 0.353553385 : f32
    %71 = vector.broadcast %cst_21 : f32 to vector<16x8xf32>
    %72 = arith.mulf %70, %71 : vector<16x8xf32>
    %73 = vector.shape_cast %72 : vector<16x8xf32> to vector<8x2x8xf32>
    %74 = vector.extract_strided_slice %19 {offsets = [0, 48], sizes = [16, 8], strides = [1, 1]} : vector<16x96xf32> to vector<16x8xf32>
    %75 = vector.shape_cast %74 : vector<16x8xf32> to vector<8x2x8xf32>
    %76 = vector.extract_strided_slice %19 {offsets = [0, 80], sizes = [16, 8], strides = [1, 1]} : vector<16x96xf32> to vector<16x8xf32>
    %77 = vector.shape_cast %76 : vector<16x8xf32> to vector<8x2x8xf32>
    %78 = arith.truncf %73 : vector<8x2x8xf32> to vector<8x2x8xbf16>
    %79 = arith.truncf %75 : vector<8x2x8xf32> to vector<8x2x8xbf16>
    "tpu.trace_start"() <{level = 10 : i32, message = "tqd,tkd->tqk"}> : () -> ()
    %cst_22 = arith.constant dense<0.000000e+00> : vector<8x2x2xf32>
    %80 = tpu.matmul %78, %79, %cst_22 {dimension_numbers = #tpu.dot_dimension_numbers<[2], [2], [1], [1], [0, 0, 0, 1, 1, 1], [0], [0]>} : vector<8x2x8xbf16>, vector<8x2x8xbf16>, vector<8x2x2xf32> -> vector<8x2x2xf32>
    "tpu.trace_stop"() : () -> ()
    %cst_23 = arith.constant dense<0xFF800000> : vector<8x2xf32>
    %81 = vector.multi_reduction <maximumf>, %80, %cst_23 [2] : vector<8x2x2xf32> to vector<8x2xf32>
    %82 = vector.shape_cast %81 : vector<8x2xf32> to vector<8x2x1xf32>
    %83 = vector.broadcast %82 : vector<8x2x1xf32> to vector<8x2x2xf32>
    %84 = arith.subf %80, %83 : vector<8x2x2xf32>
    %85 = math.exp %84 : vector<8x2x2xf32>
    %cst_24 = arith.constant dense<0.000000e+00> : vector<8x2xf32>
    %86 = vector.multi_reduction <add>, %85, %cst_24 [2] : vector<8x2x2xf32> to vector<8x2xf32>
    %87 = vector.shape_cast %86 : vector<8x2xf32> to vector<8x2x1xf32>
    %88 = tpu.reciprocal %87 {approx = true} : vector<8x2x1xf32> -> vector<8x2x1xf32>
    %89 = vector.broadcast %88 : vector<8x2x1xf32> to vector<8x2x2xf32>
    %90 = arith.mulf %85, %89 : vector<8x2x2xf32>
    %91 = arith.truncf %90 : vector<8x2x2xf32> to vector<8x2x2xbf16>
    %92 = arith.truncf %77 : vector<8x2x8xf32> to vector<8x2x8xbf16>
    "tpu.trace_start"() <{level = 10 : i32, message = "tqk,tkd->tqd"}> : () -> ()
    %cst_25 = arith.constant dense<0.000000e+00> : vector<8x2x8xf32>
    %93 = tpu.matmul %91, %92, %cst_25 {dimension_numbers = #tpu.dot_dimension_numbers<[2], [1], [1], [2], [0, 0, 0, 1, 1, 2], [0], [0]>} : vector<8x2x2xbf16>, vector<8x2x8xbf16>, vector<8x2x8xf32> -> vector<8x2x8xf32>
    "tpu.trace_stop"() : () -> ()
    %94 = vector.shape_cast %93 : vector<8x2x8xf32> to vector<16x8xf32>
    %95 = vector.extract_strided_slice %19 {offsets = [0, 24], sizes = [16, 8], strides = [1, 1]} : vector<16x96xf32> to vector<16x8xf32>
    %cst_26 = arith.constant 0.353553385 : f32
    %96 = vector.broadcast %cst_26 : f32 to vector<16x8xf32>
    %97 = arith.mulf %95, %96 : vector<16x8xf32>
    %98 = vector.shape_cast %97 : vector<16x8xf32> to vector<8x2x8xf32>
    %99 = vector.extract_strided_slice %19 {offsets = [0, 56], sizes = [16, 8], strides = [1, 1]} : vector<16x96xf32> to vector<16x8xf32>
    %100 = vector.shape_cast %99 : vector<16x8xf32> to vector<8x2x8xf32>
    %101 = vector.extract_strided_slice %19 {offsets = [0, 88], sizes = [16, 8], strides = [1, 1]} : vector<16x96xf32> to vector<16x8xf32>
    %102 = vector.shape_cast %101 : vector<16x8xf32> to vector<8x2x8xf32>
    %103 = arith.truncf %98 : vector<8x2x8xf32> to vector<8x2x8xbf16>
    %104 = arith.truncf %100 : vector<8x2x8xf32> to vector<8x2x8xbf16>
    "tpu.trace_start"() <{level = 10 : i32, message = "tqd,tkd->tqk"}> : () -> ()
    %cst_27 = arith.constant dense<0.000000e+00> : vector<8x2x2xf32>
    %105 = tpu.matmul %103, %104, %cst_27 {dimension_numbers = #tpu.dot_dimension_numbers<[2], [2], [1], [1], [0, 0, 0, 1, 1, 1], [0], [0]>} : vector<8x2x8xbf16>, vector<8x2x8xbf16>, vector<8x2x2xf32> -> vector<8x2x2xf32>
    "tpu.trace_stop"() : () -> ()
    %cst_28 = arith.constant dense<0xFF800000> : vector<8x2xf32>
    %106 = vector.multi_reduction <maximumf>, %105, %cst_28 [2] : vector<8x2x2xf32> to vector<8x2xf32>
    %107 = vector.shape_cast %106 : vector<8x2xf32> to vector<8x2x1xf32>
    %108 = vector.broadcast %107 : vector<8x2x1xf32> to vector<8x2x2xf32>
    %109 = arith.subf %105, %108 : vector<8x2x2xf32>
    %110 = math.exp %109 : vector<8x2x2xf32>
    %cst_29 = arith.constant dense<0.000000e+00> : vector<8x2xf32>
    %111 = vector.multi_reduction <add>, %110, %cst_29 [2] : vector<8x2x2xf32> to vector<8x2xf32>
    %112 = vector.shape_cast %111 : vector<8x2xf32> to vector<8x2x1xf32>
    %113 = tpu.reciprocal %112 {approx = true} : vector<8x2x1xf32> -> vector<8x2x1xf32>
    %114 = vector.broadcast %113 : vector<8x2x1xf32> to vector<8x2x2xf32>
    %115 = arith.mulf %110, %114 : vector<8x2x2xf32>
    %116 = arith.truncf %115 : vector<8x2x2xf32> to vector<8x2x2xbf16>
    %117 = arith.truncf %102 : vector<8x2x8xf32> to vector<8x2x8xbf16>
    "tpu.trace_start"() <{level = 10 : i32, message = "tqk,tkd->tqd"}> : () -> ()
    %cst_30 = arith.constant dense<0.000000e+00> : vector<8x2x8xf32>
    %118 = tpu.matmul %116, %117, %cst_30 {dimension_numbers = #tpu.dot_dimension_numbers<[2], [1], [1], [2], [0, 0, 0, 1, 1, 2], [0], [0]>} : vector<8x2x2xbf16>, vector<8x2x8xbf16>, vector<8x2x8xf32> -> vector<8x2x8xf32>
    "tpu.trace_stop"() : () -> ()
    %119 = vector.shape_cast %118 : vector<8x2x8xf32> to vector<16x8xf32>
    %120 = tpu.concatenate %44, %69, %94, %119 in 1 : vector<16x8xf32>, vector<16x8xf32>, vector<16x8xf32>, vector<16x8xf32> -> vector<16x32xf32>
    %121 = arith.truncf %120 : vector<16x32xf32> to vector<16x32xbf16>
    %c0_31 = arith.constant 0 : index
    %c0_32 = arith.constant 0 : index
    %c0_33 = arith.constant 0 : index
    %122 = vector.load %arg6[%c0_31, %c0_32, %c0_33] : memref<1x32x32xbf16, #tpu.memory_space<vmem>>, vector<1x32x32xbf16>
    %123 = vector.shape_cast %122 : vector<1x32x32xbf16> to vector<32x32xbf16>
    %cst_34 = arith.constant dense<0.000000e+00> : vector<16x32xf32>
    %124 = tpu.matmul %121, %123, %cst_34 {dimension_numbers = #tpu.dot_dimension_numbers<[1], [0], [0], [1], [0, 0, 1, 1], [], []>} : vector<16x32xbf16>, vector<32x32xbf16>, vector<16x32xf32> -> vector<16x32xf32>
    %125 = vector.broadcast %6 : vector<1x32xf32> to vector<16x32xf32>
    %126 = arith.addf %124, %125 : vector<16x32xf32>
    %127 = arith.addf %3, %126 : vector<16x32xf32>
    %cst_35 = arith.constant dense<0.000000e+00> : vector<16xf32>
    %128 = vector.multi_reduction <add>, %127, %cst_35 [1] : vector<16x32xf32> to vector<16xf32>
    %129 = vector.shape_cast %128 : vector<16xf32> to vector<16x1xf32>
    %cst_36 = arith.constant 3.200000e+01 : f32
    %130 = vector.broadcast %cst_36 : f32 to vector<16x1xf32>
    %131 = arith.divf %129, %130 : vector<16x1xf32>
    %132 = vector.broadcast %131 : vector<16x1xf32> to vector<16x32xf32>
    %133 = arith.subf %127, %132 : vector<16x32xf32>
    %134 = arith.mulf %133, %133 : vector<16x32xf32>
    %cst_37 = arith.constant dense<0.000000e+00> : vector<16xf32>
    %135 = vector.multi_reduction <add>, %134, %cst_37 [1] : vector<16x32xf32> to vector<16xf32>
    %136 = vector.shape_cast %135 : vector<16xf32> to vector<16x1xf32>
    %cst_38 = arith.constant 3.200000e+01 : f32
    %137 = vector.broadcast %cst_38 : f32 to vector<16x1xf32>
    %138 = arith.divf %136, %137 : vector<16x1xf32>
    %139 = vector.broadcast %131 : vector<16x1xf32> to vector<16x32xf32>
    %140 = arith.subf %127, %139 : vector<16x32xf32>
    %cst_39 = arith.constant 9.99999974E-6 : f32
    %141 = vector.broadcast %cst_39 : f32 to vector<16x1xf32>
    %142 = arith.addf %138, %141 : vector<16x1xf32>
    %143 = math.rsqrt %142 : vector<16x1xf32>
    %144 = vector.broadcast %143 : vector<16x1xf32> to vector<16x32xf32>
    %145 = arith.mulf %140, %144 : vector<16x32xf32>
    %146 = vector.broadcast %7 : vector<1x32xf32> to vector<16x32xf32>
    %147 = arith.mulf %145, %146 : vector<16x32xf32>
    %148 = vector.broadcast %8 : vector<1x32xf32> to vector<16x32xf32>
    %149 = arith.addf %147, %148 : vector<16x32xf32>
    %150 = arith.truncf %149 : vector<16x32xf32> to vector<16x32xbf16>
    %c0_40 = arith.constant 0 : index
    %c0_41 = arith.constant 0 : index
    %c0_42 = arith.constant 0 : index
    %151 = vector.load %arg7[%c0_40, %c0_41, %c0_42] : memref<1x32x64xbf16, #tpu.memory_space<vmem>>, vector<1x32x64xbf16>
    %152 = vector.shape_cast %151 : vector<1x32x64xbf16> to vector<32x64xbf16>
    %cst_43 = arith.constant dense<0.000000e+00> : vector<16x64xf32>
    %153 = tpu.matmul %150, %152, %cst_43 {dimension_numbers = #tpu.dot_dimension_numbers<[1], [0], [0], [1], [0, 0, 1, 1], [], []>} : vector<16x32xbf16>, vector<32x64xbf16>, vector<16x64xf32> -> vector<16x64xf32>
    %c0_44 = arith.constant 0 : index
    %c0_45 = arith.constant 0 : index
    %c0_46 = arith.constant 0 : index
    %154 = vector.load %arg11[%c0_44, %c0_45, %c0_46] : memref<1x1x64xf32, #tpu.memory_space<vmem>>, vector<1x1x64xf32>
    %155 = vector.shape_cast %154 : vector<1x1x64xf32> to vector<1x64xf32>
    %156 = vector.broadcast %155 : vector<1x64xf32> to vector<16x64xf32>
    %157 = arith.addf %153, %156 : vector<16x64xf32>
    %cst_47 = arith.constant 0.000000e+00 : f32
    %158 = vector.broadcast %cst_47 : f32 to vector<16x64xf32>
    %159 = arith.maximumf %157, %158 : vector<16x64xf32>
    %160 = arith.truncf %159 : vector<16x64xf32> to vector<16x64xbf16>
    %c0_48 = arith.constant 0 : index
    %c0_49 = arith.constant 0 : index
    %c0_50 = arith.constant 0 : index
    %161 = vector.load %arg8[%c0_48, %c0_49, %c0_50] : memref<1x64x32xbf16, #tpu.memory_space<vmem>>, vector<1x64x32xbf16>
    %162 = vector.shape_cast %161 : vector<1x64x32xbf16> to vector<64x32xbf16>
    %cst_51 = arith.constant dense<0.000000e+00> : vector<16x32xf32>
    %163 = tpu.matmul %160, %162, %cst_51 {dimension_numbers = #tpu.dot_dimension_numbers<[1], [0], [0], [1], [0, 0, 1, 1], [], []>} : vector<16x64xbf16>, vector<64x32xbf16>, vector<16x32xf32> -> vector<16x32xf32>
    %164 = vector.broadcast %9 : vector<1x32xf32> to vector<16x32xf32>
    %165 = arith.addf %163, %164 : vector<16x32xf32>
    %166 = arith.addf %149, %165 : vector<16x32xf32>
    %cst_52 = arith.constant dense<0.000000e+00> : vector<16xf32>
    %167 = vector.multi_reduction <add>, %166, %cst_52 [1] : vector<16x32xf32> to vector<16xf32>
    %168 = vector.shape_cast %167 : vector<16xf32> to vector<16x1xf32>
    %cst_53 = arith.constant 3.200000e+01 : f32
    %169 = vector.broadcast %cst_53 : f32 to vector<16x1xf32>
    %170 = arith.divf %168, %169 : vector<16x1xf32>
    %171 = vector.broadcast %170 : vector<16x1xf32> to vector<16x32xf32>
    %172 = arith.subf %166, %171 : vector<16x32xf32>
    %173 = arith.mulf %172, %172 : vector<16x32xf32>
    %cst_54 = arith.constant dense<0.000000e+00> : vector<16xf32>
    %174 = vector.multi_reduction <add>, %173, %cst_54 [1] : vector<16x32xf32> to vector<16xf32>
    %175 = vector.shape_cast %174 : vector<16xf32> to vector<16x1xf32>
    %cst_55 = arith.constant 3.200000e+01 : f32
    %176 = vector.broadcast %cst_55 : f32 to vector<16x1xf32>
    %177 = arith.divf %175, %176 : vector<16x1xf32>
    %178 = vector.broadcast %170 : vector<16x1xf32> to vector<16x32xf32>
    %179 = arith.subf %166, %178 : vector<16x32xf32>
    %cst_56 = arith.constant 9.99999974E-6 : f32
    %180 = vector.broadcast %cst_56 : f32 to vector<16x1xf32>
    %181 = arith.addf %177, %180 : vector<16x1xf32>
    %182 = math.rsqrt %181 : vector<16x1xf32>
    %183 = vector.broadcast %182 : vector<16x1xf32> to vector<16x32xf32>
    %184 = arith.mulf %179, %183 : vector<16x32xf32>
    %185 = vector.broadcast %10 : vector<1x32xf32> to vector<16x32xf32>
    %186 = arith.mulf %184, %185 : vector<16x32xf32>
    %187 = vector.broadcast %11 : vector<1x32xf32> to vector<16x32xf32>
    %188 = arith.addf %186, %187 : vector<16x32xf32>
    %c0_57 = arith.constant 0 : index
    %c0_58 = arith.constant 0 : index
    %189 = vector.load %arg13[%c0_57, %c0_58] : memref<16x32xf32, #tpu.memory_space<vmem>>, vector<16x32xf32>
    tpu.vector_store %arg13[%c0_57, %c0_58], %188 {strides = array<i32>} : memref<16x32xf32, #tpu.memory_space<vmem>>, vector<16x32xf32>,
    %c1_i32 = arith.constant 1 : i32
    %190 = arith.cmpi eq, %arg1, %c1_i32 : i32
    %191 = arith.extui %190 : i1 to i32
    %c0_i32_59 = arith.constant 0 : i32
    %192 = arith.cmpi ne, %191, %c0_i32_59 : i32
    scf.if %192 {
      %193 = vector.shape_cast %188 : vector<16x32xf32> to vector<8x2x32xf32>
      %c0_60 = arith.constant 0 : index
      %c0_61 = arith.constant 0 : index
      %c0_62 = arith.constant 0 : index
      %194 = vector.load %arg12[%c0_60, %c0_61, %c0_62] : memref<8x2x32xf32, #tpu.memory_space<vmem>>, vector<8x2x32xf32>
      tpu.vector_store %arg12[%c0_60, %c0_61, %c0_62], %193 {strides = array<i32>} : memref<8x2x32xf32, #tpu.memory_space<vmem>>, vector<8x2x32xf32>,
    } else {
    }
    return
  }
  func.func @transform_0(%arg0: i32, %arg1: i32) -> (i32, i32, i32) {
    %c0_i32 = arith.constant 0 : i32
    %c0_i32_0 = arith.constant 0 : i32
    %c0_i32_1 = arith.constant 0 : i32
    return %arg0, %c0_i32, %c0_i32_0 : i32, i32, i32
  }
  func.func @transform_1(%arg0: i32, %arg1: i32) -> (i32, i32, i32) {
    %c0_i32 = arith.constant 0 : i32
    %c0_i32_0 = arith.constant 0 : i32
    %c0_i32_1 = arith.constant 0 : i32
    return %arg0, %c0_i32, %c0_i32_0 : i32, i32, i32
  }
  func.func @transform_2(%arg0: i32, %arg1: i32) -> (i32, i32) {
    %c0_i32 = arith.constant 0 : i32
    %c0_i32_0 = arith.constant 0 : i32
    %c0_i32_1 = arith.constant 0 : i32
    return %c0_i32, %c0_i32_0 : i32, i32
  }
  func.func @transform_3(%arg0: i32, %arg1: i32) -> (i32, i32, i32) {
    %c0_i32 = arith.constant 0 : i32
    %c0_i32_0 = arith.constant 0 : i32
    %c0_i32_1 = arith.constant 0 : i32
    return %arg1, %c0_i32, %c0_i32_0 : i32, i32, i32
  }
  func.func @transform_4(%arg0: i32, %arg1: i32) -> (i32, i32, i32) {
    %c0_i32 = arith.constant 0 : i32
    %c0_i32_0 = arith.constant 0 : i32
    %c0_i32_1 = arith.constant 0 : i32
    return %arg1, %c0_i32, %c0_i32_0 : i32, i32, i32
  }
  func.func @transform_5(%arg0: i32, %arg1: i32) -> (i32, i32, i32) {
    %c0_i32 = arith.constant 0 : i32
    %c0_i32_0 = arith.constant 0 : i32
    %c0_i32_1 = arith.constant 0 : i32
    return %arg1, %c0_i32, %c0_i32_0 : i32, i32, i32
  }
  func.func @transform_6(%arg0: i32, %arg1: i32) -> (i32, i32, i32) {
    %c0_i32 = arith.constant 0 : i32
    %c0_i32_0 = arith.constant 0 : i32
    %c0_i32_1 = arith.constant 0 : i32
    return %arg1, %c0_i32, %c0_i32_0 : i32, i32, i32
  }
  func.func @transform_7(%arg0: i32, %arg1: i32) -> (i32, i32, i32) {
    %c0_i32 = arith.constant 0 : i32
    %c0_i32_0 = arith.constant 0 : i32
    %c0_i32_1 = arith.constant 0 : i32
    return %arg1, %c0_i32, %c0_i32_0 : i32, i32, i32
  }
  func.func @transform_8(%arg0: i32, %arg1: i32) -> (i32, i32, i32) {
    %c0_i32 = arith.constant 0 : i32
    %c0_i32_0 = arith.constant 0 : i32
    %c0_i32_1 = arith.constant 0 : i32
    return %arg1, %c0_i32, %c0_i32_0 : i32, i32, i32
  }
  func.func @transform_9(%arg0: i32, %arg1: i32) -> (i32, i32, i32) {
    %c0_i32 = arith.constant 0 : i32
    %c0_i32_0 = arith.constant 0 : i32
    %c0_i32_1 = arith.constant 0 : i32
    return %arg1, %c0_i32, %c0_i32_0 : i32, i32, i32
  }
  func.func @transform_10(%arg0: i32, %arg1: i32) -> (i32, i32, i32) {
    %c0_i32 = arith.constant 0 : i32
    %c0_i32_0 = arith.constant 0 : i32
    %c0_i32_1 = arith.constant 0 : i32
    return %arg0, %c0_i32, %c0_i32_0 : i32, i32, i32
  }
}

</mosaic_0001>

<bundles_post_ra>
// kernel: tpu_custom_call.1
= control target key start
LH: loop header
LB: loop body
LE: loop exit
PB: predicated region body
PF: predicated region fallthrough
CT: control target
= control target key end

     0   :  { %s7193_s0 = inlined_call_operand.vmem [shape: bf16[8,2,73], index: 0, kind: input, shape index: {}]   ;;  %s7194_s1 = inlined_call_operand.vmem [shape: f32[8,2,32], index: 1, kind: input, shape index: {}]   ;;  %s7195_s2 = inlined_call_operand.vmem [shape: bf16[73,32], index: 2, kind: input, shape index: {}]   ;;  %s7196_s3 = inlined_call_operand.vmem [shape: bf16[2,32,96], index: 3, kind: input, shape index: {}]   ;;  %s7197_s4 = inlined_call_operand.vmem [shape: bf16[2,32,32], index: 4, kind: input, shape index: {}]   ;;  %s7198_s5 = inlined_call_operand.vmem [shape: bf16[2,32,64], index: 5, kind: input, shape index: {}]   ;;  %s7199_s6 = inlined_call_operand.vmem [shape: bf16[2,64,32], index: 6, kind: input, shape index: {}]   ;;  %s7200_s7 = inlined_call_operand.vmem [shape: f32[2,1,96], index: 7, kind: input, shape index: {}]   ;;  %s7201_s8 = inlined_call_operand.vmem [shape: f32[2,6,32], index: 8, kind: input, shape index: {}]   ;;  %s7202_s9 = inlined_call_operand.vmem [shape: f32[2,1,64], index: 9, kind: input, shape index: {}]   ;;  %s7203_s10 = inlined_call_operand.hbm [shape: f32[8,2,32], index: 10, kind: output, shape index: {}]  }
   0x1   :  { %7205 = sst [smem:[#allocation8_spill]] %s7196_s3 }
   0x2   :  { %7206 = sst [smem:[#allocation9_spill]] %s7197_s4 }
   0x3   :  { %15 = vsyncpa [#allocation4], 0  ;;  %s6186_s13 = smov 0   ;;  %s6188_s14 = smov 0  }
   0x4   :  { %s6190_s15 = smov 0  }
   0x5 LB: > { %7207 = sst [smem:[#allocation6_spill]] %s6100_s14  ;;  %s30_s17 = sadd.s32 1, %s6100_s14  ;;  %s6104_s15 = sphi %s6190_s15, %s21_s15   ;;  %s6100_s14 = sphi %s6188_s14, %s7214_s14   ;;  %s6096_s13 = sphi %s6186_s13, %s7213_s13  }
   0x6   : > { %p31_p0 = scmp.ge.s32.totalorder %s30_s17, 2  ;;  %p5141_p1 = scmp.ge.s32.totalorder %s6104_s15, 1 }
   0x7   : > { %p401_p2 = scmp.lt.s32.totalorder %s6104_s15, 3 }
   0x8   : > { %s7216_s17 = smov (%p31_p0, %s30_s17), 0 }
   0x9   : > { %7208 = sst [smem:[#allocation7_spill]] %s7216_s17  ;;  %p402_p3 = pnand %p5141_p1, %p401_p2 }
   0xa   : > { %p479_p4 = scmp.lt.s32.totalorder (!%p402_p3), %s6096_s13, 1  ;;  %s7209_s3 = sld [smem:[#allocation8_spill]] (!%p402_p3) }
   0xb   : > { %405 = sbr.rel (%p402_p3) target bundleno = 4681 (0x1249), region = 60  ;;  %s7210_s4 = sld [smem:[#allocation9_spill]] (!%p402_p3) }
   0xc   : > { %p5151_p5 = scmp.ne.s32.totalorder (!%p402_p3), %s6096_s13, 0 }
  0x12   : > { %s6209_s18 = scalar_select %p479_p4, %s6096_s13, 1 }
  0x13   : > { %514 = sbr.rel (%p5151_p5) target bundleno = 257 (0x101), region = 64  ;;  %v5884_v0 = vld [vmem:[%s7195_s2] sm:$0xff] (!%p5151_p5)   ;;  %v6106_v1 = vmov (!%p5151_p5), 0.0   ;;  %v5885_v2 = vld [vmem:[%s7195_s2 + $0x8] sm:$0xff] (!%p5151_p5)   ;;  %vm675_vm0 = vcmask (!%p5151_p5), 1043456   ;;  %v5886_v3 = vld [vmem:[%s7195_s2 + $0x10] sm:$0xff] (!%p5151_p5)   ;;  %v556_v6 = vlaneseq (!%p5151_p5) }
  0x14   : > { %s5243_s19 = sshll.u32 %s6209_s18, 4  ;;  %s5246_s20 = sshll.u32 %s6209_s18, 5  ;;  %5395 = vmatprep.subr.bf16.mxu0 (!%p5151_p5), %v6106_v1  ;;  %vm676_vm1 = vcmask (!%p5151_p5), 1044480   ;;  %v6107_v4 = vmov (!%p5151_p5), 65535   ;;  %vm6108_vm2 = vmmov (!%p5151_p5), 0   ;;  %v5887_v18 = vld [vmem:[%s7195_s2 + $0x18] sm:$0xff] (!%p5151_p5)  }
  0x15   : > { %s6216_s23 = scalar_lea.vmem %s7209_s3, %s5243_s19  ;;  %s6221_s26 = scalar_lea.vmem %s7210_s4, %s5243_s19  ;;  %5396 = vmatpush3.bf16.msra.mxu0 (!%p5151_p5), %v5884_v0  ;;  %v677_v5 = vsel (!%p5151_p5), %vm675_vm0, 4294967295, %v6107_v4  ;;  %5405 = vmatprep.mubr.msk.bf16.mxu0 (!%p5151_p5), %vm6108_vm2, %v6106_v1  ;;  %v515_v7 = vld [vmem:[%s7193_s0] sm:$0x1] (!%p5151_p5)  ;;  %v516_v8 = vld [vmem:[%s7193_s0 + $0x1] sm:$0x1] (!%p5151_p5)  ;;  %v557_v17 = vshrl.u32 (!%p5151_p5), %v556_v6, 7 }
  0x16   : > { %s6226_s29 = scalar_lea.vmem %s7198_s5, %s5243_s19  ;;  %s6231_s12 = scalar_lea.vmem %s7199_s6, %s5246_s20  ;;  %5397 = vmatprep.subr.bf16.mxu0 (!%p5151_p5), %v6106_v1  ;;  %v517_v9 = vld [vmem:[%s7193_s0 + $0x2] sm:$0x1] (!%p5151_p5)  ;;  %v518_v10 = vld [vmem:[%s7193_s0 + $0x3] sm:$0x1] (!%p5151_p5)  ;;  %v519_v11 = vld [vmem:[%s7193_s0 + $0x4] sm:$0x1] (!%p5151_p5)  ;;  %v549_v21 = vcombine.low (!%p5151_p5), %v515_v7, %v516_v8 }
  0x17   : > { %s501_s21 = scalar_lea.vmem %s7200_s7, %s6209_s18  ;;  %s5150_s22 = sshll.u32 %s6209_s18, 3  ;;  %v520_v12 = vld [vmem:[%s7193_s0 + $0x5] sm:$0x1] (!%p5151_p5)  ;;  %v521_v13 = vld [vmem:[%s7193_s0 + $0x6] sm:$0x1] (!%p5151_p5)  ;;  %v678_v20 = vsel (!%p5151_p5), %vm676_vm1, %v677_v5, 0  ;;  %v550_v22 = vcombine.low (!%p5151_p5), %v517_v9, %v518_v10 }
  0x18   : > { %s6241_s24 = scalar_lea.vmem %s7201_s8, %s5150_s22  ;;  %s508_s19 = scalar_lea.vmem %s7202_s9, %s6209_s18  ;;  %v522_v14 = vld [vmem:[%s7193_s0 + $0x7] sm:$0x1] (!%p5151_p5)  ;;  %v6109_v15 = vmov (!%p5151_p5), 1966171168   ;;  %v5888_v19 = vld [vmem:[%s7195_s2 + $0x20] sm:$0x1f] (!%p5151_p5)   ;;  %v551_v23 = vcombine.low (!%p5151_p5), %v519_v11, %v520_v12 }
  0x19   : > { %5398 = vmatpush3.bf16.msra.mxu0 (!%p5151_p5), %v5885_v2  ;;  %v554_v16 = vunpack.c.l.s4 (!%p5151_p5), %v6109_v15  ;;  %v552_v24 = vcombine.low (!%p5151_p5), %v521_v13, %v522_v14  ;;  %v680_v27 = vand.u32 (!%p5151_p5), %v5888_v19, %v678_v20  ;;  %vm671_vm3 = vcmask (!%p5151_p5), 596992   ;;  %v533_v39 = vld [vmem:[%s7194_s1] sm:$0x3] (!%p5151_p5)  ;;  %v534_v41 = vld [vmem:[%s7194_s1 + $0x2] sm:$0x3] (!%p5151_p5) }
  0x1a   : > { %5399 = vmatprep.subr.bf16.mxu0 %v6106_v1  ;;  %v6110_v37 = vmov 1983009808   ;;  %v535_v42 = vld [vmem:[%s7194_s1 + $0x4] sm:$0x3]  ;;  %v536_v43 = vld [vmem:[%s7194_s1 + $0x6] sm:$0x3]  ;;  %v635_v48 = vcombine.low %v533_v39, %v534_v41 }
  0x1b   : > { %v555_v25 = vunpack.c.0.s8 %v554_v16  ;;  %v638_v38 = vunpack.c.l.s4 %v6110_v37  ;;  %v537_v44 = vld [vmem:[%s7194_s1 + $0x8] sm:$0x3]  ;;  %v538_v45 = vld [vmem:[%s7194_s1 + $0xa] sm:$0x3]  ;;  %v539_v46 = vld [vmem:[%s7194_s1 + $0xc] sm:$0x3]  ;;  %v636_v49 = vcombine.low %v535_v42, %v536_v43 }
  0x1c   : > { %v540_v47 = vld [vmem:[%s7194_s1 + $0xe] sm:$0x3]  ;;  %v652_v51 = vcombine.low %v537_v44, %v538_v45  ;;  %vm723_vm4 = vcmask 261120  }
  0x1d   : > { %5400 = vmatpush3.bf16.msra.mxu0 %v5886_v3  ;;  %v558_v26 = vsub.s32 %v555_v25, %v557_v17  ;;  %v639_v40 = vunpack.c.0.s8 %v638_v38  ;;  %v653_v52 = vcombine.low %v539_v46, %v540_v47 }
  0x1e   : > { %5401 = vmatprep.subr.bf16.mxu0 %v6106_v1 }
  0x1f   : > { %v559_v28 = vrot.slane %v549_v21, %v558_v26  ;;  %v566_v29 = vrot.slane %v550_v22, %v558_v26  ;;  %v573_v30 = vrot.slane %v551_v23, %v558_v26  ;;  %v580_v31 = vrot.slane %v552_v24, %v558_v26 }
  0x20   : > { %v642_v50 = vsub.s32 %v639_v40, %v557_v17 }
  0x21   : > { %5402 = vmatpush3.bf16.msra.mxu0 %v5887_v18  ;;  %v581_v32 = vcombine.low %v559_v28, %v566_v29  ;;  %v582_v33 = vcombine.low %v573_v30, %v580_v31 }
  0x22   : > { %5403 = vmatprep.subr.bf16.mxu0 %v6106_v1  ;;  %v643_v53 = vrot.slane %v635_v48, %v642_v50  ;;  %v650_v54 = vrot.slane %v636_v49, %v642_v50  ;;  %v660_v55 = vrot.slane %v652_v51, %v642_v50  ;;  %v667_v56 = vrot.slane %v653_v52, %v642_v50 }
  0x23   : > { %v589_v34 = vrot.slane %v581_v32, %v558_v26  ;;  %v596_v35 = vrot.slane %v582_v33, %v558_v26 }
  0x24   : > { %v651_v57 = vcombine.low %v643_v53, %v650_v54  ;;  %v668_v58 = vcombine.low %v660_v55, %v667_v56 }
  0x25   : > { %5404 = vmatpush3.bf16.msra.mxu0 %v680_v27  ;;  %v597_v36 = vcombine.low %v589_v34, %v596_v35 }
  0x28   : > { %5406 = vmatmul.mubr.msk.bf16.vlgmr.msra.gmra.mrb[0].mxu0 %vm671_vm3, %v597_v36 }
  0xfb   : > { %v716_v59 = vpop.f32.mrb[0].mxu0 }
  0xfc   : > { %v717_v60 = vadd.f32 %v716_v59, %v651_v57  ;;  %v5407_v61 = vpop.f32.mrb[1].mxu0 }
  0xfd   : > { %v719_v62 = vpop.f32.mrb[2].mxu0 }
  0xfe   : > { %724 = vst.msk [vmem:[#allocation2] sm:$0xff] %vm723_vm4, %v717_v60  ;;  %v720_v63 = vadd.f32 %v719_v62, %v668_v58  ;;  %v5408_v0 = vpop.f32.mrb[3].mxu0 }
 0x100   : > { %725 = vst.msk [vmem:[#allocation2 + $0x8] sm:$0xff] %vm723_vm4, %v720_v63 }
 0x101 PF: > { %v5904_v1 = vld [vmem:[%s6216_s23] sm:$0xff]   ;;  %v6111_v2 = vmov 0.0   ;;  %v5905_v3 = vld [vmem:[%s6216_s23 + $0x8] sm:$0xff]   ;;  %vm6112_vm5 = vmmov 0   ;;  %vm753_vm6 = vcmask 261120   ;;  %v806_v9 = vlaneseq  ;;  %s6115_s28 = smov 64  }
 0x102   : > { %5409 = vmatprep.subr.bf16.mxu0 %v6111_v2  ;;  %5417 = vmatprep.subr.bf16.mxu1 %v6111_v2  ;;  %v6113_v7 = vmov 1983009808   ;;  %v5158_v12 = vld [vmem:[%s501_s21] ss:$0 sm:$0xff]  ;;  %s6114_s21 = smov 96   ;;  %vm907_vm7 = vcmask 64512  }
 0x103   : > { %5410 = vmatpush3.bf16.msra.mxu0 %v5904_v1  ;;  %5413 = vmatprep.mubr.msk.bf16.mxu0 %vm6112_vm5, %v6111_v2  ;;  %v804_v8 = vunpack.c.l.s4 %v6113_v7  ;;  %v6325_v11 = vshrl.u32 %v806_v9, 7  ;;  %vm1400_vm8 = vcmask 1040384   ;;  %vm1297_vm9 = vcmask 9216   ;;  %s6116_s30 = smov 88   ;;  %s6117_s11 = smov 120  }
 0x104   : > { %5411 = vmatprep.subr.bf16.mxu0 %v6111_v2  ;;  %5419 = vmatprep.mubr.msk.bf16.mxu1 %vm6112_vm5, %v6111_v2  ;;  %s6118_s22 = smov 56   ;;  %vm1396_vm10 = vcmask 15360   ;;  %s6119_s25 = smov 80   ;;  %vm4618_vm11 = vcmask 130048   ;;  %vm4621_vm12 = vcmask 195584   ;;  %vm4837_vm13 = vcmask 523264  }
 0x105   : > { %v726_v4 = vld [vmem:[#allocation2] sm:$0xff]  ;;  %v805_v10 = vunpack.c.0.s8 %v804_v8  ;;  %s6120_s27 = smov 112   ;;  %s6121_s20 = smov 48  }
 0x106   : > { %s6122_s16 = smov 72   ;;  %s6123_s17 = smov 104  }
 0x107   : > { %v727_v5 = vld [vmem:[#allocation2 + $0x8] sm:$0xff]  ;;  %5412 = vmatpush3.bf16.msra.mxu0 %v5905_v3  ;;  %v6333_v13 = vsub.s32 %v805_v10, %v6325_v11  ;;  %s6124_s3 = smov 40   ;;  %s6125_s14 = smov 16  }
 0x108   : > { %v729_v6 = vpack.c.bf16 %v727_v5, %v726_v4  ;;  %5423 = vmatprep.subr.bf16.mxu0 %v6111_v2  ;;  %s6126_s23 = smov 8   ;;  %s6127_s4 = smov 24  }
 0x109   : > { %p5238_p6 = scmp.ne.s32.totalorder %s6096_s13, 1 }
 0x10a   : > { %5414 = vmatmul.mubr.msk.bf16.vlgmr.msra.gmra.mrb[0].mxu0 %vm753_vm6, %v729_v6  ;;  %vm4972_vm14 = vcmask (!%p5238_p6), 254976  }
 0x10b   : > { %5425 = vmatprep.mubr.msk.bf16.mxu0 %vm6112_vm5, %v6111_v2 }
 0x1dd   : > { %v791_v14 = vpop.f32.mrb[0].mxu0 }
 0x1de   : > { %v792_v15 = vadd.f32 %v5158_v12, %v791_v14  ;;  %v5415_v16 = vpop.f32.mrb[1].mxu0 }
 0x1df   : > { %v794_v17 = vpop.f32.mrb[2].mxu0 }
 0x1e0   : > { %v846_v18 = vcombine.high %v792_v15, %v792_v15  ;;  %v853_v19 = vrot.slane %v792_v15, %v6333_v13  ;;  %v5416_v20 = vpop.f32.mrb[3].mxu0  ;;  %v795_v21 = vadd.f32 %v5158_v12, %v794_v17  ;;  %v798_v38 = vmul.f32 0.35355338, %v792_v15 }
 0x1e2   : > { %v860_v22 = vrot.slane %v846_v18, %v6333_v13  ;;  %v861_v23 = vcombine.high %v853_v19, %v853_v19  ;;  %v6337_v24 = vpack.c.bf16 %v853_v19, %v853_v19  ;;  %v863_v27 = vcombine.high %v795_v21, %v795_v21 }
 0x1e3   : > { %v870_v28 = vrot.slane %v795_v21, %v6333_v13  ;;  %v809_v41 = vrot.slane %v798_v38, %v6333_v13  ;;  %v802_v45 = vcombine.high %v798_v38, %v798_v38  ;;  %v799_v56 = vmul.f32 0.35355338, %v795_v21 }
 0x1e4   : > { %v862_v25 = vcombine.high %v860_v22, %v860_v22  ;;  %v6339_v26 = vpack.c.bf16 %v860_v22, %v860_v22  ;;  %905 = vrot.lane.b32.xlu0 %v6337_v24, %s6114_s21  ;;  %v6343_v29 = vpack.c.bf16 %v861_v23, %v861_v23  ;;  %v877_v31 = vrot.slane %v863_v27, %v6333_v13 }
 0x1e5   : > { %v878_v32 = vcombine.high %v870_v28, %v870_v28  ;;  %v6350_v33 = vpack.c.bf16 %v870_v28, %v870_v28  ;;  %v817_v46 = vcombine.high %v809_v41, %v809_v41  ;;  %v6375_v47 = vpack.c.bf16 %v809_v41, %v809_v41 }
 0x1e6   : > { %1004 = vrot.lane.b32.xlu1 %v6339_v26, %s6114_s21  ;;  %v6346_v30 = vpack.c.bf16 %v862_v25, %v862_v25  ;;  %v879_v34 = vcombine.high %v877_v31, %v877_v31  ;;  %v6356_v36 = vpack.c.bf16 %v877_v31, %v877_v31  ;;  %v816_v50 = vrot.slane %v802_v45, %v6333_v13 }
 0x1e7   : > { %v6353_v35 = vpack.c.bf16 %v878_v32, %v878_v32  ;;  %v6384_v51 = vpack.c.bf16 %v817_v46, %v817_v46  ;;  %v826_v60 = vrot.slane %v799_v56, %v6333_v13  ;;  %v819_v63 = vcombine.high %v799_v56, %v799_v56 }
 0x1e8   : > { %955 = vrot.lane.b32.xlu0 %v6343_v29, %s6114_s21  ;;  %v6359_v37 = vpack.c.bf16 %v879_v34, %v879_v34  ;;  %v818_v54 = vcombine.high %v816_v50, %v816_v50  ;;  %v6392_v55 = vpack.c.bf16 %v816_v50, %v816_v50 }
 0x1e9   : > { %v834_v0 = vcombine.high %v826_v60, %v826_v60  ;;  %v6409_v1 = vpack.c.bf16 %v826_v60, %v826_v60  ;;  %v833_v5 = vrot.slane %v819_v63, %v6333_v13 }
 0x1ea   : > { %1053 = vrot.lane.b32.xlu1 %v6346_v30, %s6114_s21  ;;  %v6400_v59 = vpack.c.bf16 %v818_v54, %v818_v54 }
 0x1eb   : > { %v6418_v6 = vpack.c.bf16 %v834_v0, %v834_v0  ;;  %v835_v9 = vcombine.high %v833_v5, %v833_v5  ;;  %v6426_v10 = vpack.c.bf16 %v833_v5, %v833_v5 }
 0x1ec   : > { %1102 = vrot.lane.b32.xlu0 %v6350_v33, %s6114_s21 }
 0x1ed   : > { %v6434_v15 = vpack.c.bf16 %v835_v9, %v835_v9 }
 0x1ee   : > { %1151 = vrot.lane.b32.xlu1 %v6353_v35, %s6114_s21 }
 0x1f0   : > { %1200 = vrot.lane.b32.xlu0 %v6356_v36, %s6114_s21 }
 0x1f2   : > { %1249 = vrot.lane.b32.xlu1 %v6359_v37, %s6114_s21 }
 0x1f4   : > { %1444 = vrot.lane.b32.xlu0 %v6343_v29, %s6115_s28 }
 0x1f6   : > { %1394 = vrot.lane.b32.xlu1 %v6337_v24, %s6115_s28 }
 0x1fa   : > { %1492 = vrot.lane.b32.xlu1 %v6339_v26, %s6115_s28 }
 0x1fe   : > { %1540 = vrot.lane.b32.xlu1 %v6346_v30, %s6115_s28 }
 0x256   : > { %v906_v39 = vpop.permute.xlu0 %905 }
 0x257   : > { %v912_v40 = vsel %vm907_vm7, %v906_v39, 0 }
 0x258   : > { %5418 = vmatpush3.bf16.xpose.msra.mxu1 %v912_v40  ;;  %v1005_v42 = vpop.permute.xlu1 %1004 }
 0x259   : > { %5429 = vmatprep.subr.bf16.mxu1 %v6111_v2  ;;  %v1010_v48 = vsel %vm907_vm7, %v1005_v42, 0 }
 0x25a   : > { %v956_v43 = vpop.permute.xlu0 %955 }
 0x25b   : > { %v961_v44 = vsel %vm907_vm7, %v956_v43, 0 }
 0x25c   : > { %5424 = vmatpush3.bf16.xpose.msra.mxu0 %v961_v44  ;;  %v1054_v49 = vpop.permute.xlu1 %1053 }
 0x25d   : > { %5435 = vmatprep.subr.bf16.mxu0 %v6111_v2  ;;  %v1059_v52 = vsel %vm907_vm7, %v1054_v49, 0 }
 0x25e   : > { %v1103_v53 = vpop.permute.xlu0 %1102 }
 0x25f   : > { %5420 = vmatmul.mubr.msk.bf16.vlgmr.msra.gmra.mrb[0].mxu1 %vm907_vm7, %v6375_v47  ;;  %v1108_v57 = vsel %vm907_vm7, %v1103_v53, 0 }
 0x260   : > { %5430 = vmatpush3.bf16.xpose.msra.mxu1 %v1010_v48  ;;  %5431 = vmatprep.mubr.msk.bf16.mxu1 %vm6112_vm5, %v6111_v2  ;;  %v1152_v58 = vpop.permute.xlu1 %1151 }
 0x261   : > { %5441 = vmatprep.subr.bf16.mxu1 %v6111_v2  ;;  %v1157_v61 = vsel %vm907_vm7, %v1152_v58, 0 }
 0x262   : > { %v1201_v62 = vpop.permute.xlu0 %1200 }
 0x263   : > { %5426 = vmatmul.mubr.msk.bf16.vlgmr.msra.gmra.mrb[4].mxu0 %vm907_vm7, %v6384_v51  ;;  %v1206_v4 = vsel %vm907_vm7, %v1201_v62, 0 }
 0x264   : > { %5436 = vmatpush3.bf16.xpose.msra.mxu0 %v1059_v52  ;;  %5437 = vmatprep.mubr.msk.bf16.mxu0 %vm6112_vm5, %v6111_v2  ;;  %v1250_v3 = vpop.permute.xlu1 %1249 }
 0x265   : > { %5447 = vmatprep.subr.bf16.mxu0 %v6111_v2  ;;  %v1255_v7 = vsel %vm907_vm7, %v1250_v3, 0 }
 0x266   : > { %v1445_v14 = vpop.permute.xlu0 %1444 }
 0x267   : > { %5432 = vmatmul.mubr.msk.bf16.vlgmr.msra.gmra.mrb[4].mxu1 %vm907_vm7, %v6392_v55  ;;  %v1450_v16 = vsel %vm1400_vm8, %v1445_v14, 0 }
 0x268   : > { %5442 = vmatpush3.bf16.xpose.msra.mxu1 %v1108_v57  ;;  %5443 = vmatprep.mubr.msk.bf16.mxu1 %vm6112_vm5, %v6111_v2  ;;  %v1395_v8 = vpop.permute.xlu1 %1394 }
 0x269   : > { %5453 = vmatprep.subr.bf16.mxu1 %v6111_v2  ;;  %v1402_v12 = vsel %vm1400_vm8, %v1395_v8, 0 }
 0x26b   : > { %5438 = vmatmul.mubr.msk.bf16.vlgmr.msra.gmra.mrb[8].mxu0 %vm907_vm7, %v6400_v59 }
 0x26c   : > { %5448 = vmatpush3.bf16.xpose.msra.mxu0 %v1157_v61  ;;  %5449 = vmatprep.mubr.msk.bf16.mxu0 %vm6112_vm5, %v6111_v2  ;;  %v6458_v8 = vpop.permute.xlu1 %1492 }
 0x26d   : > { %5459 = vmatprep.subr.bf16.mxu0 %v6111_v2 }
 0x26f   : > { %5444 = vmatmul.mubr.msk.bf16.vlgmr.msra.gmra.mrb[8].mxu1 %vm907_vm7, %v6409_v1 }
 0x270   : > { %5454 = vmatpush3.bf16.xpose.msra.mxu1 %v1206_v4  ;;  %5455 = vmatprep.mubr.msk.bf16.mxu1 %vm6112_vm5, %v6111_v2  ;;  %v6460_v9 = vpop.permute.xlu1 %1540 }
 0x271   : > { %5465 = vmatprep.subr.bf16.mxu1 %v6111_v2 }
 0x273   : > { %5450 = vmatmul.mubr.msk.bf16.vlgmr.msra.gmra.mrb[12].mxu0 %vm907_vm7, %v6418_v6 }
 0x274   : > { %5460 = vmatpush3.bf16.xpose.msra.mxu0 %v1255_v7  ;;  %5461 = vmatprep.mubr.msk.bf16.mxu0 %vm6112_vm5, %v6111_v2 }
 0x275   : > { %5471 = vmatprep.subr.bf16.mxu0 %v6111_v2 }
 0x277   : > { %5456 = vmatmul.mubr.msk.bf16.vlgmr.msra.gmra.mrb[12].mxu1 %vm907_vm7, %v6426_v10 }
 0x278   : > { %5466 = vmatpush3.bf16.msra.mxu1 %v1402_v12  ;;  %5467 = vmatprep.mubr.msk.bf16.mxu1 %vm6112_vm5, %v6111_v2 }
 0x279   : > { %5477 = vmatprep.subr.bf16.mxu1 %v6111_v2 }
 0x27b   : > { %5462 = vmatmul.mubr.msk.bf16.vlgmr.msra.gmra.mrb[16].mxu0 %vm907_vm7, %v6434_v15 }
 0x27c   : > { %5472 = vmatpush3.bf16.msra.mxu0 %v1450_v16  ;;  %5473 = vmatprep.mubr.msk.bf16.mxu0 %vm6112_vm5, %v6111_v2 }
 0x27d   : > { %5483 = vmatprep.subr.bf16.mxu0 %v6111_v2 }
 0x332   : > { %v948_v17 = vpop.f32.mrb[0].mxu1 }
 0x333   : > { %v5421_v18 = vpop.f32.mrb[1].mxu1  ;;  %v1298_v19 = vsel %vm1297_vm9, %v948_v17, -inf }
 0x334   : > { %v951_v20 = vpop.f32.mrb[2].mxu1  ;;  %1299 = vmax.xlane.f32.xlu0 %v1298_v19 }
 0x335   : > { %v5422_v21 = vpop.f32.mrb[3].mxu1 }
 0x336   : > { %v997_v22 = vpop.f32.mrb[4].mxu0 }
 0x337   : > { %v5427_v23 = vpop.f32.mrb[5].mxu0  ;;  %v1301_v25 = vsel %vm1297_vm9, %v997_v22, -inf }
 0x338   : > { %1302 = vmax.xlane.f32.xlu1 %v1301_v25  ;;  %v1000_v27 = vpop.f32.mrb[6].mxu0 }
 0x339   : > { %v5428_v28 = vpop.f32.mrb[7].mxu0 }
 0x33a   : > { %v1046_v31 = vpop.f32.mrb[4].mxu1 }
 0x33b   : > { %v5433_v32 = vpop.f32.mrb[5].mxu1  ;;  %v1304_v34 = vsel %vm1297_vm9, %v1046_v31, -inf }
 0x33c   : > { %v1049_v38 = vpop.f32.mrb[6].mxu1  ;;  %1305 = vmax.xlane.f32.xlu0 %v1304_v34 }
 0x33d   : > { %v5434_v39 = vpop.f32.mrb[7].mxu1 }
 0x33e   : > { %v1095_v40 = vpop.f32.mrb[8].mxu0 }
 0x33f   : > { %v5439_v41 = vpop.f32.mrb[9].mxu0  ;;  %v1307_v42 = vsel %vm1297_vm9, %v1095_v40, -inf }
 0x340   : > { %1308 = vmax.xlane.f32.xlu0 %v1307_v42  ;;  %v1098_v43 = vpop.f32.mrb[10].mxu0 }
 0x341   : > { %v5440_v44 = vpop.f32.mrb[11].mxu0 }
 0x342   : > { %v1144_v45 = vpop.f32.mrb[8].mxu1 }
 0x343   : > { %v5445_v46 = vpop.f32.mrb[9].mxu1  ;;  %v1310_v48 = vsel %vm1297_vm9, %v1144_v45, -inf }
 0x344   : > { %v1147_v49 = vpop.f32.mrb[10].mxu1  ;;  %1311 = vmax.xlane.f32.xlu1 %v1310_v48 }
 0x345   : > { %v5446_v50 = vpop.f32.mrb[11].mxu1 }
 0x346   : > { %v1193_v52 = vpop.f32.mrb[12].mxu0 }
 0x347   : > { %v5451_v53 = vpop.f32.mrb[13].mxu0  ;;  %v1313_v54 = vsel %vm1297_vm9, %v1193_v52, -inf }
 0x348   : > { %1314 = vmax.xlane.f32.xlu0 %v1313_v54  ;;  %v1196_v56 = vpop.f32.mrb[14].mxu0 }
 0x349   : > { %v5452_v57 = vpop.f32.mrb[15].mxu0 }
 0x34a   : > { %v6449_v58 = vpop.f32.mrb[12].mxu1 }
 0x34b   : > { %v5457_v60 = vpop.f32.mrb[13].mxu1  ;;  %v1316_v61 = vsel %vm1297_vm9, %v6449_v58, -inf }
 0x34c   : > { %v1245_v62 = vpop.f32.mrb[14].mxu1  ;;  %1317 = vmax.xlane.f32.xlu1 %v1316_v61 }
 0x34d   : > { %v5458_v63 = vpop.f32.mrb[15].mxu1 }
 0x34e   : > { %v1291_v0 = vpop.f32.mrb[16].mxu0 }
 0x34f   : > { %v5463_v3 = vpop.f32.mrb[17].mxu0  ;;  %v1319_v4 = vsel %vm1297_vm9, %v1291_v0, -inf }
 0x350   : > { %1320 = vmax.xlane.f32.xlu0 %v1319_v4  ;;  %v1294_v5 = vpop.f32.mrb[18].mxu0 }
 0x351   : > { %v5464_v7 = vpop.f32.mrb[19].mxu0 }
 0x35d   : > { %1636 = vrot.lane.b32.xlu1 %v6353_v35, %s6115_s28 }
 0x366   : > { %1588 = vrot.lane.b32.xlu0 %v6350_v33, %s6115_s28 }
 0x3c1   : > { %v1300_v12 = vpop.xlane.xlu0 %1299 }
 0x3c2   : > { %v1322_v14 = vsub.f32 %v948_v17, %v1300_v12 }
 0x3c4   : > { %v1330_v16 = vmul.f32 1.442695, %v1322_v14 }
 0x3c5   : > { %v1303_v18 = vpop.xlane.xlu1 %1302 }
 0x3c6   : > { %5914 = vpow2.f32 %v1330_v16  ;;  %v1323_v19 = vsub.f32 %v997_v22, %v1303_v18 }
 0x3c8   : > { %v1332_v20 = vmul.f32 1.442695, %v1323_v19 }
 0x3c9   : > { %v1306_v21 = vpop.xlane.xlu0 %1305 }
 0x3ca   : > { %5916 = vpow2.f32 %v1332_v20  ;;  %v1324_v23 = vsub.f32 %v1046_v31, %v1306_v21 }
 0x3cc   : > { %v1334_v25 = vmul.f32 1.442695, %v1324_v23  ;;  %v1498_v23 = vsel %vm1400_vm8, %v6458_v8, 0 }
 0x3cd   : > { %v1309_v27 = vpop.xlane.xlu0 %1308 }
 0x3ce   : > { %5918 = vpow2.f32 %v1334_v25  ;;  %v1325_v28 = vsub.f32 %v1095_v40, %v1309_v27 }
 0x3d0   : > { %v6462_v32 = vpop.eup %5914  ;;  %v1336_v34 = vmul.f32 1.442695, %v1325_v28 }
 0x3d1   : > { %v1312_v38 = vpop.xlane.xlu1 %1311  ;;  %v1346_v39 = vsel %vm1297_vm9, %v6462_v32, 0.0 }
 0x3d2   : > { %5920 = vpow2.f32 %v1336_v34  ;;  %v1326_v17 = vsub.f32 %v1144_v45, %v1312_v38  ;;  %1347 = vadd.xlane.f32.xlu1 %v1346_v39  ;;  %v1546_v34 = vsel %vm1400_vm8, %v6460_v9, 0 }
 0x3d4   : > { %v6466_v41 = vpop.eup %5916  ;;  %v1338_v22 = vmul.f32 1.442695, %v1326_v17 }
 0x3d5   : > { %v1315_v42 = vpop.xlane.xlu0 %1314  ;;  %v1349_v31 = vsel %vm1297_vm9, %v6466_v41, 0.0 }
 0x3d6   : > { %5922 = vpow2.f32 %v1338_v22  ;;  %v1327_v43 = vsub.f32 %v1193_v52, %v1315_v42  ;;  %1350 = vadd.xlane.f32.xlu0 %v1349_v31 }
 0x3d8   : > { %v6470_v40 = vpop.eup %5918  ;;  %v1340_v44 = vmul.f32 1.442695, %v1327_v43 }
 0x3d9   : > { %v1352_v46 = vsel %vm1297_vm9, %v6470_v40, 0.0  ;;  %v1318_v54 = vpop.xlane.xlu1 %1317 }
 0x3da   : > { %5924 = vpow2.f32 %v1340_v44  ;;  %1353 = vadd.xlane.f32.xlu1 %v1352_v46  ;;  %v1328_v56 = vsub.f32 %v6449_v58, %v1318_v54 }
 0x3dc   : > { %v6474_v45 = vpop.eup %5920  ;;  %v1342_v60 = vmul.f32 1.442695, %v1328_v56 }
 0x3dd   : > { %v1355_v48 = vsel %vm1297_vm9, %v6474_v45, 0.0  ;;  %v1321_v57 = vpop.xlane.xlu0 %1320  ;;  %v1637_v58 = vpop.permute.xlu1 %1636 }
 0x3de   : > { %1356 = vadd.xlane.f32.xlu0 %v1355_v48  ;;  %v1329_v61 = vsub.f32 %v1291_v0, %v1321_v57  ;;  %5926 = vpow2.f32 %v1342_v60  ;;  %v1642_v31 = vsel %vm1400_vm8, %v1637_v58, 0 }
 0x3e0   : > { %v6478_v49 = vpop.eup %5922  ;;  %v1344_v62 = vmul.f32 1.442695, %v1329_v61 }
 0x3e1   : > { %v1358_v50 = vsel %vm1297_vm9, %v6478_v49, 0.0  ;;  %v1589_v0 = vpop.permute.xlu0 %1588 }
 0x3e2   : > { %1359 = vadd.xlane.f32.xlu1 %v1358_v50  ;;  %5928 = vpow2.f32 %v1344_v62 }
 0x3e4   : > { %v6482_v52 = vpop.eup %5924 }
 0x3e5   : > { %v1361_v53 = vsel %vm1297_vm9, %v6482_v52, 0.0 }
 0x3e6   : > { %1362 = vadd.xlane.f32.xlu0 %v1361_v53 }
 0x3e8   : > { %v6491_v63 = vpop.eup %5926 }
 0x3e9   : > { %v1364_v3 = vsel %vm1297_vm9, %v6491_v63, 0.0 }
 0x3ec   : > { %v6495_v4 = vpop.eup %5928 }
 0x3ed   : > { %v1367_v5 = vsel %vm1297_vm9, %v6495_v4, 0.0 }
 0x3f3   : > { %1732 = vrot.lane.b32.xlu1 %v6359_v37, %s6115_s28 }
 0x3fc   : > { %1684 = vrot.lane.b32.xlu0 %v6356_v36, %s6115_s28 }
 0x417   : > { %1365 = vadd.xlane.f32.xlu1 %v1364_v3 }
 0x41b   : > { %1368 = vadd.xlane.f32.xlu0 %v1367_v5 }
 0x428   : > { %1834 = vrot.lane.b32.xlu1 %v6343_v29, %s6116_s30 }
 0x42c   : > { %1832 = vrot.lane.b32.xlu1 %v6384_v51, %s6117_s11 }
 0x430   : > { %1936 = vrot.lane.b32.xlu1 %v6346_v30, %s6116_s30 }
 0x431   : > { %1783 = vrot.lane.b32.xlu0 %v6337_v24, %s6116_s30 }
 0x434   : > { %1934 = vrot.lane.b32.xlu1 %v6400_v59, %s6117_s11 }
 0x435   : > { %1781 = vrot.lane.b32.xlu0 %v6375_v47, %s6117_s11 }
 0x438   : > { %2038 = vrot.lane.b32.xlu1 %v6353_v35, %s6116_s30 }
 0x439   : > { %1885 = vrot.lane.b32.xlu0 %v6339_v26, %s6116_s30 }
 0x43c   : > { %2036 = vrot.lane.b32.xlu1 %v6418_v6, %s6117_s11 }
 0x43d   : > { %1883 = vrot.lane.b32.xlu0 %v6392_v55, %s6117_s11 }
 0x440   : > { %2140 = vrot.lane.b32.xlu1 %v6359_v37, %s6116_s30 }
 0x441   : > { %1987 = vrot.lane.b32.xlu0 %v6350_v33, %s6116_s30 }
 0x444   : > { %2138 = vrot.lane.b32.xlu1 %v6434_v15, %s6117_s11 }
 0x445   : > { %1985 = vrot.lane.b32.xlu0 %v6409_v1, %s6117_s11 }
 0x448   : > { %2284 = vrot.lane.b32.xlu1 %v6337_v24, %s6118_s22 }
 0x449   : > { %2089 = vrot.lane.b32.xlu0 %v6356_v36, %s6116_s30 }
 0x44c   : > { %2380 = vrot.lane.b32.xlu1 %v6339_v26, %s6118_s22 }
 0x44d   : > { %2087 = vrot.lane.b32.xlu0 %v6426_v10, %s6117_s11 }
 0x450   : > { %2428 = vrot.lane.b32.xlu1 %v6346_v30, %s6118_s22 }
 0x451   : > { %2332 = vrot.lane.b32.xlu0 %v6343_v29, %s6118_s22 }
 0x45f   : > { %v1348_v7 = vpop.xlane.xlu1 %1347 }
 0x460   : > { %5930 = vrcp.f32 %v1348_v7 }
 0x463   : > { %v1351_v12 = vpop.xlane.xlu0 %1350 }
 0x464   : > { %5932 = vrcp.f32 %v1351_v12 }
 0x467   : > { %v1354_v14 = vpop.xlane.xlu1 %1353 }
 0x468   : > { %5934 = vrcp.f32 %v1354_v14 }
 0x46a   : > { %v5931_v16 = vpop.eup %5930 }
 0x46b   : > { %v1357_v18 = vpop.xlane.xlu0 %1356  ;;  %v1378_v19 = vmul.f32 %v5931_v16, %v6462_v32 }
 0x46c   : > { %5936 = vrcp.f32 %v1357_v18 }
 0x46d   : > { %v1386_v20 = vpack.c.bf16 %v1378_v19, %v1378_v19 }
 0x46e   : > { %v5933_v21 = vpop.eup %5932 }
 0x46f   : > { %5468 = vmatmul.mubr.msk.bf16.vlgmr.msra.gmra.mrb[16].mxu1 %vm1396_vm10, %v1386_v20  ;;  %v1360_v25 = vpop.xlane.xlu1 %1359  ;;  %v1379_v27 = vmul.f32 %v5933_v21, %v6466_v41  ;;  %v1594_v41 = vsel %vm1400_vm8, %v1589_v0, 0 }
 0x470   : > { %5478 = vmatpush3.bf16.msra.mxu1 %v1498_v23  ;;  %5938 = vrcp.f32 %v1360_v25  ;;  %5479 = vmatprep.mubr.msk.bf16.mxu1 %vm6112_vm5, %v6111_v2 }
 0x471   : > { %v1387_v28 = vpack.c.bf16 %v1379_v27, %v1379_v27  ;;  %5489 = vmatprep.subr.bf16.mxu1 %v6111_v2 }
 0x472   : > { %v5935_v32 = vpop.eup %5934 }
 0x473   : > { %5474 = vmatmul.mubr.msk.bf16.vlgmr.msra.gmra.mrb[20].mxu0 %vm1396_vm10, %v1387_v28  ;;  %v1363_v8 = vpop.xlane.xlu0 %1362  ;;  %v1380_v38 = vmul.f32 %v5935_v32, %v6470_v40  ;;  %v1733_v50 = vpop.permute.xlu1 %1732 }
 0x474   : > { %5484 = vmatpush3.bf16.msra.mxu0 %v1546_v34  ;;  %5940 = vrcp.f32 %v1363_v8  ;;  %5485 = vmatprep.mubr.msk.bf16.mxu0 %vm6112_vm5, %v6111_v2  ;;  %v1738_v53 = vsel %vm1400_vm8, %v1733_v50, 0 }
 0x475   : > { %v1388_v39 = vpack.c.bf16 %v1380_v38, %v1380_v38  ;;  %5495 = vmatprep.subr.bf16.mxu0 %v6111_v2 }
 0x476   : > { %v5937_v17 = vpop.eup %5936 }
 0x477   : > { %5480 = vmatmul.mubr.msk.bf16.vlgmr.msra.gmra.mrb[20].mxu1 %vm1396_vm10, %v1388_v39  ;;  %v1381_v9 = vmul.f32 %v5937_v17, %v6474_v45  ;;  %v1685_v40 = vpop.permute.xlu0 %1684 }
 0x478   : > { %5490 = vmatpush3.bf16.msra.mxu1 %v1594_v41  ;;  %5491 = vmatprep.mubr.msk.bf16.mxu1 %vm6112_vm5, %v6111_v2  ;;  %v1690_v45 = vsel %vm1400_vm8, %v1685_v40, 0 }
 0x479   : > { %v1389_v22 = vpack.c.bf16 %v1381_v9, %v1381_v9  ;;  %5501 = vmatprep.subr.bf16.mxu1 %v6111_v2 }
 0x47a   : > { %v5939_v42 = vpop.eup %5938 }
 0x47b   : > { %5486 = vmatmul.mubr.msk.bf16.vlgmr.msra.gmra.mrb[24].mxu0 %vm1396_vm10, %v1389_v22  ;;  %v1382_v43 = vmul.f32 %v5939_v42, %v6478_v49 }
 0x47c   : > { %5496 = vmatpush3.bf16.msra.mxu0 %v1642_v31  ;;  %5497 = vmatprep.mubr.msk.bf16.mxu0 %vm6112_vm5, %v6111_v2 }
 0x47d   : > { %v1390_v44 = vpack.c.bf16 %v1382_v43, %v1382_v43  ;;  %5507 = vmatprep.subr.bf16.mxu0 %v6111_v2 }
 0x47e   : > { %v5941_v46 = vpop.eup %5940 }
 0x47f   : > { %5492 = vmatmul.mubr.msk.bf16.vlgmr.msra.gmra.mrb[24].mxu1 %vm1396_vm10, %v1390_v44  ;;  %v1383_v48 = vmul.f32 %v5941_v46, %v6482_v52 }
 0x480   : > { %5502 = vmatpush3.bf16.msra.mxu1 %v1690_v45  ;;  %5503 = vmatprep.mubr.msk.bf16.mxu1 %vm6112_vm5, %v6111_v2 }
 0x481   : > { %v1391_v49 = vpack.c.bf16 %v1383_v48, %v1383_v48  ;;  %5513 = vmatprep.subr.bf16.mxu1 %v6111_v2 }
 0x483   : > { %5498 = vmatmul.mubr.msk.bf16.vlgmr.msra.gmra.mrb[28].mxu0 %vm1396_vm10, %v1391_v49 }
 0x484   : > { %5508 = vmatpush3.bf16.msra.mxu0 %v1738_v53  ;;  %5509 = vmatprep.mubr.msk.bf16.mxu0 %vm6112_vm5, %v6111_v2 }
 0x485   : > { %5519 = vmatprep.subr.bf16.mxu0 %v6111_v2 }
 0x4a4   : > { %v1366_v54 = vpop.xlane.xlu1 %1365 }
 0x4a5   : > { %5942 = vrcp.f32 %v1366_v54 }
 0x4a8   : > { %v1835_v52 = vpop.permute.xlu1 %1834  ;;  %v1369_v56 = vpop.xlane.xlu0 %1368 }
 0x4a9   : > { %5944 = vrcp.f32 %v1369_v56  ;;  %v1840_v19 = vsel %vm907_vm7, %v1835_v52, 0 }
 0x4ac   : > { %v1833_v57 = vpop.permute.xlu1 %1832  ;;  %v1784_v60 = vpop.permute.xlu0 %1783 }
 0x4ad   : > { %v1789_v7 = vsel %vm907_vm7, %v1784_v60, 0 }
 0x4af   : > { %v5943_v61 = vpop.eup %5942 }
 0x4b0   : > { %v1937_v62 = vpop.permute.xlu1 %1936  ;;  %v1782_v3 = vpop.permute.xlu0 %1781  ;;  %v1384_v5 = vmul.f32 %v5943_v61, %v6491_v63 }
 0x4b1   : > { %v1942_v25 = vsel %vm907_vm7, %v1937_v62, 0 }
 0x4b2   : > { %v1392_v58 = vpack.c.bf16 %v1384_v5, %v1384_v5 }
 0x4b3   : > { %v5945_v0 = vpop.eup %5944 }
 0x4b4   : > { %v1935_v12 = vpop.permute.xlu1 %1934  ;;  %5504 = vmatmul.mubr.msk.bf16.vlgmr.msra.gmra.mrb[28].mxu1 %vm1396_vm10, %v1392_v58  ;;  %v1886_v14 = vpop.permute.xlu0 %1885  ;;  %v1385_v16 = vmul.f32 %v5945_v0, %v6495_v4 }
 0x4b5   : > { %5514 = vmatpush3.bf16.xpose.msra.mxu1 %v1789_v7  ;;  %5515 = vmatprep.mubr.msk.bf16.mxu1 %vm6112_vm5, %v6111_v2  ;;  %v1891_v4 = vsel %vm907_vm7, %v1886_v14, 0 }
 0x4b6   : > { %v1393_v18 = vpack.c.bf16 %v1385_v16, %v1385_v16  ;;  %5525 = vmatprep.subr.bf16.mxu1 %v6111_v2 }
 0x4b8   : > { %5510 = vmatmul.mubr.msk.bf16.vlgmr.msra.gmra.mrb[32].mxu0 %vm1396_vm10, %v1393_v18  ;;  %v1884_v63 = vpop.permute.xlu0 %1883  ;;  %v2039_v20 = vpop.permute.xlu1 %2038 }
 0x4b9   : > { %5520 = vmatpush3.bf16.xpose.msra.mxu0 %v1840_v19  ;;  %5521 = vmatprep.mubr.msk.bf16.mxu0 %vm6112_vm5, %v6111_v2  ;;  %v2044_v34 = vsel %vm907_vm7, %v2039_v20, 0 }
 0x4ba   : > { %5531 = vmatprep.subr.bf16.mxu0 %v6111_v2 }
 0x4bc   : > { %5516 = vmatmul.mubr.msk.bf16.vlgmr.msra.gmra.mrb[32].mxu1 %vm907_vm7, %v1782_v3  ;;  %v1988_v21 = vpop.permute.xlu0 %1987  ;;  %v2037_v23 = vpop.permute.xlu1 %2036 }
 0x4bd   : > { %5526 = vmatpush3.bf16.xpose.msra.mxu1 %v1891_v4  ;;  %5527 = vmatprep.mubr.msk.bf16.mxu1 %vm6112_vm5, %v6111_v2  ;;  %v1993_v28 = vsel %vm907_vm7, %v1988_v21, 0 }
 0x4be   : > { %5537 = vmatprep.subr.bf16.mxu1 %v6111_v2 }
 0x4c0   : > { %5522 = vmatmul.mubr.msk.bf16.vlgmr.msra.gmra.mrb[36].mxu0 %vm907_vm7, %v1833_v57  ;;  %v1986_v27 = vpop.permute.xlu0 %1985  ;;  %v2141_v32 = vpop.permute.xlu1 %2140 }
 0x4c1   : > { %5532 = vmatpush3.bf16.xpose.msra.mxu0 %v1942_v25  ;;  %5533 = vmatprep.mubr.msk.bf16.mxu0 %vm6112_vm5, %v6111_v2  ;;  %v2146_v41 = vsel %vm907_vm7, %v2141_v32, 0 }
 0x4c2   : > { %5543 = vmatprep.subr.bf16.mxu0 %v6111_v2 }
 0x4c4   : > { %5528 = vmatmul.mubr.msk.bf16.vlgmr.msra.gmra.mrb[36].mxu1 %vm907_vm7, %v1884_v63  ;;  %v2090_v8 = vpop.permute.xlu0 %2089  ;;  %v2139_v38 = vpop.permute.xlu1 %2138 }
 0x4c5   : > { %5538 = vmatpush3.bf16.xpose.msra.mxu1 %v1993_v28  ;;  %5539 = vmatprep.mubr.msk.bf16.mxu1 %vm6112_vm5, %v6111_v2  ;;  %v2095_v39 = vsel %vm907_vm7, %v2090_v8, 0 }
 0x4c6   : > { %5549 = vmatprep.subr.bf16.mxu1 %v6111_v2 }
 0x4c8   : > { %5534 = vmatmul.mubr.msk.bf16.vlgmr.msra.gmra.mrb[40].mxu0 %vm907_vm7, %v1935_v12  ;;  %v2088_v17 = vpop.permute.xlu0 %2087  ;;  %v2285_v9 = vpop.permute.xlu1 %2284 }
 0x4c9   : > { %5544 = vmatpush3.bf16.xpose.msra.mxu0 %v2044_v34  ;;  %5545 = vmatprep.mubr.msk.bf16.mxu0 %vm6112_vm5, %v6111_v2  ;;  %v2290_v22 = vsel %vm1400_vm8, %v2285_v9, 0 }
 0x4ca   : > { %5555 = vmatprep.subr.bf16.mxu0 %v6111_v2 }
 0x4cc   : > { %5540 = vmatmul.mubr.msk.bf16.vlgmr.msra.gmra.mrb[40].mxu1 %vm907_vm7, %v1986_v27  ;;  %v2333_v42 = vpop.permute.xlu0 %2332 }
 0x4cd   : > { %5550 = vmatpush3.bf16.xpose.msra.mxu1 %v2095_v39  ;;  %5551 = vmatprep.mubr.msk.bf16.mxu1 %vm6112_vm5, %v6111_v2  ;;  %v2338_v31 = vsel %vm1400_vm8, %v2333_v42, 0 }
 0x4ce   : > { %5561 = vmatprep.subr.bf16.mxu1 %v6111_v2 }
 0x4d0   : > { %5546 = vmatmul.mubr.msk.bf16.vlgmr.msra.gmra.mrb[44].mxu0 %vm907_vm7, %v2037_v23 }
 0x4d1   : > { %5556 = vmatpush3.bf16.xpose.msra.mxu0 %v2146_v41  ;;  %5557 = vmatprep.mubr.msk.bf16.mxu0 %vm6112_vm5, %v6111_v2 }
 0x4d2   : > { %5567 = vmatprep.subr.bf16.mxu0 %v6111_v2 }
 0x4d4   : > { %5552 = vmatmul.mubr.msk.bf16.vlgmr.msra.gmra.mrb[44].mxu1 %vm907_vm7, %v2088_v17 }
 0x4d5   : > { %5562 = vmatpush3.bf16.msra.mxu1 %v2290_v22  ;;  %5563 = vmatprep.mubr.msk.bf16.mxu1 %vm6112_vm5, %v6111_v2 }
 0x4d6   : > { %5573 = vmatprep.subr.bf16.mxu1 %v6111_v2 }
 0x4d8   : > { %5558 = vmatmul.mubr.msk.bf16.vlgmr.msra.gmra.mrb[48].mxu0 %vm907_vm7, %v2139_v38 }
 0x4d9   : > { %5568 = vmatpush3.bf16.msra.mxu0 %v2338_v31  ;;  %5569 = vmatprep.mubr.msk.bf16.mxu0 %vm6112_vm5, %v6111_v2 }
 0x4da   : > { %5579 = vmatprep.subr.bf16.mxu0 %v6111_v2 }
 0x542   : > { %v1438_v43 = vpop.f32.mrb[16].mxu1 }
 0x543   : > { %v5469_v40 = vpop.f32.mrb[17].mxu1 }
 0x544   : > { %v1441_v44 = vpop.f32.mrb[18].mxu1 }
 0x545   : > { %v5470_v46 = vpop.f32.mrb[19].mxu1 }
 0x546   : > { %v1486_v45 = vpop.f32.mrb[20].mxu0 }
 0x547   : > { %v4436_v48 = vcombine.low %v1438_v43, %v1486_v45  ;;  %v5475_v50 = vpop.f32.mrb[21].mxu0 }
 0x548   : > { %v1489_v49 = vpop.f32.mrb[22].mxu0 }
 0x549   : > { %v5476_v53 = vpop.f32.mrb[23].mxu0  ;;  %v6614_v5 = vrot.slane %v4436_v48, %v6333_v13 }
 0x54a   : > { %v1534_v54 = vpop.f32.mrb[20].mxu1 }
 0x54b   : > { %v5481_v52 = vpop.f32.mrb[21].mxu1 }
 0x54c   : > { %v1537_v56 = vpop.f32.mrb[22].mxu1 }
 0x54d   : > { %v5482_v57 = vpop.f32.mrb[23].mxu1 }
 0x54e   : > { %v1582_v60 = vpop.f32.mrb[24].mxu0 }
 0x54f   : > { %v4437_v61 = vcombine.low %v1534_v54, %v1582_v60  ;;  %v5487_v62 = vpop.f32.mrb[25].mxu0 }
 0x550   : > { %v1585_v3 = vpop.f32.mrb[26].mxu0 }
 0x551   : > { %v6617_v58 = vrot.slane %v4437_v61, %v6333_v13  ;;  %v5488_v0 = vpop.f32.mrb[27].mxu0 }
 0x552   : > { %v1630_v7 = vpop.f32.mrb[24].mxu1 }
 0x553   : > { %v4452_v12 = vcombine.low %v6614_v5, %v6617_v58  ;;  %v5493_v14 = vpop.f32.mrb[25].mxu1  ;;  %v4631_v5 = vsub.s32 0, %v6325_v11  ;;  %v7104_v58 = vld [vmem:[%s6241_s24] sm:$0x3f] }
 0x554   : > { %v1633_v16 = vpop.f32.mrb[26].mxu1 }
 0x555   : > { %v5494_v18 = vpop.f32.mrb[27].mxu1 }
 0x556   : > { %v1678_v19 = vpop.f32.mrb[28].mxu0 }
 0x557   : > { %v4453_v63 = vcombine.low %v1630_v7, %v1678_v19  ;;  %v5499_v20 = vpop.f32.mrb[29].mxu0 }
 0x558   : > { %v1681_v4 = vpop.f32.mrb[30].mxu0 }
 0x559   : > { %v5500_v21 = vpop.f32.mrb[31].mxu0  ;;  %v6622_v39 = vrot.slane %v4453_v63, %v6333_v13 }
 0x587   : > { %v1726_v23 = vpop.f32.mrb[28].mxu1 }
 0x588   : > { %v5505_v25 = vpop.f32.mrb[29].mxu1 }
 0x589   : > { %v1729_v27 = vpop.f32.mrb[30].mxu1 }
 0x58a   : > { %v5506_v28 = vpop.f32.mrb[31].mxu1 }
 0x58b   : > { %v1774_v32 = vpop.f32.mrb[32].mxu0 }
 0x58c   : > { %v4454_v34 = vcombine.low %v1726_v23, %v1774_v32  ;;  %v5511_v8 = vpop.f32.mrb[33].mxu0 }
 0x58d   : > { %v1777_v38 = vpop.f32.mrb[34].mxu0 }
 0x58e   : > { %v6625_v17 = vrot.slane %v4454_v34, %v6333_v13  ;;  %v5512_v41 = vpop.f32.mrb[35].mxu0 }
 0x58f   : > { %v1825_v9 = vpop.f32.mrb[32].mxu1 }
 0x590   : > { %v4469_v22 = vcombine.low %v6622_v39, %v6625_v17  ;;  %v5517_v42 = vpop.f32.mrb[33].mxu1  ;;  %v2188_v31 = vsel %vm1297_vm9, %v1825_v9, -inf }
 0x591   : > { %2189 = vmax.xlane.f32.xlu0 %v2188_v31  ;;  %v1828_v43 = vpop.f32.mrb[34].mxu1  ;;  %v6644_v31 = vpop.permute.xlu1 %2380 }
 0x592   : > { %v5518_v40 = vpop.f32.mrb[35].mxu1 }
 0x593   : > { %v1876_v44 = vpop.f32.mrb[36].mxu0 }
 0x594   : > { %v5523_v46 = vpop.f32.mrb[37].mxu0  ;;  %v2191_v45 = vsel %vm1297_vm9, %v1876_v44, -inf }
 0x595   : > { %2192 = vmax.xlane.f32.xlu1 %v2191_v45  ;;  %v1879_v48 = vpop.f32.mrb[38].mxu0  ;;  %v6646_v43 = vpop.permute.xlu1 %2428 }
 0x596   : > { %v5524_v50 = vpop.f32.mrb[39].mxu0 }
 0x597   : > { %v1927_v49 = vpop.f32.mrb[36].mxu1 }
 0x598   : > { %v5529_v53 = vpop.f32.mrb[37].mxu1  ;;  %v2194_v54 = vsel %vm1297_vm9, %v1927_v49, -inf }
 0x599   : > { %2195 = vmax.xlane.f32.xlu0 %v2194_v54  ;;  %v1930_v52 = vpop.f32.mrb[38].mxu1 }
 0x59a   : > { %v5530_v56 = vpop.f32.mrb[39].mxu1 }
 0x59b   : > { %v1978_v57 = vpop.f32.mrb[40].mxu0 }
 0x59c   : > { %v5535_v60 = vpop.f32.mrb[41].mxu0  ;;  %v2197_v61 = vsel %vm1297_vm9, %v1978_v57, -inf }
 0x59d   : > { %2198 = vmax.xlane.f32.xlu0 %v2197_v61  ;;  %v1981_v62 = vpop.f32.mrb[42].mxu0 }
 0x59e   : > { %v5536_v3 = vpop.f32.mrb[43].mxu0 }
 0x59f   : > { %v2029_v0 = vpop.f32.mrb[40].mxu1 }
 0x5a0   : > { %v5541_v7 = vpop.f32.mrb[41].mxu1  ;;  %v2200_v14 = vsel %vm1297_vm9, %v2029_v0, -inf }
 0x5a1   : > { %v2032_v16 = vpop.f32.mrb[42].mxu1  ;;  %2201 = vmax.xlane.f32.xlu1 %v2200_v14 }
 0x5a2   : > { %v5542_v18 = vpop.f32.mrb[43].mxu1 }
 0x5a3   : > { %v2080_v19 = vpop.f32.mrb[44].mxu0 }
 0x5a4   : > { %v5547_v63 = vpop.f32.mrb[45].mxu0  ;;  %v2203_v20 = vsel %vm1297_vm9, %v2080_v19, -inf }
 0x5a5   : > { %2204 = vmax.xlane.f32.xlu0 %v2203_v20  ;;  %v2083_v4 = vpop.f32.mrb[46].mxu0 }
 0x5a6   : > { %v5548_v21 = vpop.f32.mrb[47].mxu0 }
 0x5a7   : > { %v6635_v23 = vpop.f32.mrb[44].mxu1 }
 0x5a8   : > { %v5553_v25 = vpop.f32.mrb[45].mxu1  ;;  %v2206_v27 = vsel %vm1297_vm9, %v6635_v23, -inf }
 0x5a9   : > { %v2134_v28 = vpop.f32.mrb[46].mxu1  ;;  %2207 = vmax.xlane.f32.xlu1 %v2206_v27 }
 0x5aa   : > { %v5554_v32 = vpop.f32.mrb[47].mxu1 }
 0x5ab   : > { %v2182_v34 = vpop.f32.mrb[48].mxu0 }
 0x5ac   : > { %v5559_v8 = vpop.f32.mrb[49].mxu0  ;;  %v2209_v38 = vsel %vm1297_vm9, %v2182_v34, -inf }
 0x5ad   : > { %2210 = vmax.xlane.f32.xlu0 %v2209_v38  ;;  %v2185_v41 = vpop.f32.mrb[50].mxu0 }
 0x5ae   : > { %v5560_v42 = vpop.f32.mrb[51].mxu0 }
 0x5ba   : > { %2524 = vrot.lane.b32.xlu1 %v6353_v35, %s6118_s22 }
 0x5c3   : > { %2476 = vrot.lane.b32.xlu0 %v6350_v33, %s6118_s22 }
 0x61e   : > { %v2190_v40 = vpop.xlane.xlu0 %2189 }
 0x61f   : > { %v2212_v46 = vsub.f32 %v1825_v9, %v2190_v40 }
 0x621   : > { %v2220_v45 = vmul.f32 1.442695, %v2212_v46 }
 0x622   : > { %v2193_v48 = vpop.xlane.xlu1 %2192 }
 0x623   : > { %5946 = vpow2.f32 %v2220_v45  ;;  %v2213_v50 = vsub.f32 %v1876_v44, %v2193_v48 }
 0x625   : > { %v2222_v53 = vmul.f32 1.442695, %v2213_v50 }
 0x626   : > { %v2196_v54 = vpop.xlane.xlu0 %2195 }
 0x627   : > { %5948 = vpow2.f32 %v2222_v53  ;;  %v2214_v52 = vsub.f32 %v1927_v49, %v2196_v54 }
 0x629   : > { %v2224_v56 = vmul.f32 1.442695, %v2214_v52 }
 0x62a   : > { %v2199_v60 = vpop.xlane.xlu0 %2198 }
 0x62b   : > { %5950 = vpow2.f32 %v2224_v56  ;;  %v2215_v61 = vsub.f32 %v1978_v57, %v2199_v60 }
 0x62d   : > { %v6648_v62 = vpop.eup %5946  ;;  %v2226_v3 = vmul.f32 1.442695, %v2215_v61 }
 0x62e   : > { %v2202_v7 = vpop.xlane.xlu1 %2201  ;;  %v2236_v14 = vsel %vm1297_vm9, %v6648_v62, 0.0 }
 0x62f   : > { %5952 = vpow2.f32 %v2226_v3  ;;  %v2216_v9 = vsub.f32 %v2029_v0, %v2202_v7  ;;  %2237 = vadd.xlane.f32.xlu1 %v2236_v14  ;;  %v2386_v14 = vsel %vm1400_vm8, %v6644_v31, 0 }
 0x631   : > { %v6652_v16 = vpop.eup %5948  ;;  %v2228_v44 = vmul.f32 1.442695, %v2216_v9 }
 0x632   : > { %v2205_v18 = vpop.xlane.xlu0 %2204  ;;  %v2239_v49 = vsel %vm1297_vm9, %v6652_v16, 0.0 }
 0x633   : > { %5954 = vpow2.f32 %v2228_v44  ;;  %v2217_v63 = vsub.f32 %v2080_v19, %v2205_v18  ;;  %2240 = vadd.xlane.f32.xlu0 %v2239_v49  ;;  %v2434_v49 = vsel %vm1400_vm8, %v6646_v43, 0 }
 0x635   : > { %v6656_v57 = vpop.eup %5950  ;;  %v2230_v20 = vmul.f32 1.442695, %v2217_v63 }
 0x636   : > { %v2242_v4 = vsel %vm1297_vm9, %v6656_v57, 0.0  ;;  %v2208_v32 = vpop.xlane.xlu1 %2207 }
 0x637   : > { %5956 = vpow2.f32 %v2230_v20  ;;  %2243 = vadd.xlane.f32.xlu1 %v2242_v4  ;;  %v2218_v8 = vsub.f32 %v6635_v23, %v2208_v32 }
 0x639   : > { %v6660_v0 = vpop.eup %5952  ;;  %v2232_v41 = vmul.f32 1.442695, %v2218_v8 }
 0x63a   : > { %v2245_v21 = vsel %vm1297_vm9, %v6660_v0, 0.0  ;;  %v2211_v38 = vpop.xlane.xlu0 %2210  ;;  %v2525_v23 = vpop.permute.xlu1 %2524 }
 0x63b   : > { %2246 = vadd.xlane.f32.xlu0 %v2245_v21  ;;  %v2219_v42 = vsub.f32 %v2182_v34, %v2211_v38  ;;  %5958 = vpow2.f32 %v2232_v41 }
 0x63d   : > { %v6664_v25 = vpop.eup %5954  ;;  %v2234_v40 = vmul.f32 1.442695, %v2219_v42 }
 0x63e   : > { %v2248_v19 = vsel %vm1297_vm9, %v6664_v25, 0.0  ;;  %v2477_v34 = vpop.permute.xlu0 %2476 }
 0x63f   : > { %2249 = vadd.xlane.f32.xlu1 %v2248_v19  ;;  %5960 = vpow2.f32 %v2234_v40  ;;  %v2482_v4 = vsel %vm1400_vm8, %v2477_v34, 0  ;;  %v2530_v19 = vsel %vm1400_vm8, %v2525_v23, 0 }
 0x641   : > { %v6668_v27 = vpop.eup %5956 }
 0x642   : > { %v2251_v28 = vsel %vm1297_vm9, %v6668_v27, 0.0 }
 0x643   : > { %2252 = vadd.xlane.f32.xlu0 %v2251_v28 }
 0x645   : > { %v6677_v46 = vpop.eup %5958 }
 0x646   : > { %v2254_v45 = vsel %vm1297_vm9, %v6677_v46, 0.0 }
 0x649   : > { %v6681_v48 = vpop.eup %5960 }
 0x64a   : > { %v2257_v50 = vsel %vm1297_vm9, %v6681_v48, 0.0 }
 0x650   : > { %2620 = vrot.lane.b32.xlu1 %v6359_v37, %s6118_s22 }
 0x659   : > { %2572 = vrot.lane.b32.xlu0 %v6356_v36, %s6118_s22 }
 0x674   : > { %2255 = vadd.xlane.f32.xlu1 %v2254_v45 }
 0x678   : > { %2258 = vadd.xlane.f32.xlu0 %v2257_v50 }
 0x685   : > { %2720 = vrot.lane.b32.xlu1 %v6343_v29, %s6119_s25 }
 0x689   : > { %2718 = vrot.lane.b32.xlu1 %v6384_v51, %s6120_s27 }
 0x68d   : > { %2820 = vrot.lane.b32.xlu1 %v6346_v30, %s6119_s25 }
 0x68e   : > { %2670 = vrot.lane.b32.xlu0 %v6337_v24, %s6119_s25 }
 0x691   : > { %2818 = vrot.lane.b32.xlu1 %v6400_v59, %s6120_s27 }
 0x692   : > { %2668 = vrot.lane.b32.xlu0 %v6375_v47, %s6120_s27 }
 0x695   : > { %2920 = vrot.lane.b32.xlu1 %v6353_v35, %s6119_s25 }
 0x696   : > { %2770 = vrot.lane.b32.xlu0 %v6339_v26, %s6119_s25 }
 0x699   : > { %2918 = vrot.lane.b32.xlu1 %v6418_v6, %s6120_s27 }
 0x69a   : > { %2768 = vrot.lane.b32.xlu0 %v6392_v55, %s6120_s27 }
 0x69d   : > { %3020 = vrot.lane.b32.xlu1 %v6359_v37, %s6119_s25 }
 0x69e   : > { %2870 = vrot.lane.b32.xlu0 %v6350_v33, %s6119_s25 }
 0x6a1   : > { %3018 = vrot.lane.b32.xlu1 %v6434_v15, %s6120_s27 }
 0x6a2   : > { %2868 = vrot.lane.b32.xlu0 %v6409_v1, %s6120_s27 }
 0x6a5   : > { %3164 = vrot.lane.b32.xlu1 %v6337_v24, %s6121_s20 }
 0x6a6   : > { %2970 = vrot.lane.b32.xlu0 %v6356_v36, %s6119_s25 }
 0x6a9   : > { %3260 = vrot.lane.b32.xlu1 %v6339_v26, %s6121_s20 }
 0x6aa   : > { %2968 = vrot.lane.b32.xlu0 %v6426_v10, %s6120_s27 }
 0x6ad   : > { %3308 = vrot.lane.b32.xlu1 %v6346_v30, %s6121_s20 }
 0x6ae   : > { %3212 = vrot.lane.b32.xlu0 %v6343_v29, %s6121_s20 }
 0x6bc   : > { %v2238_v53 = vpop.xlane.xlu1 %2237 }
 0x6bd   : > { %5962 = vrcp.f32 %v2238_v53 }
 0x6c0   : > { %v2241_v54 = vpop.xlane.xlu0 %2240 }
 0x6c1   : > { %5964 = vrcp.f32 %v2241_v54 }
 0x6c4   : > { %v2244_v52 = vpop.xlane.xlu1 %2243 }
 0x6c5   : > { %5966 = vrcp.f32 %v2244_v52 }
 0x6c7   : > { %v5963_v56 = vpop.eup %5962 }
 0x6c8   : > { %v2247_v60 = vpop.xlane.xlu0 %2246  ;;  %v2268_v61 = vmul.f32 %v5963_v56, %v6648_v62 }
 0x6c9   : > { %5968 = vrcp.f32 %v2247_v60 }
 0x6ca   : > { %v2276_v3 = vpack.c.bf16 %v2268_v61, %v2268_v61 }
 0x6cb   : > { %v5965_v7 = vpop.eup %5964 }
 0x6cc   : > { %5564 = vmatmul.mubr.msk.bf16.vlgmr.msra.gmra.mrb[48].mxu1 %vm1396_vm10, %v2276_v3  ;;  %v2250_v9 = vpop.xlane.xlu1 %2249  ;;  %v2269_v44 = vmul.f32 %v5965_v7, %v6652_v16 }
 0x6cd   : > { %5574 = vmatpush3.bf16.msra.mxu1 %v2386_v14  ;;  %5970 = vrcp.f32 %v2250_v9  ;;  %5575 = vmatprep.mubr.msk.bf16.mxu1 %vm6112_vm5, %v6111_v2 }
 0x6ce   : > { %v2277_v18 = vpack.c.bf16 %v2269_v44, %v2269_v44  ;;  %5585 = vmatprep.subr.bf16.mxu1 %v6111_v2 }
 0x6cf   : > { %v5967_v62 = vpop.eup %5966 }
 0x6d0   : > { %v2270_v63 = vmul.f32 %v5967_v62, %v6656_v57  ;;  %5570 = vmatmul.mubr.msk.bf16.vlgmr.msra.gmra.mrb[52].mxu0 %vm1396_vm10, %v2277_v18  ;;  %v2253_v31 = vpop.xlane.xlu0 %2252  ;;  %v2621_v42 = vpop.permute.xlu1 %2620 }
 0x6d1   : > { %5580 = vmatpush3.bf16.msra.mxu0 %v2434_v49  ;;  %5972 = vrcp.f32 %v2253_v31  ;;  %5581 = vmatprep.mubr.msk.bf16.mxu0 %vm6112_vm5, %v6111_v2  ;;  %v2626_v40 = vsel %vm1400_vm8, %v2621_v42, 0 }
 0x6d2   : > { %v2278_v16 = vpack.c.bf16 %v2270_v63, %v2270_v63  ;;  %5591 = vmatprep.subr.bf16.mxu0 %v6111_v2 }
 0x6d3   : > { %v5969_v20 = vpop.eup %5968 }
 0x6d4   : > { %5576 = vmatmul.mubr.msk.bf16.vlgmr.msra.gmra.mrb[52].mxu1 %vm1396_vm10, %v2278_v16  ;;  %v2271_v43 = vmul.f32 %v5969_v20, %v6660_v0  ;;  %v2573_v32 = vpop.permute.xlu0 %2572 }
 0x6d5   : > { %5586 = vmatpush3.bf16.msra.mxu1 %v2482_v4  ;;  %5587 = vmatprep.mubr.msk.bf16.mxu1 %vm6112_vm5, %v6111_v2  ;;  %v2578_v41 = vsel %vm1400_vm8, %v2573_v32, 0 }
 0x6d6   : > { %v2279_v57 = vpack.c.bf16 %v2271_v43, %v2271_v43  ;;  %5597 = vmatprep.subr.bf16.mxu1 %v6111_v2 }
 0x6d7   : > { %v5971_v21 = vpop.eup %5970 }
 0x6d8   : > { %v2272_v28 = vmul.f32 %v5971_v21, %v6664_v25  ;;  %5582 = vmatmul.mubr.msk.bf16.vlgmr.msra.gmra.mrb[56].mxu0 %vm1396_vm10, %v2279_v57 }
 0x6d9   : > { %5592 = vmatpush3.bf16.msra.mxu0 %v2530_v19  ;;  %5593 = vmatprep.mubr.msk.bf16.mxu0 %vm6112_vm5, %v6111_v2 }
 0x6da   : > { %v2280_v0 = vpack.c.bf16 %v2272_v28, %v2272_v28  ;;  %5603 = vmatprep.subr.bf16.mxu0 %v6111_v2 }
 0x6db   : > { %v5973_v8 = vpop.eup %5972 }
 0x6dc   : > { %v2273_v38 = vmul.f32 %v5973_v8, %v6668_v27  ;;  %5588 = vmatmul.mubr.msk.bf16.vlgmr.msra.gmra.mrb[56].mxu1 %vm1396_vm10, %v2280_v0 }
 0x6dd   : > { %5598 = vmatpush3.bf16.msra.mxu1 %v2578_v41  ;;  %5599 = vmatprep.mubr.msk.bf16.mxu1 %vm6112_vm5, %v6111_v2 }
 0x6de   : > { %v2281_v25 = vpack.c.bf16 %v2273_v38, %v2273_v38  ;;  %5609 = vmatprep.subr.bf16.mxu1 %v6111_v2 }
 0x6e0   : > { %5594 = vmatmul.mubr.msk.bf16.vlgmr.msra.gmra.mrb[60].mxu0 %vm1396_vm10, %v2281_v25 }
 0x6e1   : > { %5604 = vmatpush3.bf16.msra.mxu0 %v2626_v40  ;;  %5605 = vmatprep.mubr.msk.bf16.mxu0 %vm6112_vm5, %v6111_v2 }
 0x6e2   : > { %5615 = vmatprep.subr.bf16.mxu0 %v6111_v2 }
 0x701   : > { %v2256_v27 = vpop.xlane.xlu1 %2255 }
 0x702   : > { %5974 = vrcp.f32 %v2256_v27 }
 0x705   : > { %v2721_v45 = vpop.permute.xlu1 %2720  ;;  %v2259_v50 = vpop.xlane.xlu0 %2258 }
 0x706   : > { %5976 = vrcp.f32 %v2259_v50 }
 0x709   : > { %v2719_v23 = vpop.permute.xlu1 %2718  ;;  %v2671_v34 = vpop.permute.xlu0 %2670 }
 0x70a   : > { %v2676_v7 = vsel %vm907_vm7, %v2671_v34, 0 }
 0x70c   : > { %v5975_v53 = vpop.eup %5974 }
 0x70d   : > { %v2274_v54 = vmul.f32 %v5975_v53, %v6677_v46  ;;  %v2821_v52 = vpop.permute.xlu1 %2820  ;;  %v2669_v56 = vpop.permute.xlu0 %2668  ;;  %v2726_v46 = vsel %vm907_vm7, %v2721_v45, 0 }
 0x70e   : > { %v2826_v31 = vsel %vm907_vm7, %v2821_v52, 0 }
 0x70f   : > { %v2282_v60 = vpack.c.bf16 %v2274_v54, %v2274_v54 }
 0x710   : > { %v5977_v61 = vpop.eup %5976 }
 0x711   : > { %v2275_v3 = vmul.f32 %v5977_v61, %v6681_v48  ;;  %v2819_v14 = vpop.permute.xlu1 %2818  ;;  %5600 = vmatmul.mubr.msk.bf16.vlgmr.msra.gmra.mrb[60].mxu1 %vm1396_vm10, %v2282_v60  ;;  %v2771_v9 = vpop.permute.xlu0 %2770 }
 0x712   : > { %5610 = vmatpush3.bf16.xpose.msra.mxu1 %v2676_v7  ;;  %5611 = vmatprep.mubr.msk.bf16.mxu1 %vm6112_vm5, %v6111_v2  ;;  %v2776_v48 = vsel %vm907_vm7, %v2771_v9, 0 }
 0x713   : > { %v2283_v44 = vpack.c.bf16 %v2275_v3, %v2275_v3  ;;  %5621 = vmatprep.subr.bf16.mxu1 %v6111_v2 }
 0x715   : > { %5606 = vmatmul.mubr.msk.bf16.vlgmr.msra.gmra.mrb[64].mxu0 %vm1396_vm10, %v2283_v44  ;;  %v2769_v18 = vpop.permute.xlu0 %2768  ;;  %v2921_v62 = vpop.permute.xlu1 %2920 }
 0x716   : > { %5616 = vmatpush3.bf16.xpose.msra.mxu0 %v2726_v46  ;;  %5617 = vmatprep.mubr.msk.bf16.mxu0 %vm6112_vm5, %v6111_v2  ;;  %v2926_v43 = vsel %vm907_vm7, %v2921_v62, 0 }
 0x717   : > { %5627 = vmatprep.subr.bf16.mxu0 %v6111_v2 }
 0x719   : > { %5612 = vmatmul.mubr.msk.bf16.vlgmr.msra.gmra.mrb[64].mxu1 %vm907_vm7, %v2669_v56  ;;  %v2871_v49 = vpop.permute.xlu0 %2870  ;;  %v2919_v63 = vpop.permute.xlu1 %2918 }
 0x71a   : > { %5622 = vmatpush3.bf16.xpose.msra.mxu1 %v2776_v48  ;;  %5623 = vmatprep.mubr.msk.bf16.mxu1 %vm6112_vm5, %v6111_v2  ;;  %v2876_v20 = vsel %vm907_vm7, %v2871_v49, 0 }
 0x71b   : > { %5633 = vmatprep.subr.bf16.mxu1 %v6111_v2 }
 0x71d   : > { %5618 = vmatmul.mubr.msk.bf16.vlgmr.msra.gmra.mrb[68].mxu0 %vm907_vm7, %v2719_v23  ;;  %v2869_v16 = vpop.permute.xlu0 %2868  ;;  %v3021_v4 = vpop.permute.xlu1 %3020 }
 0x71e   : > { %5628 = vmatpush3.bf16.xpose.msra.mxu0 %v2826_v31  ;;  %5629 = vmatprep.mubr.msk.bf16.mxu0 %vm6112_vm5, %v6111_v2  ;;  %v3026_v32 = vsel %vm907_vm7, %v3021_v4, 0 }
 0x71f   : > { %5639 = vmatprep.subr.bf16.mxu0 %v6111_v2 }
 0x721   : > { %5624 = vmatmul.mubr.msk.bf16.vlgmr.msra.gmra.mrb[68].mxu1 %vm907_vm7, %v2769_v18  ;;  %v2971_v57 = vpop.permute.xlu0 %2970  ;;  %v3019_v21 = vpop.permute.xlu1 %3018 }
 0x722   : > { %5634 = vmatpush3.bf16.xpose.msra.mxu1 %v2876_v20  ;;  %5635 = vmatprep.mubr.msk.bf16.mxu1 %vm6112_vm5, %v6111_v2  ;;  %v2976_v19 = vsel %vm907_vm7, %v2971_v57, 0 }
 0x723   : > { %5645 = vmatprep.subr.bf16.mxu1 %v6111_v2 }
 0x725   : > { %5630 = vmatmul.mubr.msk.bf16.vlgmr.msra.gmra.mrb[72].mxu0 %vm907_vm7, %v2819_v14  ;;  %v2969_v28 = vpop.permute.xlu0 %2968  ;;  %v3165_v0 = vpop.permute.xlu1 %3164 }
 0x726   : > { %5640 = vmatpush3.bf16.xpose.msra.mxu0 %v2926_v43  ;;  %5641 = vmatprep.mubr.msk.bf16.mxu0 %vm6112_vm5, %v6111_v2  ;;  %v3170_v8 = vsel %vm1400_vm8, %v3165_v0, 0 }
 0x727   : > { %5651 = vmatprep.subr.bf16.mxu0 %v6111_v2 }
 0x729   : > { %5636 = vmatmul.mubr.msk.bf16.vlgmr.msra.gmra.mrb[72].mxu1 %vm907_vm7, %v2869_v16  ;;  %v3213_v38 = vpop.permute.xlu0 %3212 }
 0x72a   : > { %5646 = vmatpush3.bf16.xpose.msra.mxu1 %v2976_v19  ;;  %5647 = vmatprep.mubr.msk.bf16.mxu1 %vm6112_vm5, %v6111_v2  ;;  %v3218_v41 = vsel %vm1400_vm8, %v3213_v38, 0 }
 0x72b   : > { %5657 = vmatprep.subr.bf16.mxu1 %v6111_v2 }
 0x72d   : > { %5642 = vmatmul.mubr.msk.bf16.vlgmr.msra.gmra.mrb[76].mxu0 %vm907_vm7, %v2919_v63 }
 0x72e   : > { %5652 = vmatpush3.bf16.xpose.msra.mxu0 %v3026_v32  ;;  %5653 = vmatprep.mubr.msk.bf16.mxu0 %vm6112_vm5, %v6111_v2 }
 0x72f   : > { %5663 = vmatprep.subr.bf16.mxu0 %v6111_v2 }
 0x731   : > { %5648 = vmatmul.mubr.msk.bf16.vlgmr.msra.gmra.mrb[76].mxu1 %vm907_vm7, %v2969_v28 }
 0x732   : > { %5658 = vmatpush3.bf16.msra.mxu1 %v3170_v8  ;;  %5659 = vmatprep.mubr.msk.bf16.mxu1 %vm6112_vm5, %v6111_v2 }
 0x733   : > { %5669 = vmatprep.subr.bf16.mxu1 %v6111_v2 }
 0x735   : > { %5654 = vmatmul.mubr.msk.bf16.vlgmr.msra.gmra.mrb[80].mxu0 %vm907_vm7, %v3019_v21 }
 0x736   : > { %5664 = vmatpush3.bf16.msra.mxu0 %v3218_v41  ;;  %5665 = vmatprep.mubr.msk.bf16.mxu0 %vm6112_vm5, %v6111_v2 }
 0x737   : > { %5675 = vmatprep.subr.bf16.mxu0 %v6111_v2 }
 0x79f   : > { %v2326_v42 = vpop.f32.mrb[48].mxu1 }
 0x7a0   : > { %v5565_v25 = vpop.f32.mrb[49].mxu1 }
 0x7a1   : > { %v2329_v40 = vpop.f32.mrb[50].mxu1 }
 0x7a2   : > { %v5566_v27 = vpop.f32.mrb[51].mxu1 }
 0x7a3   : > { %v2374_v45 = vpop.f32.mrb[52].mxu0 }
 0x7a4   : > { %v4480_v50 = vcombine.low %v2326_v42, %v2374_v45  ;;  %v5571_v23 = vpop.f32.mrb[53].mxu0 }
 0x7a5   : > { %v2377_v34 = vpop.f32.mrb[54].mxu0 }
 0x7a6   : > { %v5572_v53 = vpop.f32.mrb[55].mxu0  ;;  %v4488_v9 = vrot.slane %v4480_v50, %v6333_v13 }
 0x7a7   : > { %v2422_v54 = vpop.f32.mrb[52].mxu1 }
 0x7a8   : > { %v5577_v52 = vpop.f32.mrb[53].mxu1 }
 0x7a9   : > { %v2425_v56 = vpop.f32.mrb[54].mxu1 }
 0x7aa   : > { %v5578_v60 = vpop.f32.mrb[55].mxu1 }
 0x7ab   : > { %v2470_v61 = vpop.f32.mrb[56].mxu0 }
 0x7ac   : > { %v4481_v3 = vcombine.low %v2422_v54, %v2470_v61  ;;  %v5583_v7 = vpop.f32.mrb[57].mxu0 }
 0x7ad   : > { %v2473_v14 = vpop.f32.mrb[58].mxu0 }
 0x7ae   : > { %v4495_v44 = vrot.slane %v4481_v3, %v6333_v13  ;;  %v5584_v46 = vpop.f32.mrb[59].mxu0 }
 0x7af   : > { %v2518_v18 = vpop.f32.mrb[56].mxu1 }
 0x7b0   : > { %v4496_v62 = vcombine.low %v4488_v9, %v4495_v44  ;;  %v5589_v48 = vpop.f32.mrb[57].mxu1 }
 0x7b1   : > { %v2521_v49 = vpop.f32.mrb[58].mxu1 }
 0x7b2   : > { %v5590_v63 = vpop.f32.mrb[59].mxu1 }
 0x7b3   : > { %v2566_v31 = vpop.f32.mrb[60].mxu0 }
 0x7b4   : > { %v4497_v16 = vcombine.low %v2518_v18, %v2566_v31  ;;  %v5595_v20 = vpop.f32.mrb[61].mxu0 }
 0x7b5   : > { %v2569_v4 = vpop.f32.mrb[62].mxu0 }
 0x7b6   : > { %v5596_v43 = vpop.f32.mrb[63].mxu0  ;;  %v4505_v41 = vrot.slane %v4497_v16, %v6333_v13 }
 0x7e4   : > { %v2614_v57 = vpop.f32.mrb[60].mxu1 }
 0x7e5   : > { %v5601_v21 = vpop.f32.mrb[61].mxu1 }
 0x7e6   : > { %v2617_v19 = vpop.f32.mrb[62].mxu1 }
 0x7e7   : > { %v5602_v28 = vpop.f32.mrb[63].mxu1 }
 0x7e8   : > { %v2662_v32 = vpop.f32.mrb[64].mxu0 }
 0x7e9   : > { %v4498_v0 = vcombine.low %v2614_v57, %v2662_v32  ;;  %v5607_v8 = vpop.f32.mrb[65].mxu0 }
 0x7ea   : > { %v2665_v38 = vpop.f32.mrb[66].mxu0 }
 0x7eb   : > { %v4512_v42 = vrot.slane %v4498_v0, %v6333_v13  ;;  %v5608_v25 = vpop.f32.mrb[67].mxu0 }
 0x7ec   : > { %v2712_v40 = vpop.f32.mrb[64].mxu1 }
 0x7ed   : > { %v4513_v27 = vcombine.low %v4505_v41, %v4512_v42  ;;  %v5613_v45 = vpop.f32.mrb[65].mxu1  ;;  %v3068_v50 = vsel %vm1297_vm9, %v2712_v40, -inf }
 0x7ee   : > { %3069 = vmax.xlane.f32.xlu0 %v3068_v50  ;;  %v2715_v23 = vpop.f32.mrb[66].mxu1 }
 0x7ef   : > { %v6804_v34 = vpack.i.bf16 %v4513_v27, %v4496_v62  ;;  %v5614_v53 = vpop.f32.mrb[67].mxu1  ;;  %v6820_v23 = vpop.permute.xlu1 %3260 }
 0x7f0   : > { %v2762_v54 = vpop.f32.mrb[68].mxu0 }
 0x7f1   : > { %v5619_v52 = vpop.f32.mrb[69].mxu0  ;;  %v3071_v56 = vsel %vm1297_vm9, %v2762_v54, -inf }
 0x7f2   : > { %3072 = vmax.xlane.f32.xlu1 %v3071_v56  ;;  %v2765_v60 = vpop.f32.mrb[70].mxu0 }
 0x7f3   : > { %v5620_v61 = vpop.f32.mrb[71].mxu0  ;;  %v6822_v53 = vpop.permute.xlu1 %3308 }
 0x7f4   : > { %v2812_v3 = vpop.f32.mrb[68].mxu1 }
 0x7f5   : > { %v5625_v7 = vpop.f32.mrb[69].mxu1  ;;  %v3074_v14 = vsel %vm1297_vm9, %v2812_v3, -inf }
 0x7f6   : > { %3075 = vmax.xlane.f32.xlu0 %v3074_v14  ;;  %v2815_v9 = vpop.f32.mrb[70].mxu1 }
 0x7f7   : > { %v5626_v44 = vpop.f32.mrb[71].mxu1 }
 0x7f8   : > { %v2862_v46 = vpop.f32.mrb[72].mxu0 }
 0x7f9   : > { %v5631_v18 = vpop.f32.mrb[73].mxu0  ;;  %v3077_v62 = vsel %vm1297_vm9, %v2862_v46, -inf }
 0x7fa   : > { %3078 = vmax.xlane.f32.xlu0 %v3077_v62  ;;  %v2865_v48 = vpop.f32.mrb[74].mxu0 }
 0x7fb   : > { %v5632_v49 = vpop.f32.mrb[75].mxu0 }
 0x7fc   : > { %v2912_v63 = vpop.f32.mrb[72].mxu1 }
 0x7fd   : > { %v5637_v31 = vpop.f32.mrb[73].mxu1  ;;  %v3080_v16 = vsel %vm1297_vm9, %v2912_v63, -inf }
 0x7fe   : > { %v2915_v20 = vpop.f32.mrb[74].mxu1  ;;  %3081 = vmax.xlane.f32.xlu1 %v3080_v16 }
 0x7ff   : > { %v5638_v4 = vpop.f32.mrb[75].mxu1 }
 0x800   : > { %v2962_v43 = vpop.f32.mrb[76].mxu0 }
 0x801   : > { %v5643_v57 = vpop.f32.mrb[77].mxu0  ;;  %v3083_v21 = vsel %vm1297_vm9, %v2962_v43, -inf }
 0x802   : > { %3084 = vmax.xlane.f32.xlu0 %v3083_v21  ;;  %v2965_v19 = vpop.f32.mrb[78].mxu0 }
 0x803   : > { %v5644_v28 = vpop.f32.mrb[79].mxu0 }
 0x804   : > { %v6811_v32 = vpop.f32.mrb[76].mxu1 }
 0x805   : > { %v5649_v0 = vpop.f32.mrb[77].mxu1  ;;  %v3086_v8 = vsel %vm1297_vm9, %v6811_v32, -inf }
 0x806   : > { %v3015_v38 = vpop.f32.mrb[78].mxu1  ;;  %3087 = vmax.xlane.f32.xlu1 %v3086_v8 }
 0x807   : > { %v5650_v41 = vpop.f32.mrb[79].mxu1 }
 0x808   : > { %v3062_v42 = vpop.f32.mrb[80].mxu0 }
 0x809   : > { %v5655_v25 = vpop.f32.mrb[81].mxu0  ;;  %v3089_v27 = vsel %vm1297_vm9, %v3062_v42, -inf }
 0x80a   : > { %3090 = vmax.xlane.f32.xlu0 %v3089_v27  ;;  %v3065_v45 = vpop.f32.mrb[82].mxu0 }
 0x80b   : > { %v5656_v50 = vpop.f32.mrb[83].mxu0 }
 0x817   : > { %3404 = vrot.lane.b32.xlu1 %v6353_v35, %s6121_s20 }
 0x820   : > { %3356 = vrot.lane.b32.xlu0 %v6350_v33, %s6121_s20 }
 0x87b   : > { %v3070_v52 = vpop.xlane.xlu0 %3069 }
 0x87c   : > { %v3092_v56 = vsub.f32 %v2712_v40, %v3070_v52 }
 0x87e   : > { %v3100_v60 = vmul.f32 1.442695, %v3092_v56 }
 0x87f   : > { %v3073_v61 = vpop.xlane.xlu1 %3072 }
 0x880   : > { %5978 = vpow2.f32 %v3100_v60  ;;  %v3093_v7 = vsub.f32 %v2762_v54, %v3073_v61 }
 0x882   : > { %v3102_v14 = vmul.f32 1.442695, %v3093_v7 }
 0x883   : > { %v3076_v9 = vpop.xlane.xlu0 %3075 }
 0x884   : > { %5980 = vpow2.f32 %v3102_v14  ;;  %v3094_v44 = vsub.f32 %v2812_v3, %v3076_v9 }
 0x886   : > { %v3104_v18 = vmul.f32 1.442695, %v3094_v44 }
 0x887   : > { %v3079_v62 = vpop.xlane.xlu0 %3078 }
 0x888   : > { %5982 = vpow2.f32 %v3104_v18  ;;  %v3095_v48 = vsub.f32 %v2862_v46, %v3079_v62 }
 0x88a   : > { %v6824_v49 = vpop.eup %5978  ;;  %v3106_v31 = vmul.f32 1.442695, %v3095_v48  ;;  %v3314_v48 = vsel %vm1400_vm8, %v6822_v53, 0 }
 0x88b   : > { %v3082_v16 = vpop.xlane.xlu1 %3081  ;;  %v3116_v20 = vsel %vm1297_vm9, %v6824_v49, 0.0 }
 0x88c   : > { %5984 = vpow2.f32 %v3106_v31  ;;  %v3096_v40 = vsub.f32 %v2912_v63, %v3082_v16  ;;  %3117 = vadd.xlane.f32.xlu1 %v3116_v20 }
 0x88e   : > { %v6828_v4 = vpop.eup %5980  ;;  %v3108_v54 = vmul.f32 1.442695, %v3096_v40 }
 0x88f   : > { %v3085_v57 = vpop.xlane.xlu0 %3084  ;;  %v3119_v3 = vsel %vm1297_vm9, %v6828_v4, 0.0 }
 0x890   : > { %5986 = vpow2.f32 %v3108_v54  ;;  %v3097_v21 = vsub.f32 %v2962_v43, %v3085_v57  ;;  %3120 = vadd.xlane.f32.xlu0 %v3119_v3 }
 0x892   : > { %v6832_v46 = vpop.eup %5982  ;;  %v3110_v19 = vmul.f32 1.442695, %v3097_v21 }
 0x893   : > { %v3122_v28 = vsel %vm1297_vm9, %v6832_v46, 0.0  ;;  %v3088_v25 = vpop.xlane.xlu1 %3087 }
 0x894   : > { %5988 = vpow2.f32 %v3110_v19  ;;  %3123 = vadd.xlane.f32.xlu1 %v3122_v28  ;;  %v3098_v27 = vsub.f32 %v6811_v32, %v3088_v25 }
 0x896   : > { %v6836_v63 = vpop.eup %5984  ;;  %v3112_v50 = vmul.f32 1.442695, %v3098_v27 }
 0x897   : > { %v3125_v0 = vsel %vm1297_vm9, %v6836_v63, 0.0  ;;  %v3091_v45 = vpop.xlane.xlu0 %3090 }
 0x898   : > { %3126 = vadd.xlane.f32.xlu0 %v3125_v0  ;;  %v3099_v52 = vsub.f32 %v3062_v42, %v3091_v45  ;;  %5990 = vpow2.f32 %v3112_v50 }
 0x89a   : > { %v6840_v8 = vpop.eup %5986  ;;  %v3114_v56 = vmul.f32 1.442695, %v3099_v52 }
 0x89b   : > { %v3128_v43 = vsel %vm1297_vm9, %v6840_v8, 0.0 }
 0x89c   : > { %3129 = vadd.xlane.f32.xlu1 %v3128_v43  ;;  %5992 = vpow2.f32 %v3114_v56 }
 0x89e   : > { %v6844_v38 = vpop.eup %5988 }
 0x89f   : > { %v3131_v41 = vsel %vm1297_vm9, %v6844_v38, 0.0 }
 0x8a0   : > { %3132 = vadd.xlane.f32.xlu0 %v3131_v41 }
 0x8a2   : > { %v6853_v60 = vpop.eup %5990 }
 0x8a3   : > { %v3134_v61 = vsel %vm1297_vm9, %v6853_v60, 0.0 }
 0x8a6   : > { %v6857_v7 = vpop.eup %5992 }
 0x8a7   : > { %v3137_v14 = vsel %vm1297_vm9, %v6857_v7, 0.0 }
 0x8ad   : > { %3500 = vrot.lane.b32.xlu1 %v6359_v37, %s6121_s20 }
 0x8b6   : > { %3452 = vrot.lane.b32.xlu0 %v6356_v36, %s6121_s20 }
 0x8d1   : > { %3135 = vadd.xlane.f32.xlu1 %v3134_v61 }
 0x8d5   : > { %3138 = vadd.xlane.f32.xlu0 %v3137_v14 }
 0x8e2   : > { %3600 = vrot.lane.b32.xlu1 %v6343_v29, %s6122_s16 }
 0x8e6   : > { %3598 = vrot.lane.b32.xlu1 %v6384_v51, %s6123_s17  ;;  %v3357_v51 = vpop.permute.xlu0 %3356 }
 0x8e7   : > { %v3362_v20 = vsel %vm1400_vm8, %v3357_v51, 0 }
 0x8ea   : > { %3700 = vrot.lane.b32.xlu1 %v6346_v30, %s6122_s16 }
 0x8eb   : > { %3550 = vrot.lane.b32.xlu0 %v6337_v24, %s6122_s16 }
 0x8ee   : > { %3698 = vrot.lane.b32.xlu1 %v6400_v59, %s6123_s17 }
 0x8ef   : > { %3548 = vrot.lane.b32.xlu0 %v6375_v47, %s6123_s17  ;;  %v3405_v47 = vpop.permute.xlu1 %3404 }
 0x8f0   : > { %v3410_v54 = vsel %vm1400_vm8, %v3405_v47, 0 }
 0x8f2   : > { %3800 = vrot.lane.b32.xlu1 %v6353_v35, %s6122_s16 }
 0x8f3   : > { %3650 = vrot.lane.b32.xlu0 %v6339_v26, %s6122_s16 }
 0x8f6   : > { %3798 = vrot.lane.b32.xlu1 %v6418_v6, %s6123_s17 }
 0x8f7   : > { %3648 = vrot.lane.b32.xlu0 %v6392_v55, %s6123_s17 }
 0x8fa   : > { %3900 = vrot.lane.b32.xlu1 %v6359_v37, %s6122_s16 }
 0x8fb   : > { %3750 = vrot.lane.b32.xlu0 %v6350_v33, %s6122_s16 }
 0x8fe   : > { %3898 = vrot.lane.b32.xlu1 %v6434_v15, %s6123_s17 }
 0x8ff   : > { %3748 = vrot.lane.b32.xlu0 %v6409_v1, %s6123_s17 }
 0x902   : > { %4044 = vrot.lane.b32.xlu1 %v6337_v24, %s6124_s3  ;;  %v3266_v24 = vsel %vm1400_vm8, %v6820_v23, 0 }
 0x903   : > { %3850 = vrot.lane.b32.xlu0 %v6356_v36, %s6122_s16 }
 0x907   : > { %3848 = vrot.lane.b32.xlu0 %v6426_v10, %s6123_s17 }
 0x919   : > { %v3118_v59 = vpop.xlane.xlu1 %3117 }
 0x91a   : > { %5994 = vrcp.f32 %v3118_v59 }
 0x91d   : > { %v3121_v55 = vpop.xlane.xlu0 %3120 }
 0x91e   : > { %5996 = vrcp.f32 %v3121_v55 }
 0x921   : > { %v3124_v6 = vpop.xlane.xlu1 %3123 }
 0x922   : > { %5998 = vrcp.f32 %v3124_v6 }
 0x924   : > { %v5995_v32 = vpop.eup %5994 }
 0x925   : > { %v3148_v15 = vmul.f32 %v5995_v32, %v6824_v49  ;;  %v3127_v1 = vpop.xlane.xlu0 %3126 }
 0x926   : > { %6000 = vrcp.f32 %v3127_v1 }
 0x927   : > { %v3156_v42 = vpack.c.bf16 %v3148_v15, %v3148_v15 }
 0x928   : > { %v5997_v9 = vpop.eup %5996 }
 0x929   : > { %v3149_v10 = vmul.f32 %v5997_v9, %v6828_v4  ;;  %5660 = vmatmul.mubr.msk.bf16.vlgmr.msra.gmra.mrb[80].mxu1 %vm1396_vm10, %v3156_v42  ;;  %v3130_v44 = vpop.xlane.xlu1 %3129 }
 0x92a   : > { %5670 = vmatpush3.bf16.msra.mxu1 %v3266_v24  ;;  %6002 = vrcp.f32 %v3130_v44  ;;  %5671 = vmatprep.mubr.msk.bf16.mxu1 %vm6112_vm5, %v6111_v2 }
 0x92b   : > { %v3157_v18 = vpack.c.bf16 %v3149_v10, %v3149_v10  ;;  %5681 = vmatprep.subr.bf16.mxu1 %v6111_v2 }
 0x92c   : > { %v5999_v62 = vpop.eup %5998 }
 0x92d   : > { %v3150_v49 = vmul.f32 %v5999_v62, %v6832_v46  ;;  %5666 = vmatmul.mubr.msk.bf16.vlgmr.msra.gmra.mrb[84].mxu0 %vm1396_vm10, %v3157_v18  ;;  %v3133_v23 = vpop.xlane.xlu0 %3132 }
 0x92e   : > { %5676 = vmatpush3.bf16.msra.mxu0 %v3314_v48  ;;  %6004 = vrcp.f32 %v3133_v23  ;;  %5677 = vmatprep.mubr.msk.bf16.mxu0 %vm6112_vm5, %v6111_v2 }
 0x92f   : > { %v3158_v31 = vpack.c.bf16 %v3150_v49, %v3150_v49  ;;  %5687 = vmatprep.subr.bf16.mxu0 %v6111_v2 }
 0x930   : > { %v6001_v16 = vpop.eup %6000 }
 0x931   : > { %v3151_v40 = vmul.f32 %v6001_v16, %v6836_v63  ;;  %5672 = vmatmul.mubr.msk.bf16.vlgmr.msra.gmra.mrb[84].mxu1 %vm1396_vm10, %v3158_v31  ;;  %v3453_v3 = vpop.permute.xlu0 %3452  ;;  %v3501_v63 = vpop.permute.xlu1 %3500 }
 0x932   : > { %5682 = vmatpush3.bf16.msra.mxu1 %v3362_v20  ;;  %5683 = vmatprep.mubr.msk.bf16.mxu1 %vm6112_vm5, %v6111_v2  ;;  %v3458_v28 = vsel %vm1400_vm8, %v3453_v3, 0 }
 0x933   : > { %v3159_v53 = vpack.c.bf16 %v3151_v40, %v3151_v40  ;;  %5693 = vmatprep.subr.bf16.mxu1 %v6111_v2 }
 0x934   : > { %v6003_v4 = vpop.eup %6002 }
 0x935   : > { %v3152_v57 = vmul.f32 %v6003_v4, %v6840_v8  ;;  %5678 = vmatmul.mubr.msk.bf16.vlgmr.msra.gmra.mrb[88].mxu0 %vm1396_vm10, %v3159_v53  ;;  %v3506_v8 = vsel %vm1400_vm8, %v3501_v63, 0 }
 0x936   : > { %5688 = vmatpush3.bf16.msra.mxu0 %v3410_v54  ;;  %5689 = vmatprep.mubr.msk.bf16.mxu0 %vm6112_vm5, %v6111_v2 }
 0x937   : > { %v3160_v21 = vpack.c.bf16 %v3152_v57, %v3152_v57  ;;  %5699 = vmatprep.subr.bf16.mxu0 %v6111_v2 }
 0x938   : > { %v6005_v46 = vpop.eup %6004 }
 0x939   : > { %v3153_v19 = vmul.f32 %v6005_v46, %v6844_v38  ;;  %5684 = vmatmul.mubr.msk.bf16.vlgmr.msra.gmra.mrb[88].mxu1 %vm1396_vm10, %v3160_v21 }
 0x93a   : > { %5694 = vmatpush3.bf16.msra.mxu1 %v3458_v28  ;;  %5695 = vmatprep.mubr.msk.bf16.mxu1 %vm6112_vm5, %v6111_v2 }
 0x93b   : > { %v3161_v0 = vpack.c.bf16 %v3153_v19, %v3153_v19  ;;  %5705 = vmatprep.subr.bf16.mxu1 %v6111_v2 }
 0x93d   : > { %5690 = vmatmul.mubr.msk.bf16.vlgmr.msra.gmra.mrb[92].mxu0 %vm1396_vm10, %v3161_v0 }
 0x93e   : > { %5700 = vmatpush3.bf16.msra.mxu0 %v3506_v8  ;;  %5701 = vmatprep.mubr.msk.bf16.mxu0 %vm6112_vm5, %v6111_v2 }
 0x93f   : > { %5711 = vmatprep.subr.bf16.mxu0 %v6111_v2 }
 0x95e   : > { %v3136_v43 = vpop.xlane.xlu1 %3135 }
 0x95f   : > { %6006 = vrcp.f32 %v3136_v43 }
 0x962   : > { %v3601_v38 = vpop.permute.xlu1 %3600  ;;  %v3139_v41 = vpop.xlane.xlu0 %3138 }
 0x963   : > { %6008 = vrcp.f32 %v3139_v41 }
 0x966   : > { %v3599_v25 = vpop.permute.xlu1 %3598  ;;  %v3551_v27 = vpop.permute.xlu0 %3550 }
 0x967   : > { %v3556_v51 = vsel %vm907_vm7, %v3551_v27, 0 }
 0x969   : > { %v6007_v45 = vpop.eup %6006 }
 0x96a   : > { %v3154_v50 = vmul.f32 %v6007_v45, %v6853_v60  ;;  %v3701_v52 = vpop.permute.xlu1 %3700  ;;  %v3549_v56 = vpop.permute.xlu0 %3548  ;;  %v3606_v60 = vsel %vm907_vm7, %v3601_v38, 0 }
 0x96b   : > { %v3706_v9 = vsel %vm907_vm7, %v3701_v52, 0 }
 0x96c   : > { %v3162_v61 = vpack.c.bf16 %v3154_v50, %v3154_v50 }
 0x96d   : > { %v6009_v14 = vpop.eup %6008 }
 0x96e   : > { %v3155_v47 = vmul.f32 %v6009_v14, %v6857_v7  ;;  %v3699_v59 = vpop.permute.xlu1 %3698  ;;  %5696 = vmatmul.mubr.msk.bf16.vlgmr.msra.gmra.mrb[92].mxu1 %vm1396_vm10, %v3162_v61  ;;  %v3651_v55 = vpop.permute.xlu0 %3650 }
 0x96f   : > { %5706 = vmatpush3.bf16.xpose.msra.mxu1 %v3556_v51  ;;  %5707 = vmatprep.mubr.msk.bf16.mxu1 %vm6112_vm5, %v6111_v2  ;;  %v3656_v7 = vsel %vm907_vm7, %v3651_v55, 0 }
 0x970   : > { %v3163_v6 = vpack.c.bf16 %v3155_v47, %v3155_v47  ;;  %5717 = vmatprep.subr.bf16.mxu1 %v6111_v2 }
 0x972   : > { %5702 = vmatmul.mubr.msk.bf16.vlgmr.msra.gmra.mrb[96].mxu0 %vm1396_vm10, %v3163_v6  ;;  %v3649_v32 = vpop.permute.xlu0 %3648  ;;  %v3801_v15 = vpop.permute.xlu1 %3800 }
 0x973   : > { %5712 = vmatpush3.bf16.xpose.msra.mxu0 %v3606_v60  ;;  %5713 = vmatprep.mubr.msk.bf16.mxu0 %vm6112_vm5, %v6111_v2  ;;  %v3806_v18 = vsel %vm907_vm7, %v3801_v15, 0 }
 0x974   : > { %5723 = vmatprep.subr.bf16.mxu0 %v6111_v2 }
 0x976   : > { %5708 = vmatmul.mubr.msk.bf16.vlgmr.msra.gmra.mrb[96].mxu1 %vm907_vm7, %v3549_v56  ;;  %v3751_v1 = vpop.permute.xlu0 %3750  ;;  %v3799_v42 = vpop.permute.xlu1 %3798 }
 0x977   : > { %5718 = vmatpush3.bf16.xpose.msra.mxu1 %v3656_v7  ;;  %5719 = vmatprep.mubr.msk.bf16.mxu1 %vm6112_vm5, %v6111_v2  ;;  %v3756_v10 = vsel %vm907_vm7, %v3751_v1, 0 }
 0x978   : > { %5729 = vmatprep.subr.bf16.mxu1 %v6111_v2 }
 0x97a   : > { %5714 = vmatmul.mubr.msk.bf16.vlgmr.msra.gmra.mrb[100].mxu0 %vm907_vm7, %v3599_v25  ;;  %v3749_v24 = vpop.permute.xlu0 %3748  ;;  %v3901_v44 = vpop.permute.xlu1 %3900 }
 0x97b   : > { %5724 = vmatpush3.bf16.xpose.msra.mxu0 %v3706_v9  ;;  %5725 = vmatprep.mubr.msk.bf16.mxu0 %vm6112_vm5, %v6111_v2  ;;  %v3906_v23 = vsel %vm907_vm7, %v3901_v44, 0 }
 0x97c   : > { %5735 = vmatprep.subr.bf16.mxu0 %v6111_v2 }
 0x97e   : > { %5720 = vmatmul.mubr.msk.bf16.vlgmr.msra.gmra.mrb[100].mxu1 %vm907_vm7, %v3649_v32  ;;  %v3851_v62 = vpop.permute.xlu0 %3850  ;;  %v3899_v48 = vpop.permute.xlu1 %3898 }
 0x97f   : > { %5730 = vmatpush3.bf16.xpose.msra.mxu1 %v3756_v10  ;;  %5731 = vmatprep.mubr.msk.bf16.mxu1 %vm6112_vm5, %v6111_v2  ;;  %v3856_v49 = vsel %vm907_vm7, %v3851_v62, 0 }
 0x980   : > { %5741 = vmatprep.subr.bf16.mxu1 %v6111_v2 }
 0x982   : > { %5726 = vmatmul.mubr.msk.bf16.vlgmr.msra.gmra.mrb[104].mxu0 %vm907_vm7, %v3699_v59  ;;  %v4045_v31 = vpop.permute.xlu1 %4044  ;;  %v3849_v16 = vpop.permute.xlu0 %3848 }
 0x983   : > { %5736 = vmatpush3.bf16.xpose.msra.mxu0 %v3806_v18  ;;  %5737 = vmatprep.mubr.msk.bf16.mxu0 %vm6112_vm5, %v6111_v2  ;;  %v4050_v20 = vsel %vm1400_vm8, %v4045_v31, 0 }
 0x984   : > { %5747 = vmatprep.subr.bf16.mxu0 %v6111_v2 }
 0x986   : > { %5732 = vmatmul.mubr.msk.bf16.vlgmr.msra.gmra.mrb[104].mxu1 %vm907_vm7, %v3749_v24 }
 0x987   : > { %5742 = vmatpush3.bf16.xpose.msra.mxu1 %v3856_v49  ;;  %5743 = vmatprep.mubr.msk.bf16.mxu1 %vm6112_vm5, %v6111_v2 }
 0x988   : > { %5753 = vmatprep.subr.bf16.mxu1 %v6111_v2 }
 0x98a   : > { %5738 = vmatmul.mubr.msk.bf16.vlgmr.msra.gmra.mrb[108].mxu0 %vm907_vm7, %v3799_v42 }
 0x98b   : > { %5748 = vmatpush3.bf16.xpose.msra.mxu0 %v3906_v23  ;;  %5749 = vmatprep.mubr.msk.bf16.mxu0 %vm6112_vm5, %v6111_v2 }
 0x98c   : > { %5759 = vmatprep.subr.bf16.mxu0 %v6111_v2 }
 0x98e   : > { %5744 = vmatmul.mubr.msk.bf16.vlgmr.msra.gmra.mrb[108].mxu1 %vm907_vm7, %v3849_v16 }
 0x98f   : > { %5754 = vmatpush3.bf16.msra.mxu1 %v4050_v20  ;;  %5755 = vmatprep.mubr.msk.bf16.mxu1 %vm6112_vm5, %v6111_v2 }
 0x990   : > { %5765 = vmatprep.subr.bf16.mxu1 %v6111_v2 }
 0x992   : > { %5750 = vmatmul.mubr.msk.bf16.vlgmr.msra.gmra.mrb[112].mxu0 %vm907_vm7, %v3899_v48 }
 0x993   : > { %5761 = vmatprep.mubr.msk.bf16.mxu0 %vm6112_vm5, %v6111_v2 }
 0x9fc   : > { %v3206_v40 = vpop.f32.mrb[80].mxu1 }
 0x9fd   : > { %v5661_v53 = vpop.f32.mrb[81].mxu1 }
 0x9fe   : > { %v3209_v4 = vpop.f32.mrb[82].mxu1 }
 0x9ff   : > { %v5662_v54 = vpop.f32.mrb[83].mxu1 }
 0xa00   : > { %v3254_v57 = vpop.f32.mrb[84].mxu0 }
 0xa01   : > { %v4528_v3 = vcombine.low %v3206_v40, %v3254_v57  ;;  %v5667_v21 = vpop.f32.mrb[85].mxu0 }
 0xa02   : > { %v3257_v46 = vpop.f32.mrb[86].mxu0 }
 0xa03   : > { %v5668_v19 = vpop.f32.mrb[87].mxu0  ;;  %v4536_v27 = vrot.slane %v4528_v3, %v6333_v13 }
 0xa04   : > { %v3302_v28 = vpop.f32.mrb[84].mxu1 }
 0xa05   : > { %v5673_v63 = vpop.f32.mrb[85].mxu1 }
 0xa06   : > { %v3305_v0 = vpop.f32.mrb[86].mxu1 }
 0xa07   : > { %v5674_v8 = vpop.f32.mrb[87].mxu1 }
 0xa08   : > { %v3350_v43 = vpop.f32.mrb[88].mxu0 }
 0xa09   : > { %v4529_v38 = vcombine.low %v3302_v28, %v3350_v43  ;;  %v5679_v41 = vpop.f32.mrb[89].mxu0 }
 0xa0a   : > { %v3353_v25 = vpop.f32.mrb[90].mxu0 }
 0xa0b   : > { %v4543_v45 = vrot.slane %v4529_v38, %v6333_v13  ;;  %v5680_v50 = vpop.f32.mrb[91].mxu0 }
 0xa0c   : > { %v3398_v52 = vpop.f32.mrb[88].mxu1 }
 0xa0d   : > { %v4544_v56 = vcombine.low %v4536_v27, %v4543_v45  ;;  %v5685_v61 = vpop.f32.mrb[89].mxu1 }
 0xa0e   : > { %v3401_v14 = vpop.f32.mrb[90].mxu1 }
 0xa0f   : > { %v5686_v47 = vpop.f32.mrb[91].mxu1 }
 0xa10   : > { %v3446_v51 = vpop.f32.mrb[92].mxu0 }
 0xa11   : > { %v4545_v59 = vcombine.low %v3398_v52, %v3446_v51  ;;  %v5691_v55 = vpop.f32.mrb[93].mxu0 }
 0xa12   : > { %v3449_v6 = vpop.f32.mrb[94].mxu0 }
 0xa13   : > { %v5692_v60 = vpop.f32.mrb[95].mxu0  ;;  %v4553_v44 = vrot.slane %v4545_v59, %v6333_v13 }
 0xa41   : > { %v3494_v32 = vpop.f32.mrb[92].mxu1 }
 0xa42   : > { %v5697_v15 = vpop.f32.mrb[93].mxu1 }
 0xa43   : > { %v3497_v7 = vpop.f32.mrb[94].mxu1 }
 0xa44   : > { %v5698_v1 = vpop.f32.mrb[95].mxu1 }
 0xa45   : > { %v3542_v42 = vpop.f32.mrb[96].mxu0 }
 0xa46   : > { %v4546_v9 = vcombine.low %v3494_v32, %v3542_v42  ;;  %v5703_v24 = vpop.f32.mrb[97].mxu0 }
 0xa47   : > { %v3545_v10 = vpop.f32.mrb[98].mxu0 }
 0xa48   : > { %v4560_v18 = vrot.slane %v4546_v9, %v6333_v13  ;;  %v5704_v62 = vpop.f32.mrb[99].mxu0 }
 0xa49   : > { %v3592_v48 = vpop.f32.mrb[96].mxu1 }
 0xa4a   : > { %v4561_v49 = vcombine.low %v4553_v44, %v4560_v18  ;;  %v5709_v23 = vpop.f32.mrb[97].mxu1  ;;  %v3948_v31 = vsel %vm1297_vm9, %v3592_v48, -inf }
 0xa4b   : > { %3949 = vmax.xlane.f32.xlu0 %v3948_v31  ;;  %v3595_v16 = vpop.f32.mrb[98].mxu1 }
 0xa4c   : > { %v6972_v20 = vpack.i.bf16 %v4561_v49, %v4544_v56  ;;  %v5710_v40 = vpop.f32.mrb[99].mxu1 }
 0xa4d   : > { %v3642_v53 = vpop.f32.mrb[100].mxu0 }
 0xa4e   : > { %v5715_v4 = vpop.f32.mrb[101].mxu0  ;;  %v3951_v54 = vsel %vm1297_vm9, %v3642_v53, -inf }
 0xa4f   : > { %3952 = vmax.xlane.f32.xlu1 %v3951_v54  ;;  %v3645_v57 = vpop.f32.mrb[102].mxu0 }
 0xa50   : > { %v5716_v3 = vpop.f32.mrb[103].mxu0 }
 0xa51   : > { %v3692_v21 = vpop.f32.mrb[100].mxu1 }
 0xa52   : > { %v5721_v46 = vpop.f32.mrb[101].mxu1  ;;  %v3954_v19 = vsel %vm1297_vm9, %v3692_v21, -inf }
 0xa53   : > { %3955 = vmax.xlane.f32.xlu0 %v3954_v19  ;;  %v3695_v28 = vpop.f32.mrb[102].mxu1 }
 0xa54   : > { %v5722_v63 = vpop.f32.mrb[103].mxu1 }
 0xa55   : > { %v3742_v0 = vpop.f32.mrb[104].mxu0 }
 0xa56   : > { %v5727_v8 = vpop.f32.mrb[105].mxu0  ;;  %v3957_v43 = vsel %vm1297_vm9, %v3742_v0, -inf }
 0xa57   : > { %3958 = vmax.xlane.f32.xlu0 %v3957_v43  ;;  %v3745_v38 = vpop.f32.mrb[106].mxu0 }
 0xa58   : > { %v5728_v41 = vpop.f32.mrb[107].mxu0 }
 0xa59   : > { %v6977_v25 = vpop.f32.mrb[104].mxu1 }
 0xa5a   : > { %v5733_v27 = vpop.f32.mrb[105].mxu1  ;;  %v3960_v45 = vsel %vm1297_vm9, %v6977_v25, -inf }
 0xa5b   : > { %v3795_v50 = vpop.f32.mrb[106].mxu1  ;;  %3961 = vmax.xlane.f32.xlu1 %v3960_v45 }
 0xa5c   : > { %v5734_v52 = vpop.f32.mrb[107].mxu1 }
 0xa5d   : > { %v6981_v56 = vpop.f32.mrb[108].mxu0 }
 0xa5e   : > { %v5739_v61 = vpop.f32.mrb[109].mxu0  ;;  %v3963_v14 = vsel %vm1297_vm9, %v6981_v56, -inf }
 0xa5f   : > { %3964 = vmax.xlane.f32.xlu0 %v3963_v14  ;;  %v3845_v47 = vpop.f32.mrb[110].mxu0 }
 0xa60   : > { %v5740_v51 = vpop.f32.mrb[111].mxu0 }
 0xa61   : > { %v3892_v59 = vpop.f32.mrb[108].mxu1 }
 0xa62   : > { %v5745_v55 = vpop.f32.mrb[109].mxu1  ;;  %v3966_v6 = vsel %vm1297_vm9, %v3892_v59, -inf }
 0xa63   : > { %v3895_v60 = vpop.f32.mrb[110].mxu1  ;;  %3967 = vmax.xlane.f32.xlu1 %v3966_v6 }
 0xa64   : > { %v5746_v32 = vpop.f32.mrb[111].mxu1 }
 0xa65   : > { %v3942_v15 = vpop.f32.mrb[112].mxu0 }
 0xa66   : > { %v5751_v7 = vpop.f32.mrb[113].mxu0  ;;  %v3969_v1 = vsel %vm1297_vm9, %v3942_v15, -inf }
 0xa67   : > { %3970 = vmax.xlane.f32.xlu0 %v3969_v1  ;;  %v3945_v42 = vpop.f32.mrb[114].mxu0 }
 0xa68   : > { %v5752_v9 = vpop.f32.mrb[115].mxu0 }
 0xa74   : > { %4140 = vrot.lane.b32.xlu1 %v6339_v26, %s6124_s3 }
 0xa78   : > { %4188 = vrot.lane.b32.xlu1 %v6346_v30, %s6124_s3 }
 0xa7d   : > { %4092 = vrot.lane.b32.xlu0 %v6343_v29, %s6124_s3 }
 0xad8   : > { %v3950_v24 = vpop.xlane.xlu0 %3949 }
 0xad9   : > { %v3972_v10 = vsub.f32 %v3592_v48, %v3950_v24 }
 0xadb   : > { %v3980_v44 = vmul.f32 1.442695, %v3972_v10 }
 0xadc   : > { %v3953_v18 = vpop.xlane.xlu1 %3952 }
 0xadd   : > { %6010 = vpow2.f32 %v3980_v44  ;;  %v3973_v62 = vsub.f32 %v3642_v53, %v3953_v18 }
 0xadf   : > { %v3982_v49 = vmul.f32 1.442695, %v3973_v62 }
 0xae0   : > { %v3956_v23 = vpop.xlane.xlu0 %3955 }
 0xae1   : > { %6012 = vpow2.f32 %v3982_v49  ;;  %v3974_v31 = vsub.f32 %v3692_v21, %v3956_v23 }
 0xae3   : > { %v3984_v16 = vmul.f32 1.442695, %v3974_v31 }
 0xae4   : > { %v3959_v40 = vpop.xlane.xlu0 %3958 }
 0xae5   : > { %6014 = vpow2.f32 %v3984_v16  ;;  %v3975_v26 = vsub.f32 %v3742_v0, %v3959_v40 }
 0xae7   : > { %v6993_v4 = vpop.eup %6010  ;;  %v3986_v30 = vmul.f32 1.442695, %v3975_v26 }
 0xae8   : > { %v3996_v29 = vsel %vm1297_vm9, %v6993_v4, 0.0  ;;  %v3962_v0 = vpop.xlane.xlu1 %3961 }
 0xae9   : > { %6016 = vpow2.f32 %v3986_v30  ;;  %3997 = vadd.xlane.f32.xlu1 %v3996_v29  ;;  %v3976_v8 = vsub.f32 %v6977_v25, %v3962_v0 }
 0xaeb   : > { %v6997_v48 = vpop.eup %6012  ;;  %v3988_v41 = vmul.f32 1.442695, %v3976_v8 }
 0xaec   : > { %v3999_v53 = vsel %vm1297_vm9, %v6997_v48, 0.0  ;;  %v3965_v57 = vpop.xlane.xlu0 %3964 }
 0xaed   : > { %4000 = vadd.xlane.f32.xlu0 %v3999_v53  ;;  %v3977_v38 = vsub.f32 %v6981_v56, %v3965_v57  ;;  %6018 = vpow2.f32 %v3988_v41 }
 0xaef   : > { %v7001_v54 = vpop.eup %6014  ;;  %v3990_v45 = vmul.f32 1.442695, %v3977_v38 }
 0xaf0   : > { %v4002_v3 = vsel %vm1297_vm9, %v7001_v54, 0.0  ;;  %v3968_v43 = vpop.xlane.xlu1 %3967 }
 0xaf1   : > { %4003 = vadd.xlane.f32.xlu1 %v4002_v3  ;;  %v3978_v27 = vsub.f32 %v3892_v59, %v3968_v43  ;;  %6020 = vpow2.f32 %v3990_v45 }
 0xaf3   : > { %v7005_v21 = vpop.eup %6016  ;;  %v3992_v50 = vmul.f32 1.442695, %v3978_v27 }
 0xaf4   : > { %v3971_v46 = vpop.xlane.xlu0 %3970  ;;  %v4005_v19 = vsel %vm1297_vm9, %v7005_v21, 0.0  ;;  %v4141_v55 = vpop.permute.xlu1 %4140 }
 0xaf5   : > { %4006 = vadd.xlane.f32.xlu0 %v4005_v19  ;;  %v3979_v52 = vsub.f32 %v3942_v15, %v3971_v46  ;;  %6022 = vpow2.f32 %v3992_v50  ;;  %v5906_v50 = vld [vmem:[%s6221_s26] sm:$0xff]  }
 0xaf7   : > { %v3994_v61 = vmul.f32 1.442695, %v3979_v52 }
 0xaf8   : > { %v4093_v28 = vpop.permute.xlu0 %4092  ;;  %v4189_v6 = vpop.permute.xlu1 %4188 }
 0xaf9   : > { %v4098_v63 = vsel %vm1400_vm8, %v4093_v28, 0  ;;  %6024 = vpow2.f32 %v3994_v61  ;;  %v4194_v10 = vsel %vm1400_vm8, %v4189_v6, 0 }
 0xafa   : > { %5760 = vmatpush3.bf16.msra.mxu0 %v4098_v63 }
 0xafb   : > { %5771 = vmatprep.subr.bf16.mxu0 %v6111_v2 }
 0xb02   : > { %4284 = vrot.lane.b32.xlu1 %v6353_v35, %s6124_s3  ;;  %v7017_v35 = vpop.eup %6018 }
 0xb03   : > { %v7019_v14 = vpop.eup %6020 }
 0xb04   : > { %v7023_v25 = vpop.eup %6022  ;;  %v4011_v47 = vsel %vm1297_vm9, %v7019_v14, 0.0 }
 0xb05   : > { %v4014_v56 = vsel %vm1297_vm9, %v7023_v25, 0.0  ;;  %v7029_v51 = vpop.eup %6024 }
 0xb06   : > { %v4017_v59 = vsel %vm1297_vm9, %v7029_v51, 0.0 }
 0xb0b   : > { %4236 = vrot.lane.b32.xlu0 %v6350_v33, %s6124_s3  ;;  %v4008_v33 = vsel %vm1297_vm9, %v7017_v35, 0.0 }
 0xb26   : > { %4009 = vadd.xlane.f32.xlu1 %v4008_v33 }
 0xb2a   : > { %4015 = vadd.xlane.f32.xlu1 %v4014_v56  ;;  %4012 = vadd.xlane.f32.xlu0 %v4011_v47 }
 0xb2e   : > { %4018 = vadd.xlane.f32.xlu0 %v4017_v59 }
 0xb3b   : > { %4380 = vrot.lane.b32.xlu1 %v6359_v37, %s6124_s3 }
 0xb3f   : > { %5895 = vrot.lane.b32.xlu1 %v6972_v20, %s6125_s14 }
 0xb44   : > { %4332 = vrot.lane.b32.xlu0 %v6356_v36, %s6124_s3  ;;  %v4146_v36 = vsel %vm1400_vm8, %v4141_v55, 0 }
 0xb48   : > { %5890 = vrot.lane.b32.xlu0 %v6804_v34, %s6126_s23 }
 0xb76   : > { %v3998_v60 = vpop.xlane.xlu1 %3997 }
 0xb77   : > { %6026 = vrcp.f32 %v3998_v60 }
 0xb7a   : > { %v4001_v32 = vpop.xlane.xlu0 %4000 }
 0xb7b   : > { %6028 = vrcp.f32 %v4001_v32 }
 0xb7e   : > { %v4004_v15 = vpop.xlane.xlu1 %4003 }
 0xb7f   : > { %6030 = vrcp.f32 %v4004_v15 }
 0xb81   : > { %v6027_v7 = vpop.eup %6026 }
 0xb82   : > { %v4028_v37 = vmul.f32 %v6027_v7, %v6993_v4  ;;  %v4007_v1 = vpop.xlane.xlu0 %4006  ;;  %v4285_v16 = vpop.permute.xlu1 %4284 }
 0xb83   : > { %6032 = vrcp.f32 %v4007_v1  ;;  %v4290_v26 = vsel %vm1400_vm8, %v4285_v16, 0 }
 0xb84   : > { %v4036_v20 = vpack.c.bf16 %v4028_v37, %v4028_v37 }
 0xb85   : > { %v6029_v42 = vpop.eup %6028 }
 0xb86   : > { %v4029_v9 = vmul.f32 %v6029_v42, %v6997_v48  ;;  %5756 = vmatmul.mubr.msk.bf16.vlgmr.msra.gmra.mrb[112].mxu1 %vm1396_vm10, %v4036_v20  ;;  %v4237_v18 = vpop.permute.xlu0 %4236 }
 0xb87   : > { %5766 = vmatpush3.bf16.msra.mxu1 %v4146_v36  ;;  %5767 = vmatprep.mubr.msk.bf16.mxu1 %vm6112_vm5, %v6111_v2  ;;  %v4242_v31 = vsel %vm1400_vm8, %v4237_v18, 0 }
 0xb88   : > { %v4037_v34 = vpack.c.bf16 %v4029_v9, %v4029_v9  ;;  %5777 = vmatprep.subr.bf16.mxu1 %v6111_v2 }
 0xb89   : > { %v6031_v24 = vpop.eup %6030 }
 0xb8a   : > { %v4030_v44 = vmul.f32 %v6031_v24, %v7001_v54  ;;  %5762 = vmatmul.mubr.msk.bf16.vlgmr.msra.gmra.mrb[116].mxu0 %vm1396_vm10, %v4037_v34 }
 0xb8b   : > { %5772 = vmatpush3.bf16.msra.mxu0 %v4194_v10  ;;  %5773 = vmatprep.mubr.msk.bf16.mxu0 %vm6112_vm5, %v6111_v2 }
 0xb8c   : > { %v4038_v62 = vpack.c.bf16 %v4030_v44, %v4030_v44  ;;  %5783 = vmatprep.subr.bf16.mxu0 %v6111_v2 }
 0xb8d   : > { %v6033_v49 = vpop.eup %6032 }
 0xb8e   : > { %v4031_v23 = vmul.f32 %v6033_v49, %v7005_v21  ;;  %5768 = vmatmul.mubr.msk.bf16.vlgmr.msra.gmra.mrb[116].mxu1 %vm1396_vm10, %v4038_v62 }
 0xb8f   : > { %5778 = vmatpush3.bf16.msra.mxu1 %v4242_v31  ;;  %5779 = vmatprep.mubr.msk.bf16.mxu1 %vm6112_vm5, %v6111_v2 }
 0xb90   : > { %v4039_v40 = vpack.c.bf16 %v4031_v23, %v4031_v23  ;;  %5789 = vmatprep.subr.bf16.mxu1 %v6111_v2 }
 0xb92   : > { %5774 = vmatmul.mubr.msk.bf16.vlgmr.msra.gmra.mrb[120].mxu0 %vm1396_vm10, %v4039_v40 }
 0xb93   : > { %5784 = vmatpush3.bf16.msra.mxu0 %v4290_v26  ;;  %5785 = vmatprep.mubr.msk.bf16.mxu0 %vm6112_vm5, %v6111_v2 }
 0xb94   : > { %5795 = vmatprep.subr.bf16.mxu0 %v6111_v2 }
 0xbb3   : > { %v4010_v4 = vpop.xlane.xlu1 %4009 }
 0xbb4   : > { %6034 = vrcp.f32 %v4010_v4  ;;  %v5907_v4 = vld [vmem:[%s6221_s26 + $0x8] sm:$0xff]  }
 0xbb7   : > { %v4016_v30 = vpop.xlane.xlu1 %4015  ;;  %v4013_v29 = vpop.xlane.xlu0 %4012 }
 0xbb8   : > { %6036 = vrcp.f32 %v4016_v30 }
 0xbb9   : > { %6038 = vrcp.f32 %v4013_v29 }
 0xbbb   : > { %v4019_v48 = vpop.xlane.xlu0 %4018  ;;  %v4381_v0 = vpop.permute.xlu1 %4380 }
 0xbbc   : > { %6040 = vrcp.f32 %v4019_v48  ;;  %v4386_v38 = vsel %vm1400_vm8, %v4381_v0, 0 }
 0xbbe   : > { %v6035_v53 = vpop.eup %6034 }
 0xbbf   : > { %v4032_v54 = vmul.f32 %v6035_v53, %v7017_v35  ;;  %v4333_v57 = vpop.permute.xlu0 %4332  ;;  %v5896_v0 = vpop.permute.xlu1 %5895 }
 0xbc0   : > { %v4338_v19 = vsel %vm1400_vm8, %v4333_v57, 0 }
 0xbc1   : > { %v4040_v3 = vpack.c.bf16 %v4032_v54, %v4032_v54 }
 0xbc2   : > { %v6037_v21 = vpop.eup %6036 }
 0xbc3   : > { %v6039_v46 = vpop.eup %6038  ;;  %5780 = vmatmul.mubr.msk.bf16.vlgmr.msra.gmra.mrb[120].mxu1 %vm1396_vm10, %v4040_v3  ;;  %v4034_v63 = vmul.f32 %v6037_v21, %v7023_v25 }
 0xbc4   : > { %v4033_v28 = vmul.f32 %v6039_v46, %v7019_v14  ;;  %5790 = vmatpush3.bf16.msra.mxu1 %v4338_v19  ;;  %5791 = vmatprep.mubr.msk.bf16.mxu1 %vm6112_vm5, %v6111_v2  ;;  %v5891_v19 = vpop.permute.xlu0 %5890 }
 0xbc5   : > { %5801 = vmatprep.subr.bf16.mxu1 %v6111_v2  ;;  %v4042_v41 = vpack.c.bf16 %v4034_v63, %v4034_v63  ;;  %v5892_v63 = vunpack.i.l.bf16 %v5891_v19 }
 0xbc6   : > { %v4041_v8 = vpack.c.bf16 %v4033_v28, %v4033_v28  ;;  %v6041_v43 = vpop.eup %6040  ;;  %v5893_v28 = vunpack.i.h.bf16 %v5891_v19 }
 0xbc7   : > { %v4035_v27 = vmul.f32 %v6041_v43, %v7029_v51  ;;  %v4616_v43 = vsel %vm907_vm7, %v4452_v12, %v5892_v63  ;;  %v4632_v12 = vrot.slane %v7104_v58, %v4631_v5 }
 0xbc8   : > { %5786 = vmatmul.mubr.msk.bf16.vlgmr.msra.gmra.mrb[124].mxu0 %vm1396_vm10, %v4041_v8  ;;  %v4617_v8 = vsel %vm907_vm7, %v4469_v22, %v5893_v28 }
 0xbc9   : > { %5796 = vmatpush3.bf16.msra.mxu0 %v4386_v38  ;;  %5797 = vmatprep.mubr.msk.bf16.mxu0 %vm6112_vm5, %v6111_v2  ;;  %v4043_v45 = vpack.c.bf16 %v4035_v27, %v4035_v27  ;;  %v5898_v38 = vunpack.i.h.bf16 %v5896_v0 }
 0xbca   : > { %5809 = vmatprep.subr.bf16.mxu0 %v6111_v2 }
 0xbcb   : > { %5792 = vmatmul.mubr.msk.bf16.vlgmr.msra.gmra.mrb[124].mxu1 %vm1396_vm10, %v4042_v41  ;;  %v5897_v41 = vunpack.i.l.bf16 %v5896_v0  ;;  %v5912_v0 = vld [vmem:[%s6231_s12 + $0x10] sm:$0xff]  }
 0xbcc   : > { %5805 = vmatprep.mubr.msk.bf16.mxu1 %vm6112_vm5, %v6111_v2  ;;  %5802 = vmatpush3.bf16.msra.mxu1 %v5906_v50 }
 0xbcd   : > { %5803 = vmatprep.subr.bf16.mxu1 %v6111_v2 }
 0xbd0   : > { %5798 = vmatmul.mubr.msk.bf16.vlgmr.msra.gmra.mrb[128].mxu0 %vm1396_vm10, %v4043_v45  ;;  %5804 = vmatpush3.bf16.msra.mxu1 %v5907_v4  ;;  %v4720_v4 = vsub.s32 1, %v6325_v11 }
 0xbd1   : > { %5813 = vmatprep.mubr.msk.bf16.mxu0 %vm6112_vm5, %v6111_v2  ;;  %5817 = vmatprep.subr.bf16.mxu1 %v6111_v2 }
 0xc59   : > { %v4086_v52 = vpop.f32.mrb[112].mxu1 }
 0xc5a   : > { %v5757_v61 = vpop.f32.mrb[113].mxu1 }
 0xc5b   : > { %v4089_v35 = vpop.f32.mrb[114].mxu1  ;;  %v4620_v61 = vsel %vm4618_vm11, %v4617_v8, %v5898_v38  ;;  %v5913_v8 = vld [vmem:[%s6231_s12 + $0x18] sm:$0xff]  }
 0xc5c   : > { %v5758_v14 = vpop.f32.mrb[115].mxu1 }
 0xc5d   : > { %v4134_v33 = vpop.f32.mrb[116].mxu0 }
 0xc5e   : > { %v4576_v25 = vcombine.low %v4086_v52, %v4134_v33  ;;  %v5763_v56 = vpop.f32.mrb[117].mxu0  ;;  %v4619_v52 = vsel %vm4618_vm11, %v4616_v43, %v5897_v41  ;;  %v5229_v43 = vld [vmem:[%s508_s19] ss:$0 sm:$0xff] }
 0xc5f   : > { %v4137_v47 = vpop.f32.mrb[118].mxu0  ;;  %v6050_v56 = vld [vmem:[#allocation2] sm:$0xff] }
 0xc60   : > { %v5764_v51 = vpop.f32.mrb[119].mxu0  ;;  %v4584_v1 = vrot.slane %v4576_v25, %v6333_v13 }
 0xc61   : > { %v4182_v59 = vpop.f32.mrb[116].mxu1 }
 0xc62   : > { %v5769_v55 = vpop.f32.mrb[117].mxu1 }
 0xc63   : > { %v4185_v6 = vpop.f32.mrb[118].mxu1  ;;  %v6051_v55 = vld [vmem:[#allocation2 + $0x8] sm:$0xff] }
 0xc64   : > { %v5770_v60 = vpop.f32.mrb[119].mxu1 }
 0xc65   : > { %v4230_v32 = vpop.f32.mrb[120].mxu0 }
 0xc66   : > { %v4577_v15 = vcombine.low %v4182_v59, %v4230_v32  ;;  %v5775_v7 = vpop.f32.mrb[121].mxu0 }
 0xc67   : > { %v4233_v37 = vpop.f32.mrb[122].mxu0 }
 0xc68   : > { %v4591_v20 = vrot.slane %v4577_v15, %v6333_v13  ;;  %v5776_v42 = vpop.f32.mrb[123].mxu0 }
 0xc6a   : > { %v4592_v36 = vcombine.low %v4584_v1, %v4591_v20 }
 0xc96   : > { %v4278_v9 = vpop.f32.mrb[120].mxu1 }
 0xc97   : > { %v5781_v34 = vpop.f32.mrb[121].mxu1 }
 0xc98   : > { %v4281_v24 = vpop.f32.mrb[122].mxu1 }
 0xc99   : > { %v5782_v10 = vpop.f32.mrb[123].mxu1 }
 0xc9a   : > { %v5908_v10 = vld [vmem:[%s6226_s29] sm:$0xff]  }
 0xc9b   : > { %v4326_v44 = vpop.f32.mrb[124].mxu0  ;;  %5810 = vmatpush3.bf16.msra.mxu0 %v5908_v10 }
 0xc9c   : > { %v4593_v18 = vcombine.low %v4278_v9, %v4326_v44  ;;  %v5787_v62 = vpop.f32.mrb[125].mxu0  ;;  %v5909_v44 = vld [vmem:[%s6226_s29 + $0x8] sm:$0xff]   ;;  %5811 = vmatprep.subr.bf16.mxu0 %v6111_v2 }
 0xc9d   : > { %v4329_v49 = vpop.f32.mrb[126].mxu0  ;;  %v5911_v62 = vld [vmem:[%s6231_s12 + $0x8] sm:$0xff]  }
 0xc9e   : > { %v5788_v23 = vpop.f32.mrb[127].mxu0  ;;  %v4374_v31 = vpop.f32.mrb[124].mxu1  ;;  %v4601_v54 = vrot.slane %v4593_v18, %v6333_v13  ;;  %v5910_v18 = vld [vmem:[%s6231_s12] sm:$0xff]  }
 0xc9f   : > { %v5793_v16 = vpop.f32.mrb[125].mxu1  ;;  %5812 = vmatpush3.bf16.msra.mxu0 %v5909_v44 }
 0xca0   : > { %v4377_v40 = vpop.f32.mrb[126].mxu1 }
 0xca1   : > { %v5794_v26 = vpop.f32.mrb[127].mxu1 }
 0xca3   : > { %v4422_v30 = vpop.f32.mrb[128].mxu0 }
 0xca4   : > { %v4594_v29 = vcombine.low %v4374_v31, %v4422_v30  ;;  %v5799_v48 = vpop.f32.mrb[129].mxu0  ;;  %v4721_v30 = vrot.slane %v7104_v58, %v4720_v4 }
 0xca5   : > { %v4425_v53 = vpop.f32.mrb[130].mxu0 }
 0xca6   : > { %v4608_v57 = vrot.slane %v4594_v29, %v6333_v13  ;;  %v5800_v3 = vpop.f32.mrb[131].mxu0  ;;  %v4726_v29 = vsub.s32 2, %v6325_v11 }
 0xca8   : > { %v4609_v21 = vcombine.low %v4601_v54, %v4608_v57 }
 0xcaa   : > { %v5899_v46 = vpack.i.bf16 %v4609_v21, %v4592_v36  ;;  %v4727_v21 = vrot.slane %v7104_v58, %v4726_v29 }
 0xcac   : > { %5900 = vrot.lane.b32.xlu0 %v5899_v46, %s6127_s4 }
 0xd1e   : > { %v5901_v27 = vpop.permute.xlu0 %5900 }
 0xd1f   : > { %v5903_v45 = vunpack.i.h.bf16 %v5901_v27  ;;  %v5902_v50 = vunpack.i.l.bf16 %v5901_v27 }
 0xd21   : > { %v4623_v35 = vsel %vm4621_vm12, %v4620_v61, %v5903_v45  ;;  %v4622_v14 = vsel %vm4621_vm12, %v4619_v52, %v5902_v50 }
 0xd22   : > { %v4624_v39 = vpack.c.bf16 %v4623_v35, %v4622_v14 }
 0xd24   : > { %5806 = vmatmul.mubr.msk.bf16.vlgmr.msra.gmra.mrb[128].mxu1 %vm753_vm6, %v4624_v39 }
 0xd25   : > { %5825 = vmatprep.mubr.msk.bf16.mxu1 %vm6112_vm5, %v6111_v2  ;;  %5818 = vmatpush3.bf16.msra.mxu1 %v5910_v18  ;;  %v4912_v18 = vsub.s32 4, %v6325_v11 }
 0xd26   : > { %5819 = vmatprep.subr.bf16.mxu1 %v6111_v2 }
 0xd29   : > { %5820 = vmatpush3.bf16.msra.mxu1 %v5911_v62  ;;  %v4918_v62 = vsub.s32 5, %v6325_v11 }
 0xd2a   : > { %5821 = vmatprep.subr.bf16.mxu1 %v6111_v2 }
 0xd2d   : > { %5822 = vmatpush3.bf16.msra.mxu1 %v5912_v0 }
 0xd2e   : > { %5823 = vmatprep.subr.bf16.mxu1 %v6111_v2  ;;  %v4811_v2 = vsub.s32 3, %v6325_v11 }
 0xd30   : > { %v4812_v39 = vrot.slane %v7104_v58, %v4811_v2 }
 0xd31   : > { %5824 = vmatpush3.bf16.msra.mxu1 %v5913_v8 }
 0xdf7   : > { %v4682_v17 = vpop.f32.mrb[128].mxu1 }
 0xdf8   : > { %v4683_v22 = vadd.f32 %v4682_v17, %v4632_v12  ;;  %v5807_v33 = vpop.f32.mrb[129].mxu1 }
 0xdf9   : > { %v4685_v25 = vpop.f32.mrb[130].mxu1 }
 0xdfa   : > { %v4689_v47 = vadd.f32 %v6050_v56, %v4683_v22  ;;  %v4686_v51 = vadd.f32 %v4685_v25, %v4632_v12  ;;  %v5808_v59 = vpop.f32.mrb[131].mxu1 }
 0xdfc   : > { %v4690_v6 = vadd.f32 %v6051_v55, %v4686_v51  ;;  %v4691_v60 = vsel %vm753_vm6, %v4689_v47, 0.0 }
 0xdfd   : > { %4692 = vadd.xlane.f32.xlu1 %v4691_v60 }
 0xdfe   : > { %v4694_v32 = vsel %vm753_vm6, %v4690_v6, 0.0 }
 0xdff   : > { %4695 = vadd.xlane.f32.xlu0 %v4694_v32 }
 0xe8a   : > { %v4693_v15 = vpop.xlane.xlu1 %4692 }
 0xe8b   : > { %v4698_v7 = vmul.f32 0.03125, %v4693_v15 }
 0xe8c   : > { %v4696_v37 = vpop.xlane.xlu0 %4695 }
 0xe8d   : > { %v4700_v1 = vsub.f32 %v4689_v47, %v4698_v7  ;;  %v4699_v20 = vmul.f32 0.03125, %v4696_v37 }
 0xe8f   : > { %v4701_v42 = vsub.f32 %v4690_v6, %v4699_v20  ;;  %v4702_v36 = vmul.f32 %v4700_v1, %v4700_v1 }
 0xe91   : > { %v4704_v9 = vsel %vm753_vm6, %v4702_v36, 0.0  ;;  %v4703_v34 = vmul.f32 %v4701_v42, %v4701_v42 }
 0xe92   : > { %4705 = vadd.xlane.f32.xlu0 %v4704_v9 }
 0xe93   : > { %v4707_v24 = vsel %vm753_vm6, %v4703_v34, 0.0 }
 0xe94   : > { %4708 = vadd.xlane.f32.xlu1 %v4707_v24 }
 0xf1f   : > { %v4706_v49 = vpop.xlane.xlu0 %4705 }
 0xf20   : > { %v4710_v23 = vmul.f32 0.03125, %v4706_v49  ;;  %v4913_v49 = vrot.slane %v7104_v58, %v4912_v18 }
 0xf21   : > { %v4709_v31 = vpop.xlane.xlu1 %4708 }
 0xf22   : > { %v4712_v16 = vadd.f32 1e-05, %v4710_v23  ;;  %v4711_v40 = vmul.f32 0.03125, %v4709_v31  ;;  %v4919_v31 = vrot.slane %v7104_v58, %v4918_v62 }
 0xf24   : > { %6042 = vrsqrt.f32 %v4712_v16  ;;  %v4713_v26 = vadd.f32 1e-05, %v4711_v40 }
 0xf26   : > { %6044 = vrsqrt.f32 %v4713_v26 }
 0xf2e   : > { %v6043_v48 = vpop.eup %6042 }
 0xf2f   : > { %v4716_v53 = vmul.f32 %v6043_v48, %v4700_v1 }
 0xf30   : > { %v6045_v54 = vpop.eup %6044 }
 0xf31   : > { %v4722_v57 = vmul.f32 %v4721_v30, %v4716_v53  ;;  %v4717_v3 = vmul.f32 %v6045_v54, %v4701_v42 }
 0xf33   : > { %v4723_v46 = vmul.f32 %v4721_v30, %v4717_v3  ;;  %v4728_v19 = vadd.f32 %v4727_v21, %v4722_v57 }
 0xf35   : > { %v4729_v28 = vadd.f32 %v4727_v21, %v4723_v46 }
 0xf37   : > { %v4730_v63 = vpack.c.bf16 %v4729_v28, %v4728_v19 }
 0xf39   : > { %5814 = vmatmul.mubr.msk.bf16.vlgmr.msra.gmra.mrb[132].mxu0 %vm753_vm6, %v4730_v63 }
0x100c   : > { %v4791_v38 = vpop.f32.mrb[132].mxu0 }
0x100d   : > { %v4792_v41 = vadd.f32 %v5229_v43, %v4791_v38  ;;  %v5815_v27 = vpop.f32.mrb[133].mxu0 }
0x100e   : > { %v4794_v45 = vpop.f32.mrb[134].mxu0 }
0x100f   : > { %v4795_v50 = vadd.f32 %v5229_v43, %v4794_v45  ;;  %v5816_v52 = vpop.f32.mrb[135].mxu0  ;;  %v4798_v61 = vmax.f32 %v4792_v41, 0.0 }
0x1011   : > { %v4799_v35 = vmax.f32 %v4795_v50, 0.0 }
0x1013   : > { %v4800_v14 = vpack.c.bf16 %v4799_v35, %v4798_v61 }
0x1015   : > { %5826 = vmatmul.mubr.msk.bf16.vlgmr.msra.gmra.mrb[132].mxu1 %vm4837_vm13, %v4800_v14 }
0x10e8   : > { %v4875_v5 = vpop.f32.mrb[132].mxu1 }
0x10e9   : > { %v4876_v12 = vadd.f32 %v4875_v5, %v4812_v39  ;;  %v5827_v17 = vpop.f32.mrb[133].mxu1 }
0x10ea   : > { %v4878_v22 = vpop.f32.mrb[134].mxu1 }
0x10eb   : > { %v4882_v33 = vadd.f32 %v4876_v12, %v4728_v19  ;;  %v4879_v25 = vadd.f32 %v4878_v22, %v4812_v39  ;;  %v5828_v56 = vpop.f32.mrb[135].mxu1 }
0x10ed   : > { %v4883_v47 = vadd.f32 %v4879_v25, %v4729_v28  ;;  %v4884_v51 = vsel %vm753_vm6, %v4882_v33, 0.0 }
0x10ee   : > { %4885 = vadd.xlane.f32.xlu0 %v4884_v51 }
0x10ef   : > { %v4887_v59 = vsel %vm753_vm6, %v4883_v47, 0.0 }
0x10f0   : > { %4888 = vadd.xlane.f32.xlu1 %v4887_v59 }
0x117b   : > { %v4886_v55 = vpop.xlane.xlu0 %4885 }
0x117c   : > { %v4890_v6 = vmul.f32 0.03125, %v4886_v55 }
0x117d   : > { %v4889_v60 = vpop.xlane.xlu1 %4888 }
0x117e   : > { %v4892_v32 = vsub.f32 %v4882_v33, %v4890_v6  ;;  %v4891_v15 = vmul.f32 0.03125, %v4889_v60 }
0x1180   : > { %v4893_v7 = vsub.f32 %v4883_v47, %v4891_v15  ;;  %v4894_v37 = vmul.f32 %v4892_v32, %v4892_v32 }
0x1182   : > { %v4896_v1 = vsel %vm753_vm6, %v4894_v37, 0.0  ;;  %v4895_v20 = vmul.f32 %v4893_v7, %v4893_v7 }
0x1183   : > { %4897 = vadd.xlane.f32.xlu0 %v4896_v1 }
0x1184   : > { %v4899_v42 = vsel %vm753_vm6, %v4895_v20, 0.0 }
0x1185   : > { %4900 = vadd.xlane.f32.xlu1 %v4899_v42 }
0x1210   : > { %v4898_v36 = vpop.xlane.xlu0 %4897 }
0x1211   : > { %v4902_v9 = vmul.f32 0.03125, %v4898_v36 }
0x1212   : > { %v4901_v34 = vpop.xlane.xlu1 %4900 }
0x1213   : > { %v4904_v24 = vadd.f32 1e-05, %v4902_v9  ;;  %v4903_v10 = vmul.f32 0.03125, %v4901_v34 }
0x1215   : > { %6046 = vrsqrt.f32 %v4904_v24  ;;  %v4905_v44 = vadd.f32 1e-05, %v4903_v10 }
0x1217   : > { %6048 = vrsqrt.f32 %v4905_v44 }
0x121f   : > { %v6047_v23 = vpop.eup %6046 }
0x1220   : > { %v4908_v16 = vmul.f32 %v6047_v23, %v4892_v32 }
0x1221   : > { %v6049_v40 = vpop.eup %6048 }
0x1222   : > { %v4914_v26 = vmul.f32 %v4913_v49, %v4908_v16  ;;  %v4909_v4 = vmul.f32 %v6049_v40, %v4893_v7  ;;  %4927 = sbr.rel (%p5238_p6) target bundleno = 4655 (0x122f), region = 68 }
0x1224   : > { %v4920_v30 = vadd.f32 %v4919_v31, %v4914_v26  ;;  %v4915_v29 = vmul.f32 %v4913_v49, %v4909_v4 }
0x1226   : > { %4922 = vst.msk [vmem:[#allocation2] sm:$0xff] %vm753_vm6, %v4920_v30  ;;  %v4921_v48 = vadd.f32 %v4919_v31, %v4915_v29  ;;  %v4937_v11 = vrot.slane (!%p5238_p6), %v4920_v30, %v6333_v13  ;;  %v4930_v53 = vcombine.high (!%p5238_p6), %v4920_v30, %v4920_v30 }
0x1228   : > { %4923 = vst.msk [vmem:[#allocation2 + $0x8] sm:$0xff] %vm753_vm6, %v4921_v48  ;;  %v4954_v58 = vrot.slane (!%p5238_p6), %v4921_v48, %v6333_v13  ;;  %v4947_v54 = vcombine.high (!%p5238_p6), %v4921_v48, %v4921_v48  ;;  %v4945_v57 = vcombine.high (!%p5238_p6), %v4937_v11, %v4937_v11  ;;  %v4944_v3 = vrot.slane (!%p5238_p6), %v4930_v53, %v6333_v13 }
0x1229   : > { %4973 = vst.msk [vmem:[#allocation3] sm:$0x3] %vm4972_vm14, %v4937_v11 }
0x122a   : > { %4977 = vst.msk [vmem:[#allocation3 + $0x8] sm:$0x3] %vm4972_vm14, %v4954_v58  ;;  %v4962_v21 = vcombine.high %v4954_v58, %v4954_v58  ;;  %v4961_v46 = vrot.slane %v4947_v54, %v6333_v13  ;;  %4974 = vst.msk [vmem:[#allocation3 + $0x2] sm:$0x3] %vm4972_vm14, %v4945_v57  ;;  %v4946_v19 = vcombine.high %v4944_v3, %v4944_v3 }
0x122b   : > { %4975 = vst.msk [vmem:[#allocation3 + $0x4] sm:$0x3] %vm4972_vm14, %v4944_v3 }
0x122c   : > { %4978 = vst.msk [vmem:[#allocation3 + $0xa] sm:$0x3] %vm4972_vm14, %v4962_v21  ;;  %4979 = vst.msk [vmem:[#allocation3 + $0xc] sm:$0x3] %vm4972_vm14, %v4961_v46  ;;  %v4963_v28 = vcombine.high %v4961_v46, %v4961_v46 }
0x122d   : > { %4976 = vst.msk [vmem:[#allocation3 + $0x6] sm:$0x3] %vm4972_vm14, %v4946_v19 }
0x122e   : > { %4980 = vst.msk [vmem:[#allocation3 + $0xe] sm:$0x3] %vm4972_vm14, %v4963_v28 }
0x122f PF: > { %s7211_s13 = sadd.s32 4294967295, %s6104_s15   ;;  %s6128_s12 = smov [#allocation3]  }
0x1230   : > { %p7158_p7 = scmp.eq.s32.totalorder %s7211_s13, 1  ;;  %s4990_s24 = sshll.u32 %s6128_s12, 4  ;;  %s4991_s24 = int_to_ptr.vmem [resolvable:$true] %s4990_s24 }
0x1231   : > { %s6052_s19 = scalar_lea.vmem %s4991_s24, 256  ;;  %p6059_p11 = scmp.lt.s32.totalorder %s4991_s24, %s4991_s24 }
0x1232   : > { %p6053_p8 = scmp.ne.s32.totalorder %s4991_s24, %s6052_s19  ;;  %p6060_p12 = scmp.lt.s32.totalorder %s6052_s19, %s6052_s19 }
0x1234   : > { %p6054_p9 = pnand %p6053_p8, %p7158_p7  ;;  %p6061_p13 = por %p6060_p12, %p6059_p11 }
0x1236   : > { %p6055_p10 = pneg %p6054_p9 }
0x1238   : > { %p6062_p0 = pnand %p6061_p13, %p6055_p10 }
0x123a   : > { %6065 = shalt.err (!%p6062_p0)
}
0x123b   : > { %s6066_s30 = scalar_lea.hbm %s7203_s10, 256 }
0x123c   : > { %p6067_p1 = scmp.ne.s32.totalorder %s7203_s10, %s6066_s30  ;;  %p6072_p4 = scmp.lt.u32.totalorder %s6066_s30, %s7203_s10 }
0x123e   : > { %p6068_p2 = pnand %p6067_p1, %p7158_p7 }
0x1240   : > { %p6069_p3 = pneg %p6068_p2 }
0x1242   : > { %p6074_p5 = pnand %p6072_p4, %p6069_p3 }
0x1244   : > { %6077 = shalt.err (!%p6074_p5)
}
0x1245   : > { %s6129_s20 = smov 32   ;;  %s6130_s16 = smov 2  }
0x1246   : > { %5830 = dma.vmem_to_hbm [thread:$0]  (%p7158_p7), %s4991_s24, 256, %s7203_s10, [#allocation4], %s6129_s20, %s6129_s20, %s6130_s16  }
0x1247   : > { %6091 = dma.done.wait (%p7158_p7), [#allocation4], 256  }
0x1248   : > { %6093 = vsyncadd (%p7158_p7), [#allocation4], 4294967040 }
0x1249 PF: > { %s21_s15 = sadd.s32 1, %s6104_s15   ;;  %s7213_s13 = sld [smem:[#allocation6_spill]] }
0x124a   : > { %p18_p6 = scmp.ge.s32.totalorder %s21_s15, 4   ;;  %s7214_s14 = sld [smem:[#allocation7_spill]] }
0x124c   :  { %20 = sbr.rel (!%p18_p6) target bundleno = 5 (0x5), region = 120 }
0x1253   :  { %5006 = vsyncpa [#allocation4], 1 }
0x1254   :  { %5008 = vsyncpa [#allocation4 + $0x1], 1 }

</bundles_post_ra>
